<compile_context>
chip_gen: v5e
topology: v5e:2x2
jax: 0.10.0
libtpu: 0.0.40
codegen_flags: <defaults>
</compile_context>

<pallas_src>
import jax
import jax.numpy as jnp
import numpy as np
from jax import lax
from jax.experimental import pallas as pl
from jax.experimental.pallas import tpu as pltpu

C1, C2 = 32, 64            # conv1 / conv2 output channels
K1P = 16                   # conv1 im2col K (9) padded to 16
NA, NC = 225, 1            # Actor / Critic widths
HPAD = 384                 # merged head width: [0,225)=actor, 225=critic, rest pad
PAD = 32                   # zero-pad rows around the flattened h1 staging scratch


# ----------------------------- fused Pallas kernel ---------------------------

def _make_fused_kernel(B, H, W):
    P = H * W
    M = B * P
    assert PAD >= W + 1, "pad rows must cover the +/-(W+1) shifted reads"

    def kernel(p1_ref, w1_ref, sb1_ref, w2_ref, sb2_ref, wh_ref, bh_ref,
               out_ref, h1pad_ref):
        # ---- conv1 (im2col GEMM, f32) + folded BN1 + ReLU -------------------
        sb1 = sb1_ref[...]
        h1 = jnp.dot(p1_ref[...], w1_ref[...], preferred_element_type=jnp.float32)
        h1 = jnp.maximum(h1 * sb1[0:1, :] + sb1[1:2, :], 0.0)        # (M, C1) f32

        # ---- stage h1 into a zero-padded flattened-spatial scratch ----------
        # Pad rows only keep the +/- (W+1) shifted reads in-bounds; every
        # out-of-image row is explicitly masked below, so only the two border
        # regions are zeroed (the interior is fully overwritten each call).
        h1pad_ref[pl.ds(0, PAD), :] = jnp.zeros((PAD, C1), jnp.float32)
        h1pad_ref[pl.ds(PAD + M, PAD), :] = jnp.zeros((PAD, C1), jnp.float32)
        h1pad_ref[pl.ds(PAD, M), :] = h1

        # ---- build the (M, 9*C1) conv2 im2col patches in-register -----------
        r_in = lax.broadcasted_iota(jnp.int32, (M, C1), 0) % P   # per-image flat idx
        x_idx = r_in % W                                         # column index
        taps = []
        for t in range(9):
            oy, ox = t // 3 - 1, t % 3 - 1
            s = oy * W + ox
            tap = h1pad_ref[pl.ds(PAD + s, M), :]                # (M, C1) f32
            conds = []
            if oy < 0:
                conds.append(r_in >= (-oy) * W)                  # y >= -oy
            elif oy > 0:
                conds.append(r_in < P - oy * W)                  # y <  H - oy
            if ox < 0:
                conds.append(x_idx >= -ox)                       # x >= -ox
            elif ox > 0:
                conds.append(x_idx < W - ox)                     # x <  W - ox
            if conds:
                valid = conds[0]
                for c in conds[1:]:
                    valid = valid & c
                tap = jnp.where(valid, tap, 0.0)
            taps.append(tap)
        patches = jnp.concatenate(taps, axis=1).astype(jnp.bfloat16)  # (M, 288)

        # ---- conv2 as ONE lane-dense K=288 GEMM + folded BN2 + ReLU ---------
        sb2 = sb2_ref[...]
        h2 = jnp.dot(patches, w2_ref[...], preferred_element_type=jnp.float32)
        h2 = jnp.maximum(h2 * sb2[0:1, :] + sb2[1:2, :], 0.0)         # (M, C2)

        # ---- per-image global average pool ----------------------------------
        pooled = jnp.concatenate(
            [jnp.mean(h2[b * P:(b + 1) * P, :], axis=0, keepdims=True)
             for b in range(B)], axis=0)                              # (B, C2)

        # ---- merged Actor | Critic head (f32) + tanh on the critic lane -----
        z = jnp.dot(pooled, wh_ref[...],
                    preferred_element_type=jnp.float32) + bh_ref[...]  # (B, HPAD)
        lane = lax.broadcasted_iota(jnp.int32, z.shape, 1)
        out_ref[...] = jnp.where(lane == NA, jnp.tanh(z), z)

    return kernel


def nexus_fused(p1, w1, sb1, w2, sb2, wh, bh, *, B, H, W):
    P = H * W
    M = B * P
    kernel = _make_fused_kernel(B, H, W)

    out = pl.pallas_call(
        kernel,
        out_shape=jax.ShapeDtypeStruct((B, HPAD), jnp.float32),
        grid=(1,),
        in_specs=[
            pl.BlockSpec((M, K1P), lambda i: (0, 0)),        # conv1 patches (batch folded)
            pl.BlockSpec((K1P, C1), lambda i: (0, 0)),       # conv1 weights (K padded)
            pl.BlockSpec((2, C1), lambda i: (0, 0)),         # bn1 scale|shift
            pl.BlockSpec((9 * C1, C2), lambda i: (0, 0)),    # conv2 weights (tap-major)
            pl.BlockSpec((2, C2), lambda i: (0, 0)),         # bn2 scale|shift
            pl.BlockSpec((C2, HPAD), lambda i: (0, 0)),      # merged head weights
            pl.BlockSpec((1, HPAD), lambda i: (0, 0)),       # merged head bias
        ],
        out_specs=pl.BlockSpec((B, HPAD), lambda i: (0, 0)),
        scratch_shapes=[pltpu.VMEM((M + 2 * PAD, C1), jnp.float32)],  # padded flat h1
        compiler_params=pltpu.CompilerParams(dimension_semantics=("arbitrary",)),
    )(p1, w1, sb1, w2, sb2, wh, bh)

    return out[:, :NA], out[:, NA:NA + NC]


# ----------------------------- wrapper-side glue ------------------------------

def _fold_bn(gamma, beta, mean, var, conv_bias, eps=1e-5):
    scale = gamma / jnp.sqrt(var + eps)
    shift = beta + (conv_bias - mean) * scale
    return jnp.stack([scale, shift], axis=0).astype(jnp.float32)      # (2, C)


def _im2col_1ch(x_bhw, kh=3, kw=3, pad=1):
    # single-channel im2col: (B, H, W) -> (B, H*W, kh*kw), taps in (dy, dx) order
    B, H, W = x_bhw.shape
    xp = jnp.pad(x_bhw, ((0, 0), (pad, pad), (pad, pad)))
    cols = [xp[:, dy:dy + H, dx:dx + W] for dy in range(kh) for dx in range(kw)]
    return jnp.stack(cols, axis=-1).reshape(B, H * W, kh * kw)


@jax.jit
def nexus_small_forward(x_nchw, p):
    if x_nchw.ndim == 3:                      # mirror the PyTorch unsqueeze(0)
        x_nchw = x_nchw[None]
    B, Cin, H, W = x_nchw.shape
    assert Cin == 1
    P = H * W

    # conv1 patches: batch folded into M, K padded 9 -> K1P (f32, tiny)
    p1 = _im2col_1ch(x_nchw[:, 0]).reshape(B * P, 9)
    p1 = jnp.pad(p1, ((0, 0), (0, K1P - 9))).astype(jnp.float32)

    # fold conv bias + BN running stats into per-channel scale/shift (inference mode)
    sb1 = _fold_bn(p["bn1_gamma"], p["bn1_beta"], p["bn1_mean"], p["bn1_var"], p["conv1_b"])
    sb2 = _fold_bn(p["bn2_gamma"], p["bn2_beta"], p["bn2_mean"], p["bn2_var"], p["conv2_b"])

    # conv weights -> tap-major layouts matching the kernel's (dy, dx) ordering
    w1 = jnp.transpose(p["conv1_w"], (2, 3, 1, 0)).reshape(9, C1)
    w1 = jnp.pad(w1, ((0, K1P - 9), (0, 0))).astype(jnp.float32)
    w2 = jnp.transpose(p["conv2_w"], (2, 3, 1, 0)).reshape(9 * C1, C2).astype(jnp.bfloat16)

    # merged heads: actor in lanes [0,225), critic at lane 225, zero-padded to 384
    wh = (jnp.zeros((C2, HPAD), jnp.float32)
          .at[:, :NA].set(p["actor_w"].T)
          .at[:, NA].set(p["critic_w"][0]))
    bh = (jnp.zeros((1, HPAD), jnp.float32)
          .at[0, :NA].set(p["actor_b"])
          .at[0, NA].set(p["critic_b"][0]))

    return nexus_fused(p1, w1, sb1, w2, sb2, wh, bh, B=B, H=H, W=W)


# ----------------------------- parameters ------------------------------------

def init_params(key):
    ks = jax.random.split(key, 16)
    n = lambda k, s, sc: (jax.random.normal(k, s, jnp.float32) * sc)
    p = {}
    # conv weights in PyTorch layout (Cout, Cin, KH, KW)
    p["conv1_w"] = n(ks[0], (32, 1, 3, 3), 1.0 / 3.0)
    p["conv1_b"] = n(ks[1], (32,), 0.1)
    p["conv2_w"] = n(ks[2], (64, 32, 3, 3), 1.0 / 17.0)
    p["conv2_b"] = n(ks[3], (64,), 0.1)
    # batchnorm (inference-mode parameters + running stats)
    p["bn1_gamma"] = 1.0 + 0.1 * jax.random.normal(ks[4], (32,), jnp.float32)
    p["bn1_beta"] = 0.1 * jax.random.normal(ks[5], (32,), jnp.float32)
    p["bn1_mean"] = 0.1 * jax.random.normal(ks[6], (32,), jnp.float32)
    p["bn1_var"] = 1.0 + 0.2 * jax.random.uniform(ks[7], (32,), jnp.float32)
    p["bn2_gamma"] = 1.0 + 0.1 * jax.random.normal(ks[8], (64,), jnp.float32)
    p["bn2_beta"] = 0.1 * jax.random.normal(ks[9], (64,), jnp.float32)
    p["bn2_mean"] = 0.1 * jax.random.normal(ks[10], (64,), jnp.float32)
    p["bn2_var"] = 1.0 + 0.2 * jax.random.uniform(ks[11], (64,), jnp.float32)
    # linear heads in PyTorch layout (out_features, in_features)
    p["actor_w"] = n(ks[12], (225, 64), 1.0 / 8.0)
    p["actor_b"] = n(ks[13], (225,), 0.1)
    p["critic_w"] = n(ks[14], (1, 64), 1.0 / 8.0)
    p["critic_b"] = n(ks[15], (1,), 0.1)
    return p


# ----------------------------- pure-JAX reference -----------------------------

def nexus_small_reference(x_nchw, p, eps=1e-5):
    if x_nchw.ndim == 3:
        x_nchw = x_nchw[None]
    x = jnp.transpose(x_nchw, (0, 2, 3, 1))

    def conv(h, w_oihw, b):
        w_hwio = jnp.transpose(w_oihw, (2, 3, 1, 0))
        y = jax.lax.conv_general_dilated(
            h, w_hwio, window_strides=(1, 1), padding="SAME",
            dimension_numbers=("NHWC", "HWIO", "NHWC"))
        return y + b

    def bn(h, g, bta, m, v):
        return (h - m) / jnp.sqrt(v + eps) * g + bta

    h = jax.nn.relu(bn(conv(x, p["conv1_w"], p["conv1_b"]),
                       p["bn1_gamma"], p["bn1_beta"], p["bn1_mean"], p["bn1_var"]))
    h = jax.nn.relu(bn(conv(h, p["conv2_w"], p["conv2_b"]),
                       p["bn2_gamma"], p["bn2_beta"], p["bn2_mean"], p["bn2_var"]))
    pooled = jnp.mean(h, axis=(1, 2))                      # (B, 64)
    actor = pooled @ p["actor_w"].T + p["actor_b"]
    critic = jnp.tanh(pooled @ p["critic_w"].T + p["critic_b"])
    return actor, critic


# ----------------------------- main -------------------------------------------

if __name__ == "__main__":
    key = jax.random.PRNGKey(0)
    k_params, k_x = jax.random.split(key)
    params = init_params(k_params)

    # small input consistent with the module: batch=2, 1 channel, 16x16 spatial
    x = jax.random.normal(k_x, (2, 1, 16, 16), jnp.float32)

    actor, critic = nexus_small_forward(x, params)
    jax.block_until_ready((actor, critic))

    actor_ref, critic_ref = nexus_small_reference(x, params)
    np.testing.assert_allclose(np.asarray(actor), np.asarray(actor_ref),
                               rtol=5e-2, atol=5e-2)
    np.testing.assert_allclose(np.asarray(critic), np.asarray(critic_ref),
                               rtol=5e-2, atol=5e-2)
    assert actor.shape == (2, 225) and critic.shape == (2, 1)

    print("KERNEL_OK")
</pallas_src>

<mosaic_0001>
module attributes {stable_mosaic.version = 11 : i64} {
  func.func @kernel(%arg0: i32, %arg1: memref<512x16xf32, #tpu.memory_space<vmem>>, %arg2: memref<16x32xf32, #tpu.memory_space<vmem>>, %arg3: memref<2x32xf32, #tpu.memory_space<vmem>>, %arg4: memref<288x64xbf16, #tpu.memory_space<vmem>>, %arg5: memref<2x64xf32, #tpu.memory_space<vmem>>, %arg6: memref<64x384xf32, #tpu.memory_space<vmem>>, %arg7: memref<1x384xf32, #tpu.memory_space<vmem>>, %arg8: memref<2x384xf32, #tpu.memory_space<vmem>>, %arg9: memref<576x32xf32, #tpu.memory_space<vmem>>) attributes {dimension_semantics = [#tpu.dimension_semantics<arbitrary>], iteration_bounds = array<i64: 1>, scalar_prefetch = 0 : i64, scratch_operands = 1 : i64, tpu.core_type = #tpu.core_type<tc>, window_params = [{pipeline_mode = #tpu.pipeline_mode<synchronous>, transform_indices = @transform_0, window_bounds = array<i64: 512, 16>}, {pipeline_mode = #tpu.pipeline_mode<synchronous>, transform_indices = @transform_1, window_bounds = array<i64: 16, 32>}, {pipeline_mode = #tpu.pipeline_mode<synchronous>, transform_indices = @transform_2, window_bounds = array<i64: 2, 32>}, {pipeline_mode = #tpu.pipeline_mode<synchronous>, transform_indices = @transform_3, window_bounds = array<i64: 288, 64>}, {pipeline_mode = #tpu.pipeline_mode<synchronous>, transform_indices = @transform_4, window_bounds = array<i64: 2, 64>}, {pipeline_mode = #tpu.pipeline_mode<synchronous>, transform_indices = @transform_5, window_bounds = array<i64: 64, 384>}, {pipeline_mode = #tpu.pipeline_mode<synchronous>, transform_indices = @transform_6, window_bounds = array<i64: 1, 384>}, {pipeline_mode = #tpu.pipeline_mode<synchronous>, transform_indices = @transform_7, window_bounds = array<i64: 2, 384>}]} {
    %c0 = arith.constant 0 : index
    %c0_0 = arith.constant 0 : index
    %0 = vector.load %arg3[%c0, %c0_0] : memref<2x32xf32, #tpu.memory_space<vmem>>, vector<2x32xf32>
    %c0_1 = arith.constant 0 : index
    %c0_2 = arith.constant 0 : index
    %1 = vector.load %arg1[%c0_1, %c0_2] : memref<512x16xf32, #tpu.memory_space<vmem>>, vector<512x16xf32>
    %c0_3 = arith.constant 0 : index
    %c0_4 = arith.constant 0 : index
    %2 = vector.load %arg2[%c0_3, %c0_4] : memref<16x32xf32, #tpu.memory_space<vmem>>, vector<16x32xf32>
    %cst = arith.constant dense<0.000000e+00> : vector<512x32xf32>
    %3 = tpu.matmul %1, %2, %cst {dimension_numbers = #tpu.dot_dimension_numbers<[1], [0], [0], [1], [0, 0, 1, 1], [], []>} : vector<512x16xf32>, vector<16x32xf32>, vector<512x32xf32> -> vector<512x32xf32>
    %4 = vector.extract_strided_slice %0 {offsets = [0, 0], sizes = [1, 32], strides = [1, 1]} : vector<2x32xf32> to vector<1x32xf32>
    %5 = vector.broadcast %4 : vector<1x32xf32> to vector<512x32xf32>
    %6 = arith.mulf %3, %5 : vector<512x32xf32>
    %7 = vector.extract_strided_slice %0 {offsets = [1, 0], sizes = [1, 32], strides = [1, 1]} : vector<2x32xf32> to vector<1x32xf32>
    %8 = vector.broadcast %7 : vector<1x32xf32> to vector<512x32xf32>
    %9 = arith.addf %6, %8 : vector<512x32xf32>
    %cst_5 = arith.constant 0.000000e+00 : f32
    %10 = vector.broadcast %cst_5 : f32 to vector<512x32xf32>
    %11 = arith.maximumf %9, %10 : vector<512x32xf32>
    %cst_6 = arith.constant 0.000000e+00 : f32
    %12 = vector.broadcast %cst_6 : f32 to vector<32x32xf32>
    %c0_7 = arith.constant 0 : index
    %c0_8 = arith.constant 0 : index
    %13 = vector.load %arg9[%c0_7, %c0_8] : memref<576x32xf32, #tpu.memory_space<vmem>>, vector<32x32xf32>
    tpu.vector_store %arg9[%c0_7, %c0_8], %12 {strides = array<i32>} : memref<576x32xf32, #tpu.memory_space<vmem>>, vector<32x32xf32>,
    %cst_9 = arith.constant 0.000000e+00 : f32
    %14 = vector.broadcast %cst_9 : f32 to vector<32x32xf32>
    %c544 = arith.constant 544 : index
    %c0_10 = arith.constant 0 : index
    %15 = vector.load %arg9[%c544, %c0_10] : memref<576x32xf32, #tpu.memory_space<vmem>>, vector<32x32xf32>
    tpu.vector_store %arg9[%c544, %c0_10], %14 {strides = array<i32>} : memref<576x32xf32, #tpu.memory_space<vmem>>, vector<32x32xf32>,
    %c32 = arith.constant 32 : index
    %c0_11 = arith.constant 0 : index
    %16 = vector.load %arg9[%c32, %c0_11] : memref<576x32xf32, #tpu.memory_space<vmem>>, vector<512x32xf32>
    tpu.vector_store %arg9[%c32, %c0_11], %11 {strides = array<i32>} : memref<576x32xf32, #tpu.memory_space<vmem>>, vector<512x32xf32>,
    %17 = tpu.iota {dimensions = array<i32: 0>} : vector<512x32xi32>
    %c256_i32 = arith.constant 256 : i32
    %c0_i32 = arith.constant 0 : i32
    %18 = arith.cmpi eq, %c256_i32, %c0_i32 : i32
    %c1_i32 = arith.constant 1 : i32
    %19 = arith.select %18, %c1_i32, %c256_i32 : i32
    %20 = vector.broadcast %19 : i32 to vector<512x32xi32>
    %21 = arith.remsi %17, %20 : vector<512x32xi32>
    %c0_i32_12 = arith.constant 0 : i32
    %22 = vector.broadcast %c0_i32_12 : i32 to vector<512x32xi32>
    %23 = arith.cmpi ne, %21, %22 : vector<512x32xi32>
    %c0_i32_13 = arith.constant 0 : i32
    %24 = vector.broadcast %c0_i32_13 : i32 to vector<512x32xi32>
    %25 = arith.cmpi slt, %21, %24 : vector<512x32xi32>
    %c0_i32_14 = arith.constant 0 : i32
    %26 = arith.cmpi slt, %19, %c0_i32_14 : i32
    %27 = vector.broadcast %26 : i1 to vector<512x32xi1>
    %28 = vector.broadcast %27 : vector<512x32xi1> to vector<512x32xi1>
    %29 = arith.xori %25, %28 : vector<512x32xi1>
    %30 = arith.andi %29, %23 : vector<512x32xi1>
    %31 = vector.broadcast %19 : i32 to vector<512x32xi32>
    %32 = arith.addi %21, %31 : vector<512x32xi32>
    %33 = arith.select %30, %32, %21 : vector<512x32xi1>, vector<512x32xi32>
    %c16_i32 = arith.constant 16 : i32
    %c0_i32_15 = arith.constant 0 : i32
    %34 = arith.cmpi eq, %c16_i32, %c0_i32_15 : i32
    %c1_i32_16 = arith.constant 1 : i32
    %35 = arith.select %34, %c1_i32_16, %c16_i32 : i32
    %36 = vector.broadcast %35 : i32 to vector<512x32xi32>
    %37 = arith.remsi %33, %36 : vector<512x32xi32>
    %c0_i32_17 = arith.constant 0 : i32
    %38 = vector.broadcast %c0_i32_17 : i32 to vector<512x32xi32>
    %39 = arith.cmpi ne, %37, %38 : vector<512x32xi32>
    %c0_i32_18 = arith.constant 0 : i32
    %40 = vector.broadcast %c0_i32_18 : i32 to vector<512x32xi32>
    %41 = arith.cmpi slt, %37, %40 : vector<512x32xi32>
    %c0_i32_19 = arith.constant 0 : i32
    %42 = arith.cmpi slt, %35, %c0_i32_19 : i32
    %43 = vector.broadcast %42 : i1 to vector<512x32xi1>
    %44 = vector.broadcast %43 : vector<512x32xi1> to vector<512x32xi1>
    %45 = arith.xori %41, %44 : vector<512x32xi1>
    %46 = arith.andi %45, %39 : vector<512x32xi1>
    %47 = vector.broadcast %35 : i32 to vector<512x32xi32>
    %48 = arith.addi %37, %47 : vector<512x32xi32>
    %49 = arith.select %46, %48, %37 : vector<512x32xi1>, vector<512x32xi32>
    %c15 = arith.constant 15 : index
    %c0_20 = arith.constant 0 : index
    %50 = vector.load %arg9[%c15, %c0_20] : memref<576x32xf32, #tpu.memory_space<vmem>>, vector<512x32xf32>
    %c16_i32_21 = arith.constant 16 : i32
    %51 = vector.broadcast %c16_i32_21 : i32 to vector<512x32xi32>
    %52 = arith.cmpi sge, %33, %51 : vector<512x32xi32>
    %c1_i32_22 = arith.constant 1 : i32
    %53 = vector.broadcast %c1_i32_22 : i32 to vector<512x32xi32>
    %54 = arith.cmpi sge, %49, %53 : vector<512x32xi32>
    %55 = arith.andi %52, %54 : vector<512x32xi1>
    %cst_23 = arith.constant 0.000000e+00 : f32
    %56 = vector.broadcast %cst_23 : f32 to vector<512x32xf32>
    %57 = arith.select %55, %50, %56 : vector<512x32xi1>, vector<512x32xf32>
    %c16 = arith.constant 16 : index
    %c0_24 = arith.constant 0 : index
    %58 = vector.load %arg9[%c16, %c0_24] : memref<576x32xf32, #tpu.memory_space<vmem>>, vector<512x32xf32>
    %c16_i32_25 = arith.constant 16 : i32
    %59 = vector.broadcast %c16_i32_25 : i32 to vector<512x32xi32>
    %60 = arith.cmpi sge, %33, %59 : vector<512x32xi32>
    %cst_26 = arith.constant 0.000000e+00 : f32
    %61 = vector.broadcast %cst_26 : f32 to vector<512x32xf32>
    %62 = arith.select %60, %58, %61 : vector<512x32xi1>, vector<512x32xf32>
    %c17 = arith.constant 17 : index
    %c0_27 = arith.constant 0 : index
    %63 = vector.load %arg9[%c17, %c0_27] : memref<576x32xf32, #tpu.memory_space<vmem>>, vector<512x32xf32>
    %c16_i32_28 = arith.constant 16 : i32
    %64 = vector.broadcast %c16_i32_28 : i32 to vector<512x32xi32>
    %65 = arith.cmpi sge, %33, %64 : vector<512x32xi32>
    %c15_i32 = arith.constant 15 : i32
    %66 = vector.broadcast %c15_i32 : i32 to vector<512x32xi32>
    %67 = arith.cmpi slt, %49, %66 : vector<512x32xi32>
    %68 = arith.andi %65, %67 : vector<512x32xi1>
    %cst_29 = arith.constant 0.000000e+00 : f32
    %69 = vector.broadcast %cst_29 : f32 to vector<512x32xf32>
    %70 = arith.select %68, %63, %69 : vector<512x32xi1>, vector<512x32xf32>
    %c31 = arith.constant 31 : index
    %c0_30 = arith.constant 0 : index
    %71 = vector.load %arg9[%c31, %c0_30] : memref<576x32xf32, #tpu.memory_space<vmem>>, vector<512x32xf32>
    %c1_i32_31 = arith.constant 1 : i32
    %72 = vector.broadcast %c1_i32_31 : i32 to vector<512x32xi32>
    %73 = arith.cmpi sge, %49, %72 : vector<512x32xi32>
    %cst_32 = arith.constant 0.000000e+00 : f32
    %74 = vector.broadcast %cst_32 : f32 to vector<512x32xf32>
    %75 = arith.select %73, %71, %74 : vector<512x32xi1>, vector<512x32xf32>
    %c32_33 = arith.constant 32 : index
    %c0_34 = arith.constant 0 : index
    %76 = vector.load %arg9[%c32_33, %c0_34] : memref<576x32xf32, #tpu.memory_space<vmem>>, vector<512x32xf32>
    %c33 = arith.constant 33 : index
    %c0_35 = arith.constant 0 : index
    %77 = vector.load %arg9[%c33, %c0_35] : memref<576x32xf32, #tpu.memory_space<vmem>>, vector<512x32xf32>
    %c15_i32_36 = arith.constant 15 : i32
    %78 = vector.broadcast %c15_i32_36 : i32 to vector<512x32xi32>
    %79 = arith.cmpi slt, %49, %78 : vector<512x32xi32>
    %cst_37 = arith.constant 0.000000e+00 : f32
    %80 = vector.broadcast %cst_37 : f32 to vector<512x32xf32>
    %81 = arith.select %79, %77, %80 : vector<512x32xi1>, vector<512x32xf32>
    %c47 = arith.constant 47 : index
    %c0_38 = arith.constant 0 : index
    %82 = vector.load %arg9[%c47, %c0_38] : memref<576x32xf32, #tpu.memory_space<vmem>>, vector<512x32xf32>
    %c240_i32 = arith.constant 240 : i32
    %83 = vector.broadcast %c240_i32 : i32 to vector<512x32xi32>
    %84 = arith.cmpi slt, %33, %83 : vector<512x32xi32>
    %c1_i32_39 = arith.constant 1 : i32
    %85 = vector.broadcast %c1_i32_39 : i32 to vector<512x32xi32>
    %86 = arith.cmpi sge, %49, %85 : vector<512x32xi32>
    %87 = arith.andi %84, %86 : vector<512x32xi1>
    %cst_40 = arith.constant 0.000000e+00 : f32
    %88 = vector.broadcast %cst_40 : f32 to vector<512x32xf32>
    %89 = arith.select %87, %82, %88 : vector<512x32xi1>, vector<512x32xf32>
    %c48 = arith.constant 48 : index
    %c0_41 = arith.constant 0 : index
    %90 = vector.load %arg9[%c48, %c0_41] : memref<576x32xf32, #tpu.memory_space<vmem>>, vector<512x32xf32>
    %c240_i32_42 = arith.constant 240 : i32
    %91 = vector.broadcast %c240_i32_42 : i32 to vector<512x32xi32>
    %92 = arith.cmpi slt, %33, %91 : vector<512x32xi32>
    %cst_43 = arith.constant 0.000000e+00 : f32
    %93 = vector.broadcast %cst_43 : f32 to vector<512x32xf32>
    %94 = arith.select %92, %90, %93 : vector<512x32xi1>, vector<512x32xf32>
    %c49 = arith.constant 49 : index
    %c0_44 = arith.constant 0 : index
    %95 = vector.load %arg9[%c49, %c0_44] : memref<576x32xf32, #tpu.memory_space<vmem>>, vector<512x32xf32>
    %c240_i32_45 = arith.constant 240 : i32
    %96 = vector.broadcast %c240_i32_45 : i32 to vector<512x32xi32>
    %97 = arith.cmpi slt, %33, %96 : vector<512x32xi32>
    %c15_i32_46 = arith.constant 15 : i32
    %98 = vector.broadcast %c15_i32_46 : i32 to vector<512x32xi32>
    %99 = arith.cmpi slt, %49, %98 : vector<512x32xi32>
    %100 = arith.andi %97, %99 : vector<512x32xi1>
    %cst_47 = arith.constant 0.000000e+00 : f32
    %101 = vector.broadcast %cst_47 : f32 to vector<512x32xf32>
    %102 = arith.select %100, %95, %101 : vector<512x32xi1>, vector<512x32xf32>
    %103 = tpu.concatenate %57, %62, %70, %75, %76, %81, %89, %94, %102 in 1 : vector<512x32xf32>, vector<512x32xf32>, vector<512x32xf32>, vector<512x32xf32>, vector<512x32xf32>, vector<512x32xf32>, vector<512x32xf32>, vector<512x32xf32>, vector<512x32xf32> -> vector<512x288xf32>
    %104 = arith.truncf %103 : vector<512x288xf32> to vector<512x288xbf16>
    %c0_48 = arith.constant 0 : index
    %c0_49 = arith.constant 0 : index
    %105 = vector.load %arg5[%c0_48, %c0_49] : memref<2x64xf32, #tpu.memory_space<vmem>>, vector<2x64xf32>
    %c0_50 = arith.constant 0 : index
    %c0_51 = arith.constant 0 : index
    %106 = vector.load %arg4[%c0_50, %c0_51] : memref<288x64xbf16, #tpu.memory_space<vmem>>, vector<288x64xbf16>
    %cst_52 = arith.constant dense<0.000000e+00> : vector<512x64xf32>
    %107 = tpu.matmul %104, %106, %cst_52 {dimension_numbers = #tpu.dot_dimension_numbers<[1], [0], [0], [1], [0, 0, 1, 1], [], []>} : vector<512x288xbf16>, vector<288x64xbf16>, vector<512x64xf32> -> vector<512x64xf32>
    %108 = vector.extract_strided_slice %105 {offsets = [0, 0], sizes = [1, 64], strides = [1, 1]} : vector<2x64xf32> to vector<1x64xf32>
    %109 = vector.broadcast %108 : vector<1x64xf32> to vector<512x64xf32>
    %110 = arith.mulf %107, %109 : vector<512x64xf32>
    %111 = vector.extract_strided_slice %105 {offsets = [1, 0], sizes = [1, 64], strides = [1, 1]} : vector<2x64xf32> to vector<1x64xf32>
    %112 = vector.broadcast %111 : vector<1x64xf32> to vector<512x64xf32>
    %113 = arith.addf %110, %112 : vector<512x64xf32>
    %cst_53 = arith.constant 0.000000e+00 : f32
    %114 = vector.broadcast %cst_53 : f32 to vector<512x64xf32>
    %115 = arith.maximumf %113, %114 : vector<512x64xf32>
    %116 = vector.extract_strided_slice %115 {offsets = [0, 0], sizes = [256, 64], strides = [1, 1]} : vector<512x64xf32> to vector<256x64xf32>
    %cst_54 = arith.constant dense<0.000000e+00> : vector<64xf32>
    %117 = vector.multi_reduction <add>, %116, %cst_54 [0] : vector<256x64xf32> to vector<64xf32>
    %118 = vector.shape_cast %117 : vector<64xf32> to vector<1x64xf32>
    %cst_55 = arith.constant 2.560000e+02 : f32
    %119 = vector.broadcast %cst_55 : f32 to vector<1x64xf32>
    %120 = arith.divf %118, %119 : vector<1x64xf32>
    %121 = vector.extract_strided_slice %115 {offsets = [256, 0], sizes = [256, 64], strides = [1, 1]} : vector<512x64xf32> to vector<256x64xf32>
    %cst_56 = arith.constant dense<0.000000e+00> : vector<64xf32>
    %122 = vector.multi_reduction <add>, %121, %cst_56 [0] : vector<256x64xf32> to vector<64xf32>
    %123 = vector.shape_cast %122 : vector<64xf32> to vector<1x64xf32>
    %cst_57 = arith.constant 2.560000e+02 : f32
    %124 = vector.broadcast %cst_57 : f32 to vector<1x64xf32>
    %125 = arith.divf %123, %124 : vector<1x64xf32>
    %126 = tpu.concatenate %120, %125 in 0 : vector<1x64xf32>, vector<1x64xf32> -> vector<2x64xf32>
    %c0_58 = arith.constant 0 : index
    %c0_59 = arith.constant 0 : index
    %127 = vector.load %arg6[%c0_58, %c0_59] : memref<64x384xf32, #tpu.memory_space<vmem>>, vector<64x384xf32>
    %cst_60 = arith.constant dense<0.000000e+00> : vector<2x384xf32>
    %128 = tpu.matmul %126, %127, %cst_60 {dimension_numbers = #tpu.dot_dimension_numbers<[1], [0], [0], [1], [0, 0, 1, 1], [], []>} : vector<2x64xf32>, vector<64x384xf32>, vector<2x384xf32> -> vector<2x384xf32>
    %c0_61 = arith.constant 0 : index
    %c0_62 = arith.constant 0 : index
    %129 = vector.load %arg7[%c0_61, %c0_62] : memref<1x384xf32, #tpu.memory_space<vmem>>, vector<1x384xf32>
    %130 = vector.broadcast %129 : vector<1x384xf32> to vector<2x384xf32>
    %131 = arith.addf %128, %130 : vector<2x384xf32>
    %132 = tpu.iota {dimensions = array<i32: 1>} : vector<2x384xi32>
    %c225_i32 = arith.constant 225 : i32
    %133 = vector.broadcast %c225_i32 : i32 to vector<2x384xi32>
    %134 = arith.cmpi eq, %132, %133 : vector<2x384xi32>
    %135 = math.tanh %131 : vector<2x384xf32>
    %136 = arith.select %134, %135, %131 : vector<2x384xi1>, vector<2x384xf32>
    %c0_63 = arith.constant 0 : index
    %c0_64 = arith.constant 0 : index
    %137 = vector.load %arg8[%c0_63, %c0_64] : memref<2x384xf32, #tpu.memory_space<vmem>>, vector<2x384xf32>
    tpu.vector_store %arg8[%c0_63, %c0_64], %136 {strides = array<i32>} : memref<2x384xf32, #tpu.memory_space<vmem>>, vector<2x384xf32>,
    return
  }
  func.func @transform_0(%arg0: i32) -> (i32, i32) {
    %c0_i32 = arith.constant 0 : i32
    %c0_i32_0 = arith.constant 0 : i32
    %c0_i32_1 = arith.constant 0 : i32
    return %c0_i32, %c0_i32_0 : i32, i32
  }
  func.func @transform_1(%arg0: i32) -> (i32, i32) {
    %c0_i32 = arith.constant 0 : i32
    %c0_i32_0 = arith.constant 0 : i32
    %c0_i32_1 = arith.constant 0 : i32
    return %c0_i32, %c0_i32_0 : i32, i32
  }
  func.func @transform_2(%arg0: i32) -> (i32, i32) {
    %c0_i32 = arith.constant 0 : i32
    %c0_i32_0 = arith.constant 0 : i32
    %c0_i32_1 = arith.constant 0 : i32
    return %c0_i32, %c0_i32_0 : i32, i32
  }
  func.func @transform_3(%arg0: i32) -> (i32, i32) {
    %c0_i32 = arith.constant 0 : i32
    %c0_i32_0 = arith.constant 0 : i32
    %c0_i32_1 = arith.constant 0 : i32
    return %c0_i32, %c0_i32_0 : i32, i32
  }
  func.func @transform_4(%arg0: i32) -> (i32, i32) {
    %c0_i32 = arith.constant 0 : i32
    %c0_i32_0 = arith.constant 0 : i32
    %c0_i32_1 = arith.constant 0 : i32
    return %c0_i32, %c0_i32_0 : i32, i32
  }
  func.func @transform_5(%arg0: i32) -> (i32, i32) {
    %c0_i32 = arith.constant 0 : i32
    %c0_i32_0 = arith.constant 0 : i32
    %c0_i32_1 = arith.constant 0 : i32
    return %c0_i32, %c0_i32_0 : i32, i32
  }
  func.func @transform_6(%arg0: i32) -> (i32, i32) {
    %c0_i32 = arith.constant 0 : i32
    %c0_i32_0 = arith.constant 0 : i32
    %c0_i32_1 = arith.constant 0 : i32
    return %c0_i32, %c0_i32_0 : i32, i32
  }
  func.func @transform_7(%arg0: i32) -> (i32, i32) {
    %c0_i32 = arith.constant 0 : i32
    %c0_i32_0 = arith.constant 0 : i32
    %c0_i32_1 = arith.constant 0 : i32
    return %c0_i32, %c0_i32_0 : i32, i32
  }
}

</mosaic_0001>

<bundles_post_ra>
// kernel: nexus_small_forward.1
= control target key start
LH: loop header
LB: loop body
LE: loop exit
PB: predicated region body
PF: predicated region fallthrough
CT: control target
= control target key end

     0   :  { %vm94_vm0 = vcmask 130048   ;;  %vm690_vm1 = vcmask 261120   ;;  %v11570_v16 = vmov 0.0   ;;  %s8071_s9 = smov 32   ;;  %s8072_s11 = smov 64   ;;  %v11569_v19 = vlaneseq  ;;  %s11561_s1 = inlined_call_operand.vmem [shape: f32[16,32], index: 1, kind: input, shape index: {}]   ;;  %s11562_s0 = inlined_call_operand.vmem [shape: f32[512,16], index: 0, kind: input, shape index: {}]   ;;  %s11563_s2 = inlined_call_operand.vmem [shape: f32[2,32], index: 2, kind: input, shape index: {}]   ;;  %s11564_s3 = inlined_call_operand.vmem [shape: bf16[288,64], index: 3, kind: input, shape index: {}]   ;;  %s11565_s4 = inlined_call_operand.vmem [shape: f32[2,64], index: 4, kind: input, shape index: {}]   ;;  %s11566_s5 = inlined_call_operand.vmem [shape: f32[64,384], index: 5, kind: input, shape index: {}]   ;;  %s11567_s6 = inlined_call_operand.vmem [shape: f32[1,384], index: 6, kind: input, shape index: {}]   ;;  %s11568_s7 = inlined_call_operand.vmem [shape: f32[2,384], index: 7, kind: output, shape index: {}]  }
   0x1   :  { %v93_v0 = vld [vmem:[%s11561_s1 + $0x8] sm:$0xff]  ;;  %v92_v1 = vld [vmem:[%s11561_s1] sm:$0xff]  ;;  %v30_v4 = vld [vmem:[%s11562_s0 + $0x10] sm:$0xff]  ;;  %7018 = vrot.lane.b32.xlu0 %v11570_v16, %s8071_s9  ;;  %694 = vst.msk [vmem:[#allocation2 + $0x18] sm:$0xff] %vm690_vm1, %v11570_v16  ;;  %s8073_s8 = smov 96  }
   0x2   :  { %301 = vmatpush.msra.mxu0 %v93_v0  ;;  %v28_v2 = vld [vmem:[%s11562_s0] sm:$0xff]  ;;  %v29_v3 = vld [vmem:[%s11562_s0 + $0x8] sm:$0xff]  ;;  %v31_v5 = vld [vmem:[%s11562_s0 + $0x18] sm:$0xff]  ;;  %695 = vst.msk [vmem:[#allocation2 + $0x220] sm:$0xff] %vm690_vm1, %v11570_v16  ;;  %7028 = vrot.lane.b32.xlu2 %v11570_v16, %s8072_s11  ;;  %v8200_v21 = vshrl.u32 %v11569_v19, 7 }
   0x3   :  { %v32_v6 = vld [vmem:[%s11562_s0 + $0x20] sm:$0xff]  ;;  %v33_v7 = vld [vmem:[%s11562_s0 + $0x28] sm:$0xff]  ;;  %v34_v8 = vld [vmem:[%s11562_s0 + $0x30] sm:$0xff]  ;;  %7023 = vrot.lane.b32.xlu1 %v11570_v16, %s8071_s9 }
   0x4   :  { %302 = vmatpush.msra.mxu0 %v92_v1  ;;  %v35_v9 = vld [vmem:[%s11562_s0 + $0x38] sm:$0xff]  ;;  %v36_v10 = vld [vmem:[%s11562_s0 + $0x40] sm:$0xff]  ;;  %v37_v11 = vld [vmem:[%s11562_s0 + $0x48] sm:$0xff]  ;;  %v766_v26 = vadd.s32 16, %v8200_v21  ;;  %v765_v43 = vadd.s32 8, %v8200_v21  ;;  %v767_v44 = vadd.s32 24, %v8200_v21 }
   0x5   :  { %6824 = vmatmul.msk.f32.vlgmr.msra.gmra.mxu0 %vm94_vm0, %v28_v2  ;;  %v38_v12 = vld [vmem:[%s11562_s0 + $0x50] sm:$0xff]  ;;  %v39_v13 = vld [vmem:[%s11562_s0 + $0x58] sm:$0xff]  ;;  %v40_v14 = vld [vmem:[%s11562_s0 + $0x60] sm:$0xff]  ;;  %v768_v46 = vadd.s32 32, %v8200_v21  ;;  %v832_v62 = vand.u32 255, %v8200_v21 }
   0x6   :  { %v41_v15 = vld [vmem:[%s11562_s0 + $0x68] sm:$0xff]  ;;  %v42_v17 = vld [vmem:[%s11562_s0 + $0x70] sm:$0xff]  ;;  %v43_v18 = vld [vmem:[%s11562_s0 + $0x78] sm:$0xff]  ;;  %v846_v29 = vand.u32 255, %v766_v26  ;;  %v839_v48 = vand.u32 255, %v765_v43  ;;  %v853_v49 = vand.u32 255, %v767_v44 }
   0x7   :  { %v27_v20 = vld [vmem:[%s11563_s2] sm:$0x3]  ;;  %v45_v32 = vld [vmem:[%s11562_s0 + $0x88] sm:$0xff]  ;;  %v46_v42 = vld [vmem:[%s11562_s0 + $0x90] sm:$0xff]  ;;  %v860_v51 = vand.u32 255, %v768_v46 }
   0x8   :  { %v8202_v22 = vperm.slane %v27_v20, 0  ;;  %v8204_v23 = vperm.slane %v27_v20, 1  ;;  %v44_v25 = vld [vmem:[%s11562_s0 + $0x80] sm:$0xff]  ;;  %v8219_v33 = vand.u32 15, %v846_v29  ;;  %v7010_v35 = vld [vmem:[%s11564_s3 + $0x88] sm:$0xff]  ;;  %v47_v56 = vld [vmem:[%s11562_s0 + $0x98] sm:$0xff] }
   0x9   :  { %7033 = vrot.lane.b32.xlu0 %v11570_v16, %s8072_s11  ;;  %6195 = vmatpush.bf16.msra.mxu3 %v7010_v35  ;;  %v7009_v38 = vld [vmem:[%s11564_s3 + $0x80] sm:$0xff]  ;;  %v8258_v57 = vand.u32 15, %v839_v48  ;;  %v8260_v58 = vand.u32 15, %v853_v49  ;;  %v8264_v60 = vand.u32 15, %v860_v51  ;;  %v50_v49 = vld [vmem:[%s11562_s0 + $0xb0] sm:$0xff] }
   0xa   :  { %vm2494_vm2 = vcmp.ge.s32.totalorder %v8219_v33, 1  ;;  %v7000_v33 = vld [vmem:[%s11564_s3 + $0x38] sm:$0xff] }
   0xb   :  { %vm2877_vm3 = vcmp.lt.s32.totalorder %v8258_v57, 15  ;;  %vm2879_vm4 = vcmp.lt.s32.totalorder %v8260_v58, 15  ;;  %vm2496_vm5 = vcmp.ge.s32.totalorder %v8264_v60, 1  ;;  %5851 = vmatpush.bf16.msra.mxu1 %v7000_v33  ;;  %v55_v60 = vld [vmem:[%s11562_s0 + $0xd8] sm:$0xff] }
   0xd   :  { %6825 = vmatmul.msk.f32.gmra.mxu0 %vm94_vm0, %v29_v3  ;;  %6196 = vmatpush.bf16.msra.mxu3 %v7009_v38 }
  0x15   :  { %6826 = vmatmul.msk.f32.gmra.mxu0 %vm94_vm0, %v30_v4 }
  0x1d   :  { %6827 = vmatmul.msk.f32.gmra.mxu0 %vm94_vm0, %v31_v5 }
  0x25   :  { %6828 = vmatmul.msk.f32.gmra.mxu0 %vm94_vm0, %v32_v6 }
  0x2d   :  { %6829 = vmatmul.msk.f32.gmra.mxu0 %vm94_vm0, %v33_v7 }
  0x35   :  { %6830 = vmatmul.msk.f32.gmra.mxu0 %vm94_vm0, %v34_v8  ;;  %v48_v8 = vld [vmem:[%s11562_s0 + $0xa0] sm:$0xff] }
  0x3d   :  { %6831 = vmatmul.msk.f32.gmra.mxu0 %vm94_vm0, %v35_v9  ;;  %v1600_v9 = vand.u32 15, %v832_v62 }
  0x3f   :  { %vm2492_vm6 = vcmp.ge.s32.totalorder %v1600_v9, 1 }
  0x45   :  { %6832 = vmatmul.msk.f32.gmra.mxu0 %vm94_vm0, %v36_v10 }
  0x4d   :  { %6833 = vmatmul.msk.f32.gmra.mxu0 %vm94_vm0, %v37_v11 }
  0x55   :  { %6834 = vmatmul.msk.f32.gmra.mxu0 %vm94_vm0, %v38_v12  ;;  %v770_v12 = vadd.s32 48, %v8200_v21 }
  0x57   :  { %v874_v26 = vand.u32 255, %v770_v12 }
  0x5d   :  { %6835 = vmatmul.msk.f32.gmra.mxu0 %vm94_vm0, %v39_v13 }
  0x65   :  { %6836 = vmatmul.msk.f32.gmra.mxu0 %vm94_vm0, %v40_v14 }
  0x6d   :  { %6837 = vmatmul.msk.f32.gmra.mxu0 %vm94_vm0, %v41_v15 }
  0x75   :  { %6838 = vmatmul.msk.f32.gmra.mxu0 %vm94_vm0, %v42_v17  ;;  %v769_v17 = vadd.s32 40, %v8200_v21 }
  0x77   :  { %v867_v35 = vand.u32 255, %v769_v17 }
  0x7d   :  { %6839 = vmatmul.msk.f32.gmra.mxu0 %vm94_vm0, %v43_v18 }
  0x82   :  { %v304_v24 = vpop.f32.mrf.mxu0 }
  0x83   :  { %v497_v27 = vmul.f32 %v8202_v22, %v304_v24 }
  0x85   :  { %v562_v28 = vadd.f32 %v8204_v23, %v497_v27  ;;  %6840 = vmatmul.msk.f32.gmra.mxu0 %vm94_vm0, %v44_v25 }
  0x87   :  { %v626_v30 = vmax.f32 %v562_v28, 0.0 }
  0x89   :  { %699 = vst.msk [vmem:[#allocation2 + $0x20] sm:$0xff] %vm690_vm1, %v626_v30 }
  0x8a   :  { %v307_v31 = vpop.f32.mrf.mxu0 }
  0x8b   :  { %v498_v34 = vmul.f32 %v8202_v22, %v307_v31 }
  0x8d   :  { %v563_v36 = vadd.f32 %v8204_v23, %v498_v34  ;;  %6841 = vmatmul.msk.f32.gmra.mxu0 %vm94_vm0, %v45_v32  ;;  %v49_v32 = vld [vmem:[%s11562_s0 + $0xa8] sm:$0xff] }
  0x8f   :  { %v627_v37 = vmax.f32 %v563_v36, 0.0  ;;  %v8307_v36 = vand.u32 15, %v874_v26 }
  0x90   :  { %v8231_v39 = vld [vmem:[#allocation2 + $0x1f] sm:$0xff] }
  0x91   :  { %700 = vst.msk [vmem:[#allocation2 + $0x28] sm:$0xff] %vm690_vm1, %v627_v37  ;;  %v8237_v40 = vsel %vm2494_vm2, %v8231_v39, 0.0  ;;  %v8248_v52 = vld [vmem:[#allocation2 + $0x20] sm:$0xff]  ;;  %v3070_v28 = vsel %vm2492_vm6, %v8231_v39, 0.0  ;;  %v8311_v39 = vand.u32 15, %v867_v35  ;;  %vm2498_vm7 = vcmp.ge.s32.totalorder %v8307_v36, 1 }
  0x92   :  { %v310_v41 = vpop.f32.mrf.mxu0 }
  0x93   :  { %v499_v45 = vmul.f32 %v8202_v22, %v310_v41  ;;  %vm2881_vm8 = vcmp.lt.s32.totalorder %v8311_v39, 15 }
  0x95   :  { %v564_v47 = vadd.f32 %v8204_v23, %v499_v45  ;;  %6842 = vmatmul.msk.f32.gmra.mxu0 %vm94_vm0, %v46_v42 }
  0x97   :  { %v628_v50 = vmax.f32 %v564_v47, 0.0 }
  0x98   :  { %v8250_v53 = vld [vmem:[#allocation2 + $0x28] sm:$0xff] }
  0x99   :  { %701 = vst.msk [vmem:[#allocation2 + $0x30] sm:$0xff] %vm690_vm1, %v628_v50  ;;  %v7037_v54 = vpack.i.bf16 %v8250_v53, %v8248_v52  ;;  %v2814_v2 = vld [vmem:[#allocation2 + $0x21] sm:$0xff]  ;;  %v771_v50 = vadd.s32 56, %v8200_v21 }
  0x9a   :  { %v313_v55 = vpop.f32.mrf.mxu0  ;;  %v8293_v15 = vld [vmem:[#allocation2 + $0x27] sm:$0xff] }
  0x9b   :  { %v500_v59 = vmul.f32 %v8202_v22, %v313_v55  ;;  %7038 = vrot.lane.b32.xlu0 %v7037_v54, %s8071_s9  ;;  %v7062_v31 = vpack.i.bf16 %v8293_v15, %v3070_v28  ;;  %v772_v55 = vadd.s32 64, %v8200_v21  ;;  %v773_v28 = vadd.s32 72, %v8200_v21 }
  0x9d   :  { %v565_v61 = vadd.f32 %v8204_v23, %v500_v59  ;;  %6843 = vmatmul.msk.f32.gmra.mxu0 %vm94_vm0, %v47_v56  ;;  %v895_v35 = vand.u32 255, %v773_v28 }
  0x9f   :  { %v629_v63 = vmax.f32 %v565_v61, 0.0  ;;  %v881_v61 = vand.u32 255, %v771_v50 }
  0xa0   :  { %v2815_v0 = vld [vmem:[#allocation2 + $0x29] sm:$0xff] }
  0xa1   :  { %v8272_v1 = vld [vmem:[#allocation2 + $0x2f] sm:$0xff]  ;;  %702 = vst.msk [vmem:[#allocation2 + $0x38] sm:$0xff] %vm690_vm1, %v629_v63  ;;  %v3139_v3 = vsel %vm2877_vm3, %v2815_v0, 0.0  ;;  %v3007_v4 = vsel %vm2879_vm4, %v2815_v0, 0.0  ;;  %v888_v0 = vand.u32 255, %v772_v55 }
  0xa2   :  { %v316_v5 = vpop.f32.mrf.mxu0  ;;  %v7047_v6 = vpack.i.bf16 %v3139_v3, %v2814_v2  ;;  %v7042_v7 = vpack.i.bf16 %v3007_v4, %v2814_v2  ;;  %v8285_v10 = vsel %vm2496_vm5, %v8272_v1, 0.0  ;;  %v2688_v18 = vld [vmem:[#allocation2 + $0x30] sm:$0xff]  ;;  %v3332_v25 = vsel %vm2492_vm6, %v8272_v1, 0.0 }
  0xa3   :  { %v501_v11 = vmul.f32 %v8202_v22, %v316_v5  ;;  %v3072_v4 = vsel %vm2494_vm2, %v8272_v1, 0.0  ;;  %vm5257_vm6 = vcmask 785408  }
  0xa4   :  { %7048 = vrot.lane.b32.xlu2 %v7047_v6, %s8071_s9  ;;  %7043 = vrot.lane.b32.xlu0 %v7042_v7, %s8072_s11  ;;  %v51_v7 = vld [vmem:[%s11562_s0 + $0xb8] sm:$0xff] }
  0xa5   :  { %v566_v13 = vadd.f32 %v8204_v23, %v501_v11  ;;  %6844 = vmatmul.msk.f32.gmra.mxu0 %vm94_vm0, %v48_v8  ;;  %v8347_v8 = vand.u32 15, %v881_v61  ;;  %v8353_v11 = vand.u32 15, %v888_v0 }
  0xa7   :  { %v630_v14 = vmax.f32 %v566_v13, 0.0  ;;  %vm2883_vm9 = vcmp.lt.s32.totalorder %v8347_v8, 15  ;;  %vm2500_vm10 = vcmp.ge.s32.totalorder %v8353_v11, 1  ;;  %v56_v8 = vld [vmem:[%s11562_s0 + $0xe0] sm:$0xff]  ;;  %v7007_v11 = vld [vmem:[%s11564_s3 + $0x70] sm:$0xff] }
  0xa8   :  { %v2689_v20 = vld [vmem:[#allocation2 + $0x38] sm:$0xff] }
  0xa9   :  { %v2369_v24 = vld [vmem:[#allocation2 + $0x37] sm:$0xff]  ;;  %703 = vst.msk [vmem:[#allocation2 + $0x40] sm:$0xff] %vm690_vm1, %v630_v14  ;;  %v7052_v27 = vpack.i.bf16 %v2689_v20, %v2688_v18 }
  0xaa   :  { %v7057_v29 = vpack.i.bf16 %v2369_v24, %v3332_v25  ;;  %v319_v30 = vpop.f32.mrf.mxu0  ;;  %v2816_v43 = vld [vmem:[#allocation2 + $0x31] sm:$0xff]  ;;  %v7092_v6 = vpack.i.bf16 %v2369_v24, %v3072_v4 }
  0xab   :  { %v502_v34 = vmul.f32 %v8202_v22, %v319_v30  ;;  %7053 = vrot.lane.b32.xlu1 %v7052_v27, %s8071_s9  ;;  %v774_v30 = vadd.s32 80, %v8200_v21  ;;  %v6999_v4 = vld [vmem:[%s11564_s3 + $0x30] sm:$0xff] }
  0xac   :  { %7063 = vrot.lane.b32.xlu2 %v7062_v31, %s8073_s8  ;;  %7058 = vrot.lane.b32.xlu0 %v7057_v29, %s8072_s11 }
  0xad   :  { %v567_v37 = vadd.f32 %v8204_v23, %v502_v34  ;;  %6845 = vmatmul.msk.f32.gmra.mxu0 %vm94_vm0, %v49_v32  ;;  %5852 = vmatpush.bf16.msra.mxu1 %v6999_v4 }
  0xaf   :  { %v631_v38 = vmax.f32 %v567_v37, 0.0 }
  0xb0   :  { %v2817_v41 = vld [vmem:[#allocation2 + $0x39] sm:$0xff] }
  0xb1   :  { %v8313_v42 = vld [vmem:[#allocation2 + $0x3f] sm:$0xff]  ;;  %704 = vst.msk [vmem:[#allocation2 + $0x48] sm:$0xff] %vm690_vm1, %v631_v38  ;;  %v3529_v44 = vsel %vm2877_vm3, %v2817_v41, 0.0  ;;  %v3141_v45 = vsel %vm2879_vm4, %v2817_v41, 0.0  ;;  %v3009_v57 = vsel %vm2881_vm8, %v2817_v41, 0.0 }
  0xb2   :  { %v322_v46 = vpop.f32.mrf.mxu0  ;;  %v5516_v47 = vpack.c.bf16 %v3529_v44, %v2816_v43  ;;  %v7077_v48 = vpack.i.bf16 %v3141_v45, %v2816_v43  ;;  %v8331_v54 = vsel %vm2498_vm7, %v8313_v42, 0.0  ;;  %v2690_v59 = vld [vmem:[#allocation2 + $0x40] sm:$0xff]  ;;  %v7072_v2 = vpack.i.bf16 %v3009_v57, %v2816_v43 }
  0xb3   :  { %v503_v51 = vmul.f32 %v8202_v22, %v322_v46  ;;  %7068 = vrot.lane.b32.xlu1 %v7052_v27, %s8073_s8  ;;  %v52_v27 = vld [vmem:[%s11562_s0 + $0xc0] sm:$0xff]  ;;  %v3334_v38 = vsel %vm2494_vm2, %v8313_v42, 0.0  ;;  %v902_v43 = vand.u32 255, %v774_v30 }
  0xb4   :  { %6960 = vmatmul.msk.bf16.vlgmr.msra.gmra.mxu3 %vm690_vm1, %v5516_v47  ;;  %7078 = vrot.lane.b32.xlu0 %v7077_v48, %s8071_s9  ;;  %v53_v47 = vld [vmem:[%s11562_s0 + $0xc8] sm:$0xff]  ;;  %v8392_v48 = vand.u32 15, %v895_v35 }
  0xb5   :  { %v568_v56 = vadd.f32 %v8204_v23, %v503_v51  ;;  %6846 = vmatmul.msk.f32.gmra.mxu0 %vm94_vm0, %v50_v49  ;;  %v8401_v50 = vand.u32 15, %v902_v43 }
  0xb6   :  { %vm2885_vm11 = vcmp.lt.s32.totalorder %v8392_v48, 15 }
  0xb7   :  { %v632_v62 = vmax.f32 %v568_v56, 0.0  ;;  %vm2502_vm12 = vcmp.ge.s32.totalorder %v8401_v50, 1  ;;  %v7003_v50 = vld [vmem:[%s11564_s3 + $0x50] sm:$0xff] }
  0xb8   :  { %v2691_v63 = vld [vmem:[#allocation2 + $0x48] sm:$0xff] }
  0xb9   :  { %705 = vst.msk [vmem:[#allocation2 + $0x50] sm:$0xff] %vm690_vm1, %v632_v62  ;;  %v7097_v3 = vpack.i.bf16 %v2691_v63, %v2690_v59  ;;  %v2818_v17 = vld [vmem:[#allocation2 + $0x41] sm:$0xff] }
  0xba   :  { %v325_v5 = vpop.f32.mrf.mxu0  ;;  %v8382_v32 = vld [vmem:[#allocation2 + $0x47] sm:$0xff] }
  0xbb   :  { %v504_v9 = vmul.f32 %v8202_v22, %v325_v5  ;;  %7073 = vrot.lane.b32.xlu1 %v7072_v2, %s8072_s11  ;;  %7098 = vrot.lane.b32.xlu2 %v7097_v3, %s8073_s8  ;;  %v7087_v44 = vpack.i.bf16 %v8382_v32, %v3334_v38 }
  0xbc   :  { %7093 = vrot.lane.b32.xlu0 %v7092_v6, %s8073_s8 }
  0xbd   :  { %v569_v1 = vadd.f32 %v8204_v23, %v504_v9  ;;  %6847 = vmatmul.msk.f32.gmra.mxu0 %vm94_vm0, %v51_v7 }
  0xbf   :  { %v633_v12 = vmax.f32 %v569_v1, 0.0  ;;  %v54_v1 = vld [vmem:[%s11562_s0 + $0xd0] sm:$0xff] }
  0xc0   :  { %v2819_v13 = vld [vmem:[#allocation2 + $0x49] sm:$0xff] }
  0xc1   :  { %v8358_v14 = vld [vmem:[#allocation2 + $0x4f] sm:$0xff]  ;;  %706 = vst.msk [vmem:[#allocation2 + $0x58] sm:$0xff] %vm690_vm1, %v633_v12  ;;  %v3531_v18 = vsel %vm2879_vm4, %v2819_v13, 0.0  ;;  %v3011_v20 = vsel %vm2883_vm9, %v2819_v13, 0.0  ;;  %v3143_v55 = vsel %vm2881_vm8, %v2819_v13, 0.0 }
  0xc2   :  { %v328_v24 = vpop.f32.mrf.mxu0  ;;  %v5519_v25 = vpack.c.bf16 %v3531_v18, %v2818_v17  ;;  %v7102_v26 = vpack.i.bf16 %v3011_v20, %v2818_v17  ;;  %v8375_v58 = vsel %vm2500_vm10, %v8358_v14, 0.0  ;;  %v2692_v34 = vld [vmem:[#allocation2 + $0x50] sm:$0xff]  ;;  %v7107_v62 = vpack.i.bf16 %v3143_v55, %v2818_v17  ;;  %v6998_v13 = vld [vmem:[%s11564_s3 + $0x28] sm:$0xff] }
  0xc3   :  { %v505_v29 = vmul.f32 %v8202_v22, %v328_v24  ;;  %7083 = vrot.lane.b32.xlu1 %v7097_v3, %s8071_s9  ;;  %v3336_v63 = vsel %vm2496_vm5, %v8358_v14, 0.0  ;;  %v776_v18 = vadd.s32 96, %v8200_v21  ;;  %5853 = vmatpush.bf16.msra.mxu1 %v6998_v13 }
  0xc4   :  { %6961 = vmatmul.msk.bf16.gmra.mxu3 %vm690_vm1, %v5519_v25  ;;  %7103 = vrot.lane.b32.xlu2 %v7102_v26, %s8072_s11  ;;  %v775_v25 = vadd.s32 88, %v8200_v21  ;;  %v3074_v26 = vsel %vm2496_vm5, %v8313_v42, 0.0  ;;  %vm5192_vm5 = vcmask 523264  }
  0xc5   :  { %v570_v31 = vadd.f32 %v8204_v23, %v505_v29  ;;  %6848 = vmatmul.msk.f32.gmra.mxu0 %vm94_vm0, %v52_v27  ;;  %v7112_v29 = vpack.i.bf16 %v8382_v32, %v3074_v26  ;;  %v6996_v32 = vld [vmem:[%s11564_s3 + $0x18] sm:$0xff] }
  0xc6   :  { %v909_v38 = vand.u32 255, %v775_v25 }
  0xc7   :  { %v634_v37 = vmax.f32 %v570_v31, 0.0  ;;  %v6997_v31 = vld [vmem:[%s11564_s3 + $0x20] sm:$0xff] }
  0xc8   :  { %v2693_v41 = vld [vmem:[#allocation2 + $0x58] sm:$0xff]  ;;  %5854 = vmatpush.bf16.msra.mxu1 %v6997_v31 }
  0xc9   :  { %707 = vst.msk [vmem:[#allocation2 + $0x60] sm:$0xff] %vm690_vm1, %v634_v37  ;;  %v7127_v45 = vpack.i.bf16 %v2693_v41, %v2692_v34  ;;  %v8408_v57 = vld [vmem:[#allocation2 + $0x57] sm:$0xff]  ;;  %v916_v34 = vand.u32 255, %v776_v18 }
  0xca   :  { %v331_v46 = vpop.f32.mrf.mxu0  ;;  %v2820_v0 = vld [vmem:[#allocation2 + $0x51] sm:$0xff]  ;;  %v7122_v6 = vpack.i.bf16 %v8408_v57, %v3336_v63 }
  0xcb   :  { %v506_v49 = vmul.f32 %v8202_v22, %v331_v46  ;;  %7088 = vrot.lane.b32.xlu1 %v7087_v44, %s8072_s11  ;;  %7128 = vrot.lane.b32.xlu0 %v7127_v45, %s8073_s8  ;;  %v8470_v43 = vand.u32 15, %v916_v34 }
  0xcc   :  { %7118 = vrot.lane.b32.xlu2 %v7127_v45, %s8071_s9  ;;  %5855 = vmatpush.bf16.msra.mxu1 %v6996_v32 }
  0xcd   :  { %v571_v51 = vadd.f32 %v8204_v23, %v506_v49  ;;  %6849 = vmatmul.msk.f32.gmra.mxu0 %vm94_vm0, %v53_v47  ;;  %v8472_v47 = vand.u32 15, %v909_v38  ;;  %v3076_v49 = vsel %vm2498_vm7, %v8358_v14, 0.0  ;;  %vm2504_vm13 = vcmp.ge.s32.totalorder %v8470_v43, 1  ;;  %v8697_v43 = vpop.permute.xlu1 %7023 }
  0xce   :  { %v7142_v36 = vpack.i.bf16 %v8408_v57, %v3076_v49  ;;  %v778_v57 = vadd.s32 112, %v8200_v21 }
  0xcf   :  { %v635_v56 = vmax.f32 %v571_v51, 0.0  ;;  %vm2887_vm14 = vcmp.lt.s32.totalorder %v8472_v47, 15  ;;  %v60_v47 = vld [vmem:[%s11562_s0 + $0x100] sm:$0xff] }
  0xd0   :  { %v2821_v59 = vld [vmem:[#allocation2 + $0x59] sm:$0xff] }
  0xd1   :  { %v8410_v61 = vld [vmem:[#allocation2 + $0x5f] sm:$0xff]  ;;  %708 = vst.msk [vmem:[#allocation2 + $0x68] sm:$0xff] %vm690_vm1, %v635_v56  ;;  %v3533_v2 = vsel %vm2881_vm8, %v2821_v59, 0.0  ;;  %v3013_v3 = vsel %vm2885_vm11, %v2821_v59, 0.0  ;;  %v3145_v24 = vsel %vm2883_vm9, %v2821_v59, 0.0 }
  0xd2   :  { %v334_v5 = vpop.f32.mrf.mxu0  ;;  %v5522_v7 = vpack.c.bf16 %v3533_v2, %v2820_v0  ;;  %v7132_v9 = vpack.i.bf16 %v3013_v3, %v2820_v0  ;;  %v8433_v39 = vsel %vm2502_vm12, %v8410_v61, 0.0  ;;  %v3338_v28 = vsel %vm2498_vm7, %v8410_v61, 0.0  ;;  %v2694_v44 = vld [vmem:[#allocation2 + $0x60] sm:$0xff] }
  0xd3   :  { %v507_v12 = vmul.f32 %v8202_v22, %v334_v5  ;;  %7108 = vrot.lane.b32.xlu1 %v7107_v62, %s8071_s9  ;;  %v7137_v37 = vpack.i.bf16 %v3145_v24, %v2820_v0  ;;  %v6995_v62 = vld [vmem:[%s11564_s3 + $0x10] sm:$0xff]  ;;  %v3078_v14 = vsel %vm2500_vm10, %v8410_v61, 0.0  ;;  %v6994_v5 = vld [vmem:[%s11564_s3 + $0x8] sm:$0xff] }
  0xd4   :  { %7123 = vrot.lane.b32.xlu2 %v7122_v6, %s8072_s11  ;;  %6962 = vmatmul.msk.bf16.gmra.mxu3 %vm690_vm1, %v5522_v7 }
  0xd5   :  { %v572_v17 = vadd.f32 %v8204_v23, %v507_v12  ;;  %7133 = vrot.lane.b32.xlu0 %v7132_v9, %s8072_s11  ;;  %6850 = vmatmul.msk.f32.gmra.mxu0 %vm94_vm0, %v54_v1  ;;  %v777_v1 = vadd.s32 104, %v8200_v21  ;;  %v930_v12 = vand.u32 255, %v778_v57 }
  0xd6   :  { %5856 = vmatpush.bf16.msra.mxu1 %v6995_v62  ;;  %v7006_v62 = vld [vmem:[%s11564_s3 + $0x68] sm:$0xff] }
  0xd7   :  { %v636_v20 = vmax.f32 %v572_v17, 0.0  ;;  %v6993_v17 = vld [vmem:[%s11564_s3] sm:$0xff]  ;;  %v923_v26 = vand.u32 255, %v777_v1 }
  0xd8   :  { %v2375_v27 = vld [vmem:[#allocation2 + $0x67] sm:$0xff] }
  0xd9   :  { %709 = vst.msk [vmem:[#allocation2 + $0x70] sm:$0xff] %vm690_vm1, %v636_v20  ;;  %v7152_v30 = vpack.i.bf16 %v2375_v27, %v3338_v28  ;;  %v2695_v45 = vld [vmem:[#allocation2 + $0x68] sm:$0xff]  ;;  %v7162_v3 = vpack.i.bf16 %v2375_v27, %v3078_v14  ;;  %v7008_v27 = vld [vmem:[%s11564_s3 + $0x78] sm:$0xff]  ;;  %v8528_v28 = vand.u32 15, %v930_v12 }
  0xda   :  { %v337_v35 = vpop.f32.mrf.mxu0  ;;  %v7157_v51 = vpack.i.bf16 %v2695_v45, %v2694_v44  ;;  %v2822_v55 = vld [vmem:[#allocation2 + $0x61] sm:$0xff]  ;;  %5857 = vmatpush.bf16.msra.mxu1 %v6994_v5  ;;  %6020 = vmatpush.bf16.msra.mxu2 %v7008_v27 }
  0xdb   :  { %v508_v42 = vmul.f32 %v8202_v22, %v337_v35  ;;  %7113 = vrot.lane.b32.xlu1 %v7112_v29, %s8073_s8  ;;  %v57_v20 = vld [vmem:[%s11562_s0 + $0xe8] sm:$0xff]  ;;  %vm2506_vm15 = vcmp.ge.s32.totalorder %v8528_v28, 1 }
  0xdc   :  { %7138 = vrot.lane.b32.xlu2 %v7137_v37, %s8071_s9 }
  0xdd   :  { %v573_v41 = vadd.f32 %v8204_v23, %v508_v42  ;;  %7153 = vrot.lane.b32.xlu0 %v7152_v30, %s8072_s11  ;;  %6851 = vmatmul.msk.f32.gmra.mxu0 %vm94_vm0, %v55_v60  ;;  %v8538_v42 = vand.u32 15, %v923_v26 }
  0xde   :  { %5858 = vmatpush.bf16.msra.mxu1 %v6993_v17  ;;  %6021 = vmatpush.bf16.msra.mxu2 %v7007_v11 }
  0xdf   :  { %v637_v46 = vmax.f32 %v573_v41, 0.0  ;;  %vm2889_vm2 = vcmp.lt.s32.totalorder %v8538_v42, 15 }
  0xe0   :  { %v2823_v33 = vld [vmem:[#allocation2 + $0x69] sm:$0xff] }
  0xe1   :  { %710 = vst.msk [vmem:[#allocation2 + $0x78] sm:$0xff] %vm690_vm1, %v637_v46  ;;  %v3535_v56 = vsel %vm2883_vm9, %v2823_v33, 0.0  ;;  %v8480_v59 = vld [vmem:[#allocation2 + $0x6f] sm:$0xff]  ;;  %v3015_v6 = vsel %vm2887_vm14, %v2823_v33, 0.0  ;;  %v3147_v9 = vsel %vm2885_vm11, %v2823_v33, 0.0 }
  0xe2   :  { %v340_v63 = vpop.f32.mrf.mxu0  ;;  %v5525_v0 = vpack.c.bf16 %v3535_v56, %v2822_v55  ;;  %v8502_v61 = vsel %vm2504_vm13, %v8480_v59, 0.0  ;;  %v7167_v13 = vpack.i.bf16 %v3015_v6, %v2822_v55  ;;  %v7172_v25 = vpack.i.bf16 %v3147_v9, %v2822_v55  ;;  %v2696_v34 = vld [vmem:[#allocation2 + $0x70] sm:$0xff]  ;;  %v8563_v56 = vpop.permute.xlu2 %7028  ;;  %6022 = vmatpush.bf16.msra.mxu2 %v7006_v62  ;;  %v7005_v9 = vld [vmem:[%s11564_s3 + $0x60] sm:$0xff] }
  0xe3   :  { %v509_v2 = vmul.f32 %v8202_v22, %v340_v63  ;;  %7158 = vrot.lane.b32.xlu1 %v7157_v51, %s8073_s8  ;;  %v3340_v37 = vsel %vm2500_vm10, %v8480_v59, 0.0  ;;  %v58_v33 = vld [vmem:[%s11562_s0 + $0xf0] sm:$0xff]  ;;  %v780_v63 = vadd.s32 128, %v8200_v21 }
  0xe4   :  { %7143 = vrot.lane.b32.xlu2 %v7142_v36, %s8073_s8  ;;  %6963 = vmatmul.msk.bf16.gmra.mxu3 %vm690_vm1, %v5525_v0 }
  0xe5   :  { %v574_v4 = vadd.f32 %v8204_v23, %v509_v2  ;;  %7163 = vrot.lane.b32.xlu0 %v7162_v3, %s8073_s8  ;;  %6852 = vmatmul.msk.f32.gmra.mxu0 %vm94_vm0, %v56_v8 }
  0xe6   :  { %6023 = vmatpush.bf16.msra.mxu2 %v7005_v9 }
  0xe7   :  { %v638_v7 = vmax.f32 %v574_v4, 0.0  ;;  %v944_v4 = vand.u32 255, %v780_v63 }
  0xe8   :  { %v8533_v30 = vld [vmem:[#allocation2 + $0x77] sm:$0xff] }
  0xe9   :  { %711 = vst.msk [vmem:[#allocation2 + $0x80] sm:$0xff] %vm690_vm1, %v638_v7  ;;  %v2697_v35 = vld [vmem:[#allocation2 + $0x78] sm:$0xff]  ;;  %v7182_v32 = vpack.i.bf16 %v8533_v30, %v3340_v37  ;;  %v7019_v7 = vpop.permute.xlu0 %7018 }
  0xea   :  { %v343_v18 = vpop.f32.mrf.mxu0  ;;  %v2824_v41 = vld [vmem:[#allocation2 + $0x71] sm:$0xff]  ;;  %v7187_v46 = vpack.i.bf16 %v2697_v35, %v2696_v34  ;;  %v3080_v35 = vsel %vm2502_vm12, %v8480_v59, 0.0 }
  0xeb   :  { %v510_v24 = vmul.f32 %v8202_v22, %v343_v18  ;;  %7168 = vrot.lane.b32.xlu1 %v7167_v13, %s8072_s11  ;;  %v59_v13 = vld [vmem:[%s11562_s0 + $0xf8] sm:$0xff] }
  0xec   :  { %7148 = vrot.lane.b32.xlu2 %v7157_v51, %s8071_s9  ;;  %v779_v51 = vadd.s32 120, %v8200_v21 }
  0xed   :  { %v575_v29 = vadd.f32 %v8204_v23, %v510_v24  ;;  %7173 = vrot.lane.b32.xlu0 %v7172_v25, %s8071_s9  ;;  %6853 = vmatmul.msk.f32.gmra.mxu0 %vm94_vm0, %v57_v20  ;;  %v7004_v20 = vld [vmem:[%s11564_s3 + $0x58] sm:$0xff]  ;;  %v8594_v24 = vand.u32 15, %v944_v4  ;;  %v781_v4 = vadd.s32 136, %v8200_v21 }
  0xee   :  { %v937_v8 = vand.u32 255, %v779_v51  ;;  %6024 = vmatpush.bf16.msra.mxu2 %v7004_v20 }
  0xef   :  { %v639_v31 = vmax.f32 %v575_v29, 0.0  ;;  %v7021_v29 = vunpack.i.h.bf16 %v7019_v7  ;;  %vm2508_vm4 = vcmp.ge.s32.totalorder %v8594_v24, 1 }
  0xf0   :  { %v2825_v60 = vld [vmem:[#allocation2 + $0x79] sm:$0xff]  ;;  %v8586_v17 = vand.u32 15, %v937_v8 }
  0xf1   :  { %v8540_v38 = vld [vmem:[#allocation2 + $0x7f] sm:$0xff]  ;;  %712 = vst.msk [vmem:[#allocation2 + $0x88] sm:$0xff] %vm690_vm1, %v639_v31  ;;  %v3537_v44 = vsel %vm2885_vm11, %v2825_v60, 0.0  ;;  %v3149_v14 = vsel %vm2887_vm14, %v2825_v60, 0.0  ;;  %v3017_v3 = vsel %vm2889_vm2, %v2825_v60, 0.0  ;;  %v7020_v31 = vunpack.i.l.bf16 %v7019_v7 }
  0xf2   :  { %v346_v45 = vpop.f32.mrf.mxu0  ;;  %v5528_v49 = vpack.c.bf16 %v3537_v44, %v2824_v41  ;;  %v8559_v48 = vsel %vm2506_vm15, %v8540_v38, 0.0  ;;  %v2698_v0 = vld [vmem:[#allocation2 + $0x80] sm:$0xff]  ;;  %v7197_v5 = vpack.i.bf16 %v3149_v14, %v2824_v41  ;;  %v7192_v12 = vpack.i.bf16 %v3017_v3, %v2824_v41  ;;  %6025 = vmatpush.bf16.msra.mxu2 %v7003_v50 }
  0xf3   :  { %v511_v55 = vmul.f32 %v8202_v22, %v346_v45  ;;  %7183 = vrot.lane.b32.xlu1 %v7182_v32, %s8072_s11  ;;  %vm2891_vm3 = vcmp.lt.s32.totalorder %v8586_v17, 15  ;;  %v3342_v37 = vsel %vm2502_vm12, %v8540_v38, 0.0  ;;  %v7031_v32 = vunpack.i.h.bf16 %v8563_v56 }
  0xf4   :  { %7188 = vrot.lane.b32.xlu2 %v7187_v46, %s8073_s8  ;;  %6964 = vmatmul.msk.bf16.gmra.mxu3 %vm690_vm1, %v5528_v49  ;;  %v7202_v41 = vpack.i.bf16 %v8533_v30, %v3080_v35  ;;  %v5129_v62 = vsel %vm690_vm1, 0.0, %v7021_v29  ;;  %v782_v14 = vadd.s32 144, %v8200_v21  ;;  %v7001_v29 = vld [vmem:[%s11564_s3 + $0x40] sm:$0xff] }
  0xf5   :  { %v576_v36 = vadd.f32 %v8204_v23, %v511_v55  ;;  %7178 = vrot.lane.b32.xlu0 %v7187_v46, %s8071_s9  ;;  %6854 = vmatmul.msk.f32.gmra.mxu0 %vm94_vm0, %v58_v33  ;;  %v7030_v46 = vunpack.i.l.bf16 %v8563_v56  ;;  %v5128_v55 = vsel %vm690_vm1, 0.0, %v7020_v31  ;;  %v7002_v56 = vld [vmem:[%s11564_s3 + $0x48] sm:$0xff] }
  0xf6   :  { %6026 = vmatpush.bf16.msra.mxu2 %v7002_v56 }
  0xf7   :  { %v640_v2 = vmax.f32 %v576_v36, 0.0  ;;  %v8633_v36 = vpop.permute.xlu0 %7033  ;;  %v5193_v3 = vsel %vm5192_vm5, %v5128_v55, %v7030_v46 }
  0xf8   :  { %v2699_v57 = vld [vmem:[#allocation2 + $0x88] sm:$0xff] }
  0xf9   :  { %713 = vst.msk [vmem:[#allocation2 + $0x90] sm:$0xff] %vm690_vm1, %v640_v2  ;;  %v8578_v6 = vpack.i.bf16 %v2699_v57, %v2698_v0  ;;  %v8603_v34 = vld [vmem:[#allocation2 + $0x87] sm:$0xff]  ;;  %v5194_v57 = vsel %vm5192_vm5, %v5129_v62, %v7031_v32 }
  0xfa   :  { %v349_v1 = vpop.f32.mrf.mxu0  ;;  %v2826_v44 = vld [vmem:[#allocation2 + $0x81] sm:$0xff]  ;;  %v7212_v33 = vpack.i.bf16 %v8603_v34, %v3342_v37  ;;  %6027 = vmatpush.bf16.msra.mxu2 %v7001_v29 }
  0xfb   :  { %v512_v18 = vmul.f32 %v8202_v22, %v349_v1  ;;  %7198 = vrot.lane.b32.xlu1 %v7197_v5, %s8071_s9 }
  0xfc   :  { %7193 = vrot.lane.b32.xlu2 %v7192_v12, %s8072_s11 }
  0xfd   :  { %v577_v25 = vadd.f32 %v8204_v23, %v512_v18  ;;  %7218 = vrot.lane.b32.xlu0 %v8578_v6, %s8073_s8  ;;  %6855 = vmatmul.msk.f32.gmra.mxu0 %vm94_vm0, %v59_v13  ;;  %v958_v18 = vand.u32 255, %v782_v14 }
  0xfe   :  { %v8600_v26 = vpop.permute.xlu2 %7048 }
  0xff   :  { %v641_v27 = vmax.f32 %v577_v25, 0.0 }
 0x100   :  { %v2827_v60 = vld [vmem:[#allocation2 + $0x89] sm:$0xff] }
 0x101   :  { %714 = vst.msk [vmem:[#allocation2 + $0x98] sm:$0xff] %vm690_vm1, %v641_v27  ;;  %v3539_v11 = vsel %vm2887_vm14, %v2827_v60, 0.0  ;;  %v3019_v59 = vsel %vm2891_vm3, %v2827_v60, 0.0  ;;  %v8619_v45 = vld [vmem:[#allocation2 + $0x8f] sm:$0xff]  ;;  %v3151_v1 = vsel %vm2889_vm2, %v2827_v60, 0.0 }
 0x102   :  { %v352_v49 = vpop.f32.mrf.mxu0  ;;  %v5531_v51 = vpack.c.bf16 %v3539_v11, %v2826_v44  ;;  %v7222_v30 = vpack.i.bf16 %v3019_v59, %v2826_v44  ;;  %v8644_v0 = vsel %vm2508_vm4, %v8619_v45, 0.0  ;;  %v3344_v13 = vsel %vm2504_vm13, %v8619_v45, 0.0  ;;  %v61_v60 = vld [vmem:[%s11562_s0 + $0x108] sm:$0xff]  ;;  %v2700_v50 = vld [vmem:[#allocation2 + $0x90] sm:$0xff] }
 0x103   :  { %v513_v63 = vmul.f32 %v8202_v22, %v352_v49  ;;  %7203 = vrot.lane.b32.xlu1 %v7202_v41, %s8073_s8  ;;  %v7227_v37 = vpack.i.bf16 %v3151_v1, %v2826_v44  ;;  %v951_v41 = vand.u32 255, %v781_v4  ;;  %v8670_v11 = vand.u32 15, %v958_v18 }
 0x104   :  { %7213 = vrot.lane.b32.xlu2 %v7212_v33, %s8072_s11  ;;  %6965 = vmatmul.msk.bf16.gmra.mxu3 %vm690_vm1, %v5531_v51  ;;  %v3084_v14 = vsel %vm2506_vm15, %v8619_v45, 0.0  ;;  %v783_v1 = vadd.s32 152, %v8200_v21 }
 0x105   :  { %v578_v8 = vadd.f32 %v8204_v23, %v513_v63  ;;  %7223 = vrot.lane.b32.xlu0 %v7222_v30, %s8072_s11  ;;  %6856 = vmatmul.msk.f32.gmra.mxu0 %vm94_vm0, %v60_v47  ;;  %v8677_v33 = vand.u32 15, %v951_v41  ;;  %vm2510_vm7 = vcmp.ge.s32.totalorder %v8670_v11, 1  ;;  %v3082_v47 = vsel %vm2504_vm13, %v8540_v38, 0.0 }
 0x106   :  { %v7064_v2 = vpop.permute.xlu2 %7063  ;;  %v7232_v56 = vpack.i.bf16 %v8603_v34, %v3082_v47  ;;  %v965_v29 = vand.u32 255, %v783_v1 }
 0x107   :  { %v642_v5 = vmax.f32 %v578_v8, 0.0  ;;  %v7066_v7 = vunpack.i.h.bf16 %v7064_v2  ;;  %v7065_v9 = vunpack.i.l.bf16 %v7064_v2  ;;  %v62_v2 = vld [vmem:[%s11562_s0 + $0x110] sm:$0xff]  ;;  %vm2893_vm8 = vcmp.lt.s32.totalorder %v8677_v33, 15 }
 0x108   :  { %v2381_v12 = vld [vmem:[#allocation2 + $0x97] sm:$0xff] }
 0x109   :  { %715 = vst.msk [vmem:[#allocation2 + $0xa0] sm:$0xff] %vm690_vm1, %v642_v5  ;;  %v5258_v20 = vsel %vm5257_vm6, %v5193_v3, %v7065_v9  ;;  %v5259_v25 = vsel %vm5257_vm6, %v5194_v57, %v7066_v7  ;;  %v7242_v27 = vpack.i.bf16 %v2381_v12, %v3344_v13  ;;  %v2701_v46 = vld [vmem:[#allocation2 + $0x98] sm:$0xff]  ;;  %v7252_v42 = vpack.i.bf16 %v2381_v12, %v3084_v14  ;;  %v66_v33 = vld [vmem:[%s11562_s0 + $0x130] sm:$0xff] }
 0x10a   :  { %v355_v31 = vpop.f32.mrf.mxu0  ;;  %v5514_v35 = vpack.c.bf16 %v5259_v25, %v5258_v20  ;;  %v7247_v30 = vpack.i.bf16 %v2701_v46, %v2700_v50  ;;  %v2828_v55 = vld [vmem:[#allocation2 + $0x91] sm:$0xff]  ;;  %v784_v57 = vadd.s32 160, %v8200_v21 }
 0x10b   :  { %v514_v32 = vmul.f32 %v8202_v22, %v355_v31  ;;  %7208 = vrot.lane.b32.xlu1 %v8578_v6, %s8071_s9  ;;  %v63_v20 = vld [vmem:[%s11562_s0 + $0x118] sm:$0xff] }
 0x10c   :  { %5859 = vmatmul.bf16.vlgmr.msra.gmra.mxu1 %v5514_v35  ;;  %7228 = vrot.lane.b32.xlu2 %v7227_v37, %s8071_s9  ;;  %v972_v13 = vand.u32 255, %v784_v57 }
 0x10d   :  { %v579_v59 = vadd.f32 %v8204_v23, %v514_v32  ;;  %7243 = vrot.lane.b32.xlu0 %v7242_v27, %s8072_s11  ;;  %v8674_v44 = vpop.permute.xlu0 %7038  ;;  %6857 = vmatmul.msk.f32.gmra.mxu0 %vm94_vm0, %v61_v60 }
 0x10e   :  { %v8732_v37 = vand.u32 15, %v972_v13 }
 0x10f   :  { %v643_v49 = vmax.f32 %v579_v59, 0.0 }
 0x110   :  { %v2829_v6 = vld [vmem:[#allocation2 + $0x99] sm:$0xff]  ;;  %vm2512_vm9 = vcmp.ge.s32.totalorder %v8732_v37, 1  ;;  %v791_v37 = vadd.s32 216, %v8200_v21 }
 0x111   :  { %v8679_v51 = vld [vmem:[#allocation2 + $0x9f] sm:$0xff]  ;;  %716 = vst.msk [vmem:[#allocation2 + $0xa8] sm:$0xff] %vm690_vm1, %v643_v49  ;;  %v3541_v62 = vsel %vm2889_vm2, %v2829_v6, 0.0  ;;  %v3021_v5 = vsel %vm2893_vm8, %v2829_v6, 0.0  ;;  %v3153_v9 = vsel %vm2891_vm3, %v2829_v6, 0.0  ;;  %v7051_v49 = vunpack.i.h.bf16 %v8600_v26 }
 0x112   :  { %v358_v63 = vpop.f32.mrf.mxu0  ;;  %v5534_v8 = vpack.c.bf16 %v3541_v62, %v2828_v55  ;;  %v8703_v38 = vsel %vm2510_vm7, %v8679_v51, 0.0  ;;  %v7257_v12 = vpack.i.bf16 %v3021_v5, %v2828_v55  ;;  %v7262_v27 = vpack.i.bf16 %v3153_v9, %v2828_v55  ;;  %v2702_v50 = vld [vmem:[#allocation2 + $0xa0] sm:$0xff] }
 0x113   :  { %v515_v3 = vmul.f32 %v8202_v22, %v358_v63  ;;  %7248 = vrot.lane.b32.xlu1 %v7247_v30, %s8073_s8  ;;  %v7050_v6 = vunpack.i.l.bf16 %v8600_v26  ;;  %v8743_v55 = vand.u32 15, %v965_v29 }
 0x114   :  { %7233 = vrot.lane.b32.xlu2 %v7232_v56, %s8073_s8  ;;  %6966 = vmatmul.msk.bf16.gmra.mxu3 %vm690_vm1, %v5534_v8  ;;  %v785_v8 = vadd.s32 168, %v8200_v21 }
 0x115   :  { %v580_v34 = vadd.f32 %v8204_v23, %v515_v3  ;;  %7253 = vrot.lane.b32.xlu0 %v7252_v42, %s8073_s8  ;;  %v8709_v45 = vpop.permute.xlu2 %7098  ;;  %6858 = vmatmul.msk.f32.gmra.mxu0 %vm94_vm0, %v62_v2  ;;  %v64_v3 = vld [vmem:[%s11562_s0 + $0x120] sm:$0xff]  ;;  %v786_v42 = vadd.s32 176, %v8200_v21  ;;  %vm2895_vm10 = vcmp.lt.s32.totalorder %v8743_v55, 15  ;;  %v5322_v1 = vsel %vm690_vm1, %v8248_v52, %v7050_v6 }
 0x116   :  { %v8713_v4 = vpop.permute.xlu0 %7043  ;;  %v979_v13 = vand.u32 255, %v785_v8  ;;  %v7041_v8 = vunpack.i.h.bf16 %v8674_v44  ;;  %v68_v55 = vld [vmem:[%s11562_s0 + $0x140] sm:$0xff] }
 0x117   :  { %v644_v7 = vmax.f32 %v580_v34, 0.0 }
 0x118   :  { %v8736_v41 = vld [vmem:[#allocation2 + $0xa7] sm:$0xff] }
 0x119   :  { %717 = vst.msk [vmem:[#allocation2 + $0xb0] sm:$0xff] %vm690_vm1, %v644_v7  ;;  %v2703_v46 = vld [vmem:[#allocation2 + $0xa8] sm:$0xff] }
 0x11a   :  { %v361_v18 = vpop.f32.mrf.mxu0  ;;  %v2830_v63 = vld [vmem:[#allocation2 + $0xa1] sm:$0xff]  ;;  %v7277_v28 = vpack.i.bf16 %v2703_v46, %v2702_v50 }
 0x11b   :  { %v516_v25 = vmul.f32 %v8202_v22, %v361_v18  ;;  %7258 = vrot.lane.b32.xlu1 %v7257_v12, %s8072_s11  ;;  %v5323_v12 = vsel %vm690_vm1, %v8250_v53, %v7051_v49 }
 0x11c   :  { %7238 = vrot.lane.b32.xlu2 %v7247_v30, %s8071_s9  ;;  %v3346_v30 = vsel %vm2506_vm15, %v8679_v51, 0.0 }
 0x11d   :  { %v581_v31 = vadd.f32 %v8204_v23, %v516_v25  ;;  %7263 = vrot.lane.b32.xlu0 %v7262_v27, %s8071_s9  ;;  %v8729_v35 = vpop.permute.xlu1 %7053  ;;  %6859 = vmatmul.msk.f32.gmra.mxu0 %vm94_vm0, %v63_v20  ;;  %v7272_v62 = vpack.i.bf16 %v8736_v41, %v3346_v30 }
 0x11e   :  { %v7059_v60 = vpop.permute.xlu0 %7058  ;;  %v8734_v32 = vpop.permute.xlu2 %7103 }
 0x11f   :  { %v645_v59 = vmax.f32 %v581_v31, 0.0  ;;  %v7061_v34 = vunpack.i.h.bf16 %v7059_v60  ;;  %v7060_v57 = vunpack.i.l.bf16 %v7059_v60  ;;  %v986_v60 = vand.u32 255, %v786_v42 }
 0x120   :  { %v2831_v47 = vld [vmem:[#allocation2 + $0xa9] sm:$0xff] }
 0x121   :  { %718 = vst.msk [vmem:[#allocation2 + $0xb8] sm:$0xff] %vm690_vm1, %v645_v59  ;;  %v3543_v56 = vsel %vm2891_vm3, %v2831_v47, 0.0  ;;  %v8749_v14 = vld [vmem:[#allocation2 + $0xaf] sm:$0xff]  ;;  %v3155_v29 = vsel %vm2893_vm8, %v2831_v47, 0.0  ;;  %v5386_v50 = vsel %vm5192_vm5, %v5322_v1, %v7060_v57  ;;  %v5387_v52 = vsel %vm5192_vm5, %v5323_v12, %v7061_v34 }
 0x122   :  { %v364_v26 = vpop.f32.mrf.mxu0  ;;  %v5537_v2 = vpack.c.bf16 %v3543_v56, %v2830_v63  ;;  %v8765_v5 = vsel %vm2512_vm9, %v8749_v14, 0.0  ;;  %v2704_v31 = vld [vmem:[#allocation2 + $0xb0] sm:$0xff]  ;;  %v3023_v53 = vsel %vm2895_vm10, %v2831_v47, 0.0  ;;  %v65_v47 = vld [vmem:[%s11562_s0 + $0x128] sm:$0xff]  ;;  %v8798_v34 = vand.u32 15, %v986_v60 }
 0x123   :  { %v517_v17 = vmul.f32 %v8202_v22, %v364_v26  ;;  %7273 = vrot.lane.b32.xlu1 %v7272_v62, %s8072_s11  ;;  %v7287_v62 = vpack.i.bf16 %v3155_v29, %v2830_v63  ;;  %v7040_v26 = vunpack.i.l.bf16 %v8674_v44  ;;  %v7046_v57 = vunpack.i.h.bf16 %v8713_v4 }
 0x124   :  { %7278 = vrot.lane.b32.xlu2 %v7277_v28, %s8073_s8  ;;  %6967 = vmatmul.msk.bf16.gmra.mxu3 %vm690_vm1, %v5537_v2  ;;  %v7282_v2 = vpack.i.bf16 %v3023_v53, %v2830_v63  ;;  %v3086_v1 = vsel %vm2508_vm4, %v8679_v51, 0.0  ;;  %v5131_v12 = vsel %vm690_vm1, %v8293_v15, %v7041_v8  ;;  %vm2514_vm12 = vcmp.ge.s32.totalorder %v8798_v34, 1  ;;  %v72_v34 = vld [vmem:[%s11562_s0 + $0x160] sm:$0xff] }
 0x125   :  { %v582_v7 = vadd.f32 %v8204_v23, %v517_v17  ;;  %7268 = vrot.lane.b32.xlu0 %v7277_v28, %s8071_s9  ;;  %v7069_v9 = vpop.permute.xlu1 %7068  ;;  %6860 = vmatmul.msk.f32.gmra.mxu0 %vm94_vm0, %v64_v3  ;;  %v8794_v3 = vand.u32 15, %v979_v13  ;;  %v7045_v17 = vunpack.i.l.bf16 %v8713_v4  ;;  %v5130_v4 = vsel %vm690_vm1, %v8237_v40, %v7040_v26 }
 0x126   :  { %v7071_v18 = vunpack.i.h.bf16 %v7069_v9  ;;  %v7070_v20 = vunpack.i.l.bf16 %v7069_v9  ;;  %v8774_v25 = vpop.permute.xlu0 %7078  ;;  %v8776_v27 = vpop.permute.xlu2 %7118  ;;  %v5196_v51 = vsel %vm5192_vm5, %v5131_v12, %v7046_v57  ;;  %v3348_v40 = vsel %vm2508_vm4, %v8749_v14, 0.0 }
 0x127   :  { %v646_v59 = vmax.f32 %v582_v7, 0.0  ;;  %vm2897_vm11 = vcmp.lt.s32.totalorder %v8794_v3, 15  ;;  %v5195_v60 = vsel %vm5192_vm5, %v5130_v4, %v7045_v17  ;;  %v788_v26 = vadd.s32 192, %v8200_v21  ;;  %v70_v3 = vld [vmem:[%s11562_s0 + $0x150] sm:$0xff] }
 0x128   :  { %v5450_v46 = vsel %vm5257_vm6, %v5386_v50, %v7070_v20  ;;  %v5451_v49 = vsel %vm5257_vm6, %v5387_v52, %v7071_v18  ;;  %v2705_v6 = vld [vmem:[#allocation2 + $0xb8] sm:$0xff] }
 0x129   :  { %719 = vst.msk [vmem:[#allocation2 + $0xc0] sm:$0xff] %vm690_vm1, %v646_v59  ;;  %v5515_v30 = vpack.c.bf16 %v5451_v49, %v5450_v46  ;;  %v8787_v56 = vpack.i.bf16 %v2705_v6, %v2704_v31  ;;  %v8819_v29 = vld [vmem:[#allocation2 + $0xb7] sm:$0xff]  ;;  %v7292_v31 = vpack.i.bf16 %v8736_v41, %v3086_v1  ;;  %v1000_v12 = vand.u32 255, %v788_v26 }
 0x12a   :  { %v367_v28 = vpop.f32.mrf.mxu0  ;;  %v2832_v52 = vld [vmem:[#allocation2 + $0xb1] sm:$0xff]  ;;  %v7302_v24 = vpack.i.bf16 %v8819_v29, %v3348_v40 }
 0x12b   :  { %v518_v42 = vmul.f32 %v8202_v22, %v367_v28  ;;  %6028 = vmatmul.bf16.vlgmr.msra.gmra.mxu2 %v5515_v30  ;;  %7288 = vrot.lane.b32.xlu1 %v7287_v62, %s8071_s9  ;;  %v67_v40 = vld [vmem:[%s11562_s0 + $0x138] sm:$0xff] }
 0x12c   :  { %7283 = vrot.lane.b32.xlu2 %v7282_v2, %s8072_s11 }
 0x12d   :  { %v583_v44 = vadd.f32 %v8204_v23, %v518_v42  ;;  %7308 = vrot.lane.b32.xlu0 %v8787_v56, %s8073_s8  ;;  %v8806_v63 = vpop.permute.xlu1 %7073  ;;  %6861 = vmatmul.msk.f32.gmra.mxu0 %vm94_vm0, %v65_v47 }
 0x12e   :  { %v7094_v7 = vpop.permute.xlu0 %7093  ;;  %v8809_v9 = vpop.permute.xlu2 %7123 }
 0x12f   :  { %v647_v13 = vmax.f32 %v583_v44, 0.0  ;;  %v7096_v18 = vunpack.i.h.bf16 %v7094_v7  ;;  %v7095_v20 = vunpack.i.l.bf16 %v7094_v7  ;;  %v787_v7 = vadd.s32 184, %v8200_v21 }
 0x130   :  { %v2833_v15 = vld [vmem:[#allocation2 + $0xb9] sm:$0xff] }
 0x131   :  { %720 = vst.msk [vmem:[#allocation2 + $0xc8] sm:$0xff] %vm690_vm1, %v647_v13  ;;  %v5260_v59 = vsel %vm5257_vm6, %v5195_v60, %v7095_v20  ;;  %v5261_v50 = vsel %vm5257_vm6, %v5196_v51, %v7096_v18  ;;  %v3545_v53 = vsel %vm2893_vm8, %v2833_v15, 0.0  ;;  %v3025_v41 = vsel %vm2897_vm11, %v2833_v15, 0.0  ;;  %v8835_v46 = vld [vmem:[#allocation2 + $0xbf] sm:$0xff] }
 0x132   :  { %v370_v49 = vpop.f32.mrf.mxu0  ;;  %v5517_v6 = vpack.c.bf16 %v5261_v50, %v5260_v59  ;;  %v5540_v30 = vpack.c.bf16 %v3545_v53, %v2832_v52  ;;  %v7312_v62 = vpack.i.bf16 %v3025_v41, %v2832_v52  ;;  %v8848_v28 = vsel %vm2514_vm12, %v8835_v46, 0.0 }
 0x133   :  { %v519_v8 = vmul.f32 %v8202_v22, %v370_v49  ;;  %7293 = vrot.lane.b32.xlu1 %v7292_v31, %s8073_s8  ;;  %v3157_v44 = vsel %vm2895_vm10, %v2833_v15, 0.0  ;;  %v3350_v4 = vsel %vm2510_vm7, %v8835_v46, 0.0  ;;  %v7081_v31 = vunpack.i.h.bf16 %v8774_v25 }
 0x134   :  { %5864 = vmatmul.bf16.gmra.mxu1 %v5517_v6  ;;  %7303 = vrot.lane.b32.xlu2 %v7302_v24, %s8072_s11  ;;  %v7317_v20 = vpack.i.bf16 %v3157_v44, %v2832_v52  ;;  %v7080_v60 = vunpack.i.l.bf16 %v8774_v25  ;;  %v993_v15 = vand.u32 255, %v787_v7  ;;  %v8876_v59 = vand.u32 15, %v1000_v12  ;;  %v2706_v24 = vld [vmem:[#allocation2 + $0xc0] sm:$0xff] }
 0x135   :  { %v584_v2 = vadd.f32 %v8204_v23, %v519_v8  ;;  %6968 = vmatmul.msk.bf16.gmra.mxu3 %vm690_vm1, %v5540_v30  ;;  %7313 = vrot.lane.b32.xlu0 %v7312_v62, %s8072_s11  ;;  %v8853_v47 = vpop.permute.xlu1 %7083  ;;  %v7101_v53 = vunpack.i.h.bf16 %v8709_v45  ;;  %v3090_v11 = vsel %vm2512_vm9, %v8835_v46, 0.0 }
 0x136   :  { %6862 = vmatmul.msk.f32.gmra.mxu0 %vm94_vm0, %v66_v33  ;;  %v8856_v42 = vpop.permute.xlu2 %7138  ;;  %v7981_v33 = vld [vmem:[#allocation2 + $0x30] sm:$0xff]  ;;  %v8891_v44 = vand.u32 15, %v993_v15  ;;  %vm2516_vm13 = vcmp.ge.s32.totalorder %v8876_v59, 1 }
 0x137   :  { %v648_v57 = vmax.f32 %v584_v2, 0.0  ;;  %v8858_v17 = vpop.f32.mrf.mxu3  ;;  %v5324_v26 = vsel %vm690_vm1, %v7981_v33, %v7080_v60  ;;  %v7982_v2 = vld [vmem:[#allocation2 + $0x38] sm:$0xff] }
 0x138   :  { %v2387_v1 = vld [vmem:[#allocation2 + $0xc7] sm:$0xff]  ;;  %vm2899_vm14 = vcmp.lt.s32.totalorder %v8891_v44, 15  ;;  %v794_v44 = vadd.s32 240, %v8200_v21 }
 0x139   :  { %721 = vst.msk [vmem:[#allocation2 + $0xd0] sm:$0xff] %vm690_vm1, %v648_v57  ;;  %v7332_v13 = vpack.i.bf16 %v2387_v1, %v3350_v4  ;;  %v2707_v30 = vld [vmem:[#allocation2 + $0xc8] sm:$0xff]  ;;  %v5325_v57 = vsel %vm690_vm1, %v7982_v2, %v7081_v31  ;;  %v3088_v4 = vsel %vm2510_vm7, %v8749_v14, 0.0  ;;  %v789_v2 = vadd.s32 200, %v8200_v21 }
 0x13a   :  { %v373_v18 = vpop.f32.mrf.mxu0  ;;  %v2834_v31 = vld [vmem:[#allocation2 + $0xc1] sm:$0xff]  ;;  %v7322_v15 = vpack.i.bf16 %v8819_v29, %v3088_v4 }
 0x13b   :  { %v520_v51 = vmul.f32 %v8202_v22, %v373_v18  ;;  %7298 = vrot.lane.b32.xlu1 %v8787_v56, %s8071_s9  ;;  %v7100_v56 = vunpack.i.l.bf16 %v8709_v45 }
 0x13c   :  { %7318 = vrot.lane.b32.xlu2 %v7317_v20, %s8071_s9 }
 0x13d   :  { %v585_v50 = vadd.f32 %v8204_v23, %v520_v51  ;;  %7333 = vrot.lane.b32.xlu0 %v7332_v13, %s8072_s11  ;;  %v7089_v52 = vpop.permute.xlu1 %7088  ;;  %v8880_v25 = vpop.permute.xlu0 %7128  ;;  %v7337_v13 = vpack.i.bf16 %v2707_v30, %v2706_v24 }
 0x13e   :  { %v7091_v41 = vunpack.i.h.bf16 %v7089_v52  ;;  %v7090_v49 = vunpack.i.l.bf16 %v7089_v52  ;;  %6863 = vmatmul.msk.f32.gmra.mxu0 %vm94_vm0, %v67_v40  ;;  %v8885_v6 = vpop.permute.xlu2 %7143 }
 0x13f   :  { %v649_v62 = vmax.f32 %v585_v50, 0.0  ;;  %v8887_v8 = vpop.f32.mrf.mxu3 }
 0x140   :  { %v5388_v45 = vsel %vm5192_vm5, %v5324_v26, %v7090_v49  ;;  %v5389_v7 = vsel %vm5192_vm5, %v5325_v57, %v7091_v41  ;;  %v2835_v12 = vld [vmem:[#allocation2 + $0xc9] sm:$0xff]  ;;  %v7056_v57 = vunpack.i.h.bf16 %v8729_v35 }
 0x141   :  { %722 = vst.msk [vmem:[#allocation2 + $0xd8] sm:$0xff] %vm690_vm1, %v649_v62  ;;  %v5452_v18 = vsel %vm5257_vm6, %v5388_v45, %v7100_v56  ;;  %v5453_v20 = vsel %vm5257_vm6, %v5389_v7, %v7101_v53  ;;  %v3547_v60 = vsel %vm2895_vm10, %v2835_v12, 0.0  ;;  %v8908_v50 = vld [vmem:[#allocation2 + $0xcf] sm:$0xff]  ;;  %v7342_v53 = vpack.i.bf16 %v2387_v1, %v3090_v11 }
 0x142   :  { %v376_v51 = vpop.f32.mrf.mxu0  ;;  %v5518_v40 = vpack.c.bf16 %v5453_v20, %v5452_v18  ;;  %v5543_v14 = vpack.c.bf16 %v3547_v60, %v2834_v31  ;;  %v790_v56 = vadd.s32 208, %v8200_v21  ;;  %v8924_v1 = vsel %vm2516_vm13, %v8908_v50, 0.0  ;;  %v7983_v20 = vld [vmem:[#allocation2 + $0x40] sm:$0xff] }
 0x143   :  { %v521_v52 = vmul.f32 %v8202_v22, %v376_v51  ;;  %7338 = vrot.lane.b32.xlu1 %v7337_v13, %s8073_s8  ;;  %v3027_v30 = vsel %vm2899_vm14, %v2835_v12, 0.0  ;;  %v7055_v45 = vunpack.i.l.bf16 %v8729_v35  ;;  %v7076_v7 = vunpack.i.h.bf16 %v8806_v63  ;;  %v7984_v51 = vld [vmem:[#allocation2 + $0x48] sm:$0xff] }
 0x144   :  { %6033 = vmatmul.bf16.gmra.mxu2 %v5518_v40  ;;  %7323 = vrot.lane.b32.xlu2 %v7322_v15, %s8073_s8  ;;  %v3159_v4 = vsel %vm2897_vm11, %v2835_v12, 0.0  ;;  %v7347_v18 = vpack.i.bf16 %v3027_v30, %v2834_v31  ;;  %v1014_v15 = vand.u32 255, %v790_v56  ;;  %v7075_v11 = vunpack.i.l.bf16 %v8806_v63 }
 0x145   :  { %v586_v29 = vadd.f32 %v8204_v23, %v521_v52  ;;  %7343 = vrot.lane.b32.xlu0 %v7342_v53, %s8073_s8  ;;  %6969 = vmatmul.msk.bf16.gmra.mxu3 %vm690_vm1, %v5543_v14  ;;  %v7109_v46 = vpop.permute.xlu1 %7108  ;;  %v7126_v14 = vunpack.i.h.bf16 %v8809_v9  ;;  %v7125_v35 = vunpack.i.l.bf16 %v8809_v9  ;;  %v7352_v12 = vpack.i.bf16 %v3159_v4, %v2834_v31 }
 0x146   :  { %v7111_v41 = vunpack.i.h.bf16 %v7109_v46  ;;  %v7110_v49 = vunpack.i.l.bf16 %v7109_v46  ;;  %6864 = vmatmul.msk.f32.gmra.mxu0 %vm94_vm0, %v68_v55  ;;  %v8927_v24 = vpop.permute.xlu2 %7148  ;;  %v69_v55 = vld [vmem:[%s11562_s0 + $0x148] sm:$0xff]  ;;  %v5132_v63 = vsel %vm690_vm1, %v8285_v10, %v7055_v45  ;;  %v7985_v46 = vld [vmem:[#allocation2 + $0x37] sm:$0xff]  ;;  %v7130_v31 = vunpack.i.l.bf16 %v8880_v25 }
 0x147   :  { %v650_v62 = vmax.f32 %v586_v29, 0.0  ;;  %v8931_v33 = vpop.permute.xlu0 %7133  ;;  %v8933_v26 = vpop.f32.mrf.mxu3  ;;  %v1007_v29 = vand.u32 255, %v789_v2  ;;  %v5133_v56 = vsel %vm690_vm1, %v7985_v46, %v7056_v57  ;;  %v5197_v45 = vsel %vm5192_vm5, %v5132_v63, %v7075_v11 }
 0x148   :  { %v5326_v60 = vsel %vm690_vm1, %v7983_v20, %v7110_v49  ;;  %v5327_v40 = vsel %vm690_vm1, %v7984_v51, %v7111_v41  ;;  %v7131_v49 = vunpack.i.h.bf16 %v8880_v25  ;;  %v5198_v4 = vsel %vm5192_vm5, %v5133_v56, %v7076_v7  ;;  %v2836_v63 = vld [vmem:[#allocation2 + $0xd1] sm:$0xff] }
 0x149   :  { %723 = vst.msk [vmem:[#allocation2 + $0xe0] sm:$0xff] %vm690_vm1, %v650_v62  ;;  %v5390_v9 = vsel %vm5192_vm5, %v5326_v60, %v7125_v35  ;;  %v5391_v41 = vsel %vm5192_vm5, %v5327_v40, %v7126_v14  ;;  %v2709_v14 = vld [vmem:[#allocation2 + $0xd8] sm:$0xff]  ;;  %v8977_v35 = vand.u32 15, %v1007_v29  ;;  %v3352_v7 = vsel %vm2512_vm9, %v8908_v50, 0.0 }
 0x14a   :  { %v379_v52 = vpop.f32.mrf.mxu0  ;;  %v5454_v51 = vsel %vm5257_vm6, %v5390_v9, %v7130_v31  ;;  %v5455_v40 = vsel %vm5257_vm6, %v5391_v41, %v7131_v49 }
 0x14b   :  { %v522_v53 = vmul.f32 %v8202_v22, %v379_v52  ;;  %7348 = vrot.lane.b32.xlu1 %v7347_v18, %s8072_s11  ;;  %v8969_v18 = vld [vmem:[#allocation2 + $0xd7] sm:$0xff]  ;;  %v5521_v9 = vpack.c.bf16 %v5455_v40, %v5454_v51  ;;  %vm2901_vm2 = vcmp.lt.s32.totalorder %v8977_v35, 15 }
 0x14c   :  { %7328 = vrot.lane.b32.xlu2 %v7337_v13, %s8071_s9  ;;  %v8962_v13 = vand.u32 15, %v1014_v15  ;;  %v2708_v15 = vld [vmem:[#allocation2 + $0xd0] sm:$0xff] }
 0x14d   :  { %v587_v30 = vadd.f32 %v8204_v23, %v522_v53  ;;  %7353 = vrot.lane.b32.xlu0 %v7352_v12, %s8071_s9  ;;  %v7114_v62 = vpop.permute.xlu1 %7113  ;;  %v7367_v41 = vpack.i.bf16 %v2709_v14, %v2708_v15  ;;  %v1021_v15 = vand.u32 255, %v791_v37  ;;  %v7105_v14 = vunpack.i.l.bf16 %v8734_v32  ;;  %v74_v35 = vld [vmem:[%s11562_s0 + $0x170] sm:$0xff] }
 0x14e   :  { %v7116_v2 = vunpack.i.h.bf16 %v7114_v62  ;;  %v7115_v10 = vunpack.i.l.bf16 %v7114_v62  ;;  %6865 = vmatmul.msk.f32.gmra.mxu0 %vm94_vm0, %v69_v55  ;;  %v8965_v57 = vpop.permute.xlu2 %7188  ;;  %v7362_v55 = vpack.i.bf16 %v8969_v18, %v3352_v7  ;;  %vm2518_vm15 = vcmp.ge.s32.totalorder %v8962_v13, 1  ;;  %v76_v13 = vld [vmem:[%s11562_s0 + $0x180] sm:$0xff] }
 0x14f   :  { %v651_v25 = vmax.f32 %v587_v30, 0.0  ;;  %v8971_v20 = vpop.permute.xlu0 %7153  ;;  %v8973_v60 = vpop.f32.mrf.mxu3  ;;  %v7086_v30 = vunpack.i.h.bf16 %v8853_v47  ;;  %v7085_v62 = vunpack.i.l.bf16 %v8853_v47  ;;  %v7146_v37 = vunpack.i.h.bf16 %v8885_v6 }
 0x150   :  { %v5262_v52 = vsel %vm5257_vm6, %v5197_v45, %v7115_v10  ;;  %v5263_v11 = vsel %vm5257_vm6, %v5198_v4, %v7116_v2  ;;  %v2837_v53 = vld [vmem:[#allocation2 + $0xd9] sm:$0xff]  ;;  %v792_v2 = vadd.s32 224, %v8200_v21 }
 0x151   :  { %724 = vst.msk [vmem:[#allocation2 + $0xe8] sm:$0xff] %vm690_vm1, %v651_v25  ;;  %v5520_v12 = vpack.c.bf16 %v5263_v11, %v5262_v52  ;;  %v3549_v46 = vsel %vm2897_vm11, %v2837_v53, 0.0  ;;  %v8988_v29 = vld [vmem:[#allocation2 + $0xdf] sm:$0xff]  ;;  %v7106_v25 = vunpack.i.h.bf16 %v8734_v32  ;;  %v3161_v51 = vsel %vm2899_vm14, %v2837_v53, 0.0 }
 0x152   :  { %v382_v56 = vpop.f32.mrf.mxu0  ;;  %v5546_v49 = vpack.c.bf16 %v3549_v46, %v2836_v63  ;;  %v9005_v10 = vsel %vm2518_vm15, %v8988_v29, 0.0  ;;  %v2710_v40 = vld [vmem:[#allocation2 + $0xe0] sm:$0xff]  ;;  %v7141_v52 = vunpack.i.h.bf16 %v8856_v42  ;;  %v7140_v46 = vunpack.i.l.bf16 %v8856_v42 }
 0x153   :  { %v523_v31 = vmul.f32 %v8202_v22, %v382_v56  ;;  %5869 = vmatmul.bf16.gmra.mxu1 %v5520_v12  ;;  %7363 = vrot.lane.b32.xlu1 %v7362_v55, %s8072_s11  ;;  %11574 = vst [vmem:[#allocation3_spill] sm:$0xff] %v9005_v10  ;;  %v3029_v55 = vsel %vm2901_vm2, %v2837_v53, 0.0  ;;  %v1028_v32 = vand.u32 255, %v792_v2  ;;  %v7156_v53 = vunpack.i.h.bf16 %v8971_v20 }
 0x154   :  { %6038 = vmatmul.bf16.gmra.mxu2 %v5521_v9  ;;  %7368 = vrot.lane.b32.xlu2 %v7367_v41, %s8073_s8  ;;  %v5134_v9 = vsel %vm690_vm1, %v8331_v54, %v7085_v62  ;;  %v7155_v42 = vunpack.i.l.bf16 %v8971_v20  ;;  %v7372_v16 = vpack.i.bf16 %v3029_v55, %v2836_v63  ;;  %v9035_v54 = vand.u32 15, %v1021_v15  ;;  %v7988_v55 = vld [vmem:[#allocation2 + $0x58] sm:$0xff] }
 0x155   :  { %v588_v45 = vadd.f32 %v8204_v23, %v523_v31  ;;  %7358 = vrot.lane.b32.xlu0 %v7367_v41, %s8071_s9  ;;  %6970 = vmatmul.msk.bf16.gmra.mxu3 %vm690_vm1, %v5546_v49  ;;  %v7159_v4 = vpop.permute.xlu1 %7158  ;;  %v7986_v41 = vld [vmem:[#allocation2 + $0x47] sm:$0xff]  ;;  %v7145_v31 = vunpack.i.l.bf16 %v8885_v6  ;;  %v71_v6 = vld [vmem:[%s11562_s0 + $0x158] sm:$0xff]  ;;  %v9046_v15 = vand.u32 15, %v1028_v32 }
 0x156   :  { %6866 = vmatmul.msk.f32.gmra.mxu0 %vm94_vm0, %v70_v3  ;;  %v9012_v47 = vpop.permute.xlu2 %7193  ;;  %v5135_v49 = vsel %vm690_vm1, %v7986_v41, %v7086_v30  ;;  %v7377_v3 = vpack.i.bf16 %v3161_v51, %v2836_v63  ;;  %v7161_v62 = vunpack.i.h.bf16 %v7159_v4  ;;  %v7160_v30 = vunpack.i.l.bf16 %v7159_v4 }
 0x157   :  { %v652_v11 = vmax.f32 %v588_v45, 0.0  ;;  %v9018_v7 = vpop.permute.xlu0 %7163  ;;  %v9020_v12 = vpop.f32.mrf.mxu3  ;;  %v5199_v51 = vsel %vm5192_vm5, %v5134_v9, %v7105_v14  ;;  %v5200_v20 = vsel %vm5192_vm5, %v5135_v49, %v7106_v25  ;;  %v5329_v14 = vsel %vm690_vm1, %v7988_v55, %v7141_v52 }
 0x158   :  { %v2711_v56 = vld [vmem:[#allocation2 + $0xe8] sm:$0xff]  ;;  %vm2903_vm3 = vcmp.lt.s32.totalorder %v9035_v54, 15  ;;  %vm2520_vm4 = vcmp.ge.s32.totalorder %v9046_v15, 1 }
 0x159   :  { %725 = vst.msk [vmem:[#allocation2 + $0xf0] sm:$0xff] %vm690_vm1, %v652_v11  ;;  %v9031_v45 = vpack.i.bf16 %v2711_v56, %v2710_v40  ;;  %v7987_v40 = vld [vmem:[#allocation2 + $0x50] sm:$0xff]  ;;  %v5264_v11 = vsel %vm5257_vm6, %v5199_v51, %v7145_v31  ;;  %v5393_v56 = vsel %vm5192_vm5, %v5329_v14, %v7156_v53  ;;  %v9068_v52 = vld [vmem:[#allocation2 + $0xe7] sm:$0xff] }
 0x15a   :  { %v385_v19 = vpop.f32.mrf.mxu0  ;;  %v5328_v63 = vsel %vm690_vm1, %v7987_v40, %v7140_v46 }
 0x15b   :  { %v524_v2 = vmul.f32 %v8202_v22, %v385_v19  ;;  %7378 = vrot.lane.b32.xlu1 %v7377_v3, %s8071_s9  ;;  %v5392_v46 = vsel %vm5192_vm5, %v5328_v63, %v7155_v42  ;;  %v3092_v3 = vsel %vm2514_vm12, %v8908_v50, 0.0 }
 0x15c   :  { %7373 = vrot.lane.b32.xlu2 %v7372_v16, %s8072_s11  ;;  %v5265_v16 = vsel %vm5257_vm6, %v5200_v20, %v7146_v37  ;;  %v5456_v32 = vsel %vm5257_vm6, %v5392_v46, %v7160_v30  ;;  %v5457_v37 = vsel %vm5257_vm6, %v5393_v56, %v7161_v62  ;;  %v7382_v53 = vpack.i.bf16 %v8969_v18, %v3092_v3 }
 0x15d   :  { %v589_v4 = vadd.f32 %v8204_v23, %v524_v2  ;;  %7398 = vrot.lane.b32.xlu0 %v9031_v45, %s8073_s8  ;;  %v9051_v19 = vpop.permute.xlu1 %7168  ;;  %v5523_v31 = vpack.c.bf16 %v5265_v16, %v5264_v11  ;;  %v3354_v30 = vsel %vm2514_vm12, %v8988_v29, 0.0  ;;  %v2838_v2 = vld [vmem:[#allocation2 + $0xe1] sm:$0xff]  ;;  %v5524_v20 = vpack.c.bf16 %v5457_v37, %v5456_v32 }
 0x15e   :  { %6867 = vmatmul.msk.f32.gmra.mxu0 %vm94_vm0, %v71_v6  ;;  %v9057_v25 = vpop.permute.xlu2 %7213  ;;  %v7392_v40 = vpack.i.bf16 %v9068_v52, %v3354_v30  ;;  %v7120_v16 = vunpack.i.l.bf16 %v8776_v27  ;;  %v7121_v46 = vunpack.i.h.bf16 %v8776_v27  ;;  %v7135_v56 = vunpack.i.l.bf16 %v8931_v33 }
 0x15f   :  { %v653_v9 = vmax.f32 %v589_v4, 0.0  ;;  %v9062_v41 = vpop.permute.xlu0 %7173  ;;  %v9064_v49 = vpop.f32.mrf.mxu3  ;;  %v793_v32 = vadd.s32 232, %v8200_v21 }
 0x160   :  { %v2839_v42 = vld [vmem:[#allocation2 + $0xe9] sm:$0xff]  ;;  %v7176_v37 = vunpack.i.h.bf16 %v9062_v41 }
 0x161   :  { %726 = vst.msk [vmem:[#allocation2 + $0xf8] sm:$0xff] %vm690_vm1, %v653_v9  ;;  %v3551_v62 = vsel %vm2899_vm14, %v2839_v42, 0.0  ;;  %v3031_v6 = vsel %vm2903_vm3, %v2839_v42, 0.0  ;;  %v9083_v51 = vld [vmem:[#allocation2 + $0xef] sm:$0xff]  ;;  %v3163_v27 = vsel %vm2901_vm2, %v2839_v42, 0.0  ;;  %v7166_v42 = vunpack.i.h.bf16 %v9018_v7 }
 0x162   :  { %v388_v50 = vpop.f32.mrf.mxu0  ;;  %v5549_v63 = vpack.c.bf16 %v3551_v62, %v2838_v2  ;;  %v7402_v4 = vpack.i.bf16 %v3031_v6, %v2838_v2  ;;  %v9096_v11 = vsel %vm2520_vm4, %v9083_v51, 0.0 }
 0x163   :  { %v525_v18 = vmul.f32 %v8202_v22, %v388_v50  ;;  %5874 = vmatmul.bf16.gmra.mxu1 %v5523_v31  ;;  %7383 = vrot.lane.b32.xlu1 %v7382_v53, %s8073_s8  ;;  %11575 = vst [vmem:[#allocation4_spill] sm:$0xff] %v9096_v11  ;;  %v7175_v31 = vunpack.i.l.bf16 %v9062_v41 }
 0x164   :  { %6043 = vmatmul.bf16.gmra.mxu2 %v5524_v20  ;;  %7393 = vrot.lane.b32.xlu2 %v7392_v40, %s8072_s11  ;;  %v3356_v20 = vsel %vm2516_vm13, %v9083_v51, 0.0  ;;  %v1042_v40 = vand.u32 255, %v794_v44 }
 0x165   :  { %v590_v55 = vadd.f32 %v8204_v23, %v525_v18  ;;  %6971 = vmatmul.msk.bf16.gmra.mxu3 %vm690_vm1, %v5549_v63  ;;  %7403 = vrot.lane.b32.xlu0 %v7402_v4, %s8072_s11  ;;  %v7184_v14 = vpop.permute.xlu1 %7183  ;;  %v7136_v63 = vunpack.i.h.bf16 %v8931_v33  ;;  %v5136_v4 = vsel %vm690_vm1, %v8375_v58, %v7120_v16  ;;  %v7165_v18 = vunpack.i.l.bf16 %v9018_v7  ;;  %v73_v33 = vld [vmem:[%s11562_s0 + $0x168] sm:$0xff] }
 0x166   :  { %6868 = vmatmul.msk.f32.gmra.mxu0 %vm94_vm0, %v72_v34  ;;  %v9105_v9 = vpop.permute.xlu2 %7228  ;;  %v7186_v62 = vunpack.i.h.bf16 %v7184_v14  ;;  %v7185_v6 = vunpack.i.l.bf16 %v7184_v14  ;;  %v7989_v14 = vld [vmem:[#allocation2 + $0x57] sm:$0xff]  ;;  %v7991_v16 = vld [vmem:[#allocation2 + $0x68] sm:$0xff] }
 0x167   :  { %v654_v3 = vmax.f32 %v590_v55, 0.0  ;;  %v9110_v53 = vpop.permute.xlu0 %7178  ;;  %v9112_v30 = vpop.f32.mrf.mxu3  ;;  %v7407_v55 = vpack.i.bf16 %v3163_v27, %v2838_v2  ;;  %v5137_v10 = vsel %vm690_vm1, %v7989_v14, %v7121_v46  ;;  %v5331_v7 = vsel %vm690_vm1, %v7991_v16, %v7176_v37 }
 0x168   :  { %v9116_v50 = vld [vmem:[#allocation2 + $0xf7] sm:$0xff]  ;;  %v5201_v2 = vsel %vm5192_vm5, %v5136_v4, %v7135_v56  ;;  %v5395_v27 = vsel %vm5192_vm5, %v5331_v7, %v7186_v62  ;;  %v7190_v14 = vunpack.i.l.bf16 %v8965_v57  ;;  %v7180_v54 = vunpack.i.l.bf16 %v9110_v53 }
 0x169   :  { %727 = vst.msk [vmem:[#allocation2 + $0x100] sm:$0xff] %vm690_vm1, %v654_v3  ;;  %v7422_v41 = vpack.i.bf16 %v9116_v50, %v3356_v20  ;;  %v7990_v3 = vld [vmem:[#allocation2 + $0x60] sm:$0xff]  ;;  %v1035_v20 = vand.u32 255, %v793_v32  ;;  %v5202_v32 = vsel %vm5192_vm5, %v5137_v10, %v7136_v63  ;;  %v5266_v62 = vsel %vm5257_vm6, %v5201_v2, %v7165_v18  ;;  %v2713_v4 = vld [vmem:[#allocation2 + $0xf8] sm:$0xff] }
 0x16a   :  { %v391_v34 = vpop.f32.mrf.mxu0  ;;  %v5330_v58 = vsel %vm690_vm1, %v7990_v3, %v7175_v31  ;;  %v3094_v63 = vsel %vm2516_vm13, %v8988_v29, 0.0 }
 0x16b   :  { %v526_v44 = vmul.f32 %v8202_v22, %v391_v34  ;;  %7388 = vrot.lane.b32.xlu1 %v9031_v45, %s8071_s9  ;;  %v5394_v46 = vsel %vm5192_vm5, %v5330_v58, %v7185_v6  ;;  %v9141_v45 = vand.u32 15, %v1042_v40  ;;  %v7191_v34 = vunpack.i.h.bf16 %v8965_v57  ;;  %v2712_v40 = vld [vmem:[#allocation2 + $0xf0] sm:$0xff] }
 0x16c   :  { %7408 = vrot.lane.b32.xlu2 %v7407_v55, %s8071_s9  ;;  %v5267_v6 = vsel %vm5257_vm6, %v5202_v32, %v7166_v42  ;;  %v9161_v10 = vand.u32 15, %v1035_v20  ;;  %v2840_v58 = vld [vmem:[#allocation2 + $0xf1] sm:$0xff]  ;;  %v7412_v59 = vpack.i.bf16 %v9068_v52, %v3094_v63 }
 0x16d   :  { %v591_v31 = vadd.f32 %v8204_v23, %v526_v44  ;;  %7423 = vrot.lane.b32.xlu0 %v7422_v41, %s8072_s11  ;;  %v9147_v37 = vpop.permute.xlu1 %7198  ;;  %v5458_v41 = vsel %vm5257_vm6, %v5394_v46, %v7190_v14  ;;  %v5459_v3 = vsel %vm5257_vm6, %v5395_v27, %v7191_v34  ;;  %vm2522_vm7 = vcmp.ge.s32.totalorder %v9141_v45, 1 }
 0x16e   :  { %6869 = vmatmul.msk.f32.gmra.mxu0 %vm94_vm0, %v73_v33  ;;  %v9151_v56 = vpop.permute.xlu2 %7233  ;;  %v5526_v42 = vpack.c.bf16 %v5267_v6, %v5266_v62  ;;  %v7427_v33 = vpack.i.bf16 %v2713_v4, %v2712_v40  ;;  %v5527_v46 = vpack.c.bf16 %v5459_v3, %v5458_v41  ;;  %vm2905_vm8 = vcmp.lt.s32.totalorder %v9161_v10, 15  ;;  %v78_v10 = vld [vmem:[%s11562_s0 + $0x190] sm:$0xff] }
 0x16f   :  { %v655_v55 = vmax.f32 %v591_v31, 0.0  ;;  %v9155_v57 = vpop.permute.xlu0 %7218  ;;  %v9157_v44 = vpop.f32.mrf.mxu3  ;;  %v7201_v14 = vunpack.i.h.bf16 %v9147_v37  ;;  %v7200_v31 = vunpack.i.l.bf16 %v9147_v37  ;;  %v7150_v41 = vunpack.i.l.bf16 %v8927_v24 }
 0x170   :  { %11576 = vst [vmem:[#allocation5_spill] sm:$0xff] %v9157_v44  ;;  %v2841_v18 = vld [vmem:[#allocation2 + $0xf9] sm:$0xff]  ;;  %v7220_v44 = vunpack.i.l.bf16 %v9155_v57 }
 0x171   :  { %728 = vst.msk [vmem:[#allocation2 + $0x108] sm:$0xff] %vm690_vm1, %v655_v55  ;;  %v3553_v16 = vsel %vm2901_vm2, %v2841_v18, 0.0  ;;  %v3165_v7 = vsel %vm2903_vm3, %v2841_v18, 0.0  ;;  %v9172_v20 = vld [vmem:[#allocation2 + $0xff] sm:$0xff]  ;;  %v3033_v40 = vsel %vm2905_vm8, %v2841_v18, 0.0  ;;  %v7151_v55 = vunpack.i.h.bf16 %v8927_v24 }
 0x172   :  { %v394_v2 = vpop.f32.mrf.mxu0  ;;  %v5552_v29 = vpack.c.bf16 %v3553_v16, %v2840_v58  ;;  %v7437_v27 = vpack.i.bf16 %v3165_v7, %v2840_v58  ;;  %v9185_v52 = vsel %vm2522_vm7, %v9172_v20, 0.0  ;;  %v2714_v4 = vld [vmem:[#allocation2 + $0x100] sm:$0xff]  ;;  %v7170_v16 = vunpack.i.l.bf16 %v9051_v19 }
 0x173   :  { %v527_v34 = vmul.f32 %v8202_v22, %v394_v2  ;;  %5879 = vmatmul.bf16.gmra.mxu1 %v5526_v42  ;;  %7428 = vrot.lane.b32.xlu1 %v7427_v33, %s8073_s8  ;;  %11577 = vst [vmem:[#allocation6_spill] sm:$0xff] %v9185_v52  ;;  %v7171_v42 = vunpack.i.h.bf16 %v9051_v19  ;;  %v7216_v7 = vunpack.i.h.bf16 %v9057_v25  ;;  %v7432_v18 = vpack.i.bf16 %v3033_v40, %v2840_v58  ;;  %v75_v58 = vld [vmem:[%s11562_s0 + $0x178] sm:$0xff] }
 0x174   :  { %6048 = vmatmul.bf16.gmra.mxu2 %v5527_v46  ;;  %7413 = vrot.lane.b32.xlu2 %v7412_v59, %s8073_s8  ;;  %v795_v46 = vadd.s32 248, %v8200_v21 }
 0x175   :  { %v592_v32 = vadd.f32 %v8204_v23, %v527_v34  ;;  %6972 = vmatmul.msk.bf16.gmra.mxu3 %vm690_vm1, %v5552_v29  ;;  %7438 = vrot.lane.b32.xlu0 %v7437_v27, %s8071_s9  ;;  %v7204_v62 = vpop.permute.xlu1 %7203  ;;  %v7992_v29 = vld [vmem:[#allocation2 + $0x70] sm:$0xff]  ;;  %v7993_v27 = vld [vmem:[#allocation2 + $0x78] sm:$0xff] }
 0x176   :  { %6870 = vmatmul.msk.f32.gmra.mxu0 %vm94_vm0, %v74_v35  ;;  %v9193_v6 = vpop.permute.xlu2 %7238  ;;  %v5332_v24 = vsel %vm690_vm1, %v7992_v29, %v7200_v31  ;;  %v5333_v34 = vsel %vm690_vm1, %v7993_v27, %v7201_v14  ;;  %v7215_v35 = vunpack.i.l.bf16 %v9057_v25  ;;  %v7205_v52 = vunpack.i.l.bf16 %v7204_v62  ;;  %v7994_v25 = vld [vmem:[#allocation2 + $0x67] sm:$0xff] }
 0x177   :  { %v656_v37 = vmax.f32 %v592_v32, 0.0  ;;  %v9199_v3 = vpop.permute.xlu0 %7223  ;;  %v9201_v63 = vpop.f32.mrf.mxu3  ;;  %v7206_v32 = vunpack.i.h.bf16 %v7204_v62  ;;  %v5138_v14 = vsel %vm690_vm1, %v8433_v39, %v7150_v41  ;;  %v5139_v31 = vsel %vm690_vm1, %v7994_v25, %v7151_v55 }
 0x178   :  { %11578 = vst [vmem:[#allocation7_spill] sm:$0xff] %v9201_v63  ;;  %v2715_v2 = vld [vmem:[#allocation2 + $0x108] sm:$0xff]  ;;  %v7221_v63 = vunpack.i.h.bf16 %v9155_v57  ;;  %v5396_v62 = vsel %vm5192_vm5, %v5332_v24, %v7215_v35  ;;  %v5397_v57 = vsel %vm5192_vm5, %v5333_v34, %v7216_v7  ;;  %v1049_v40 = vand.u32 255, %v795_v46 }
 0x179   :  { %729 = vst.msk [vmem:[#allocation2 + $0x110] sm:$0xff] %vm690_vm1, %v656_v37  ;;  %v7442_v59 = vpack.i.bf16 %v2715_v2, %v2714_v4  ;;  %v5203_v2 = vsel %vm5192_vm5, %v5138_v14, %v7170_v16  ;;  %v5204_v39 = vsel %vm5192_vm5, %v5139_v31, %v7171_v42  ;;  %v9235_v7 = vld [vmem:[#allocation2 + $0x107] sm:$0xff]  ;;  %v5460_v29 = vsel %vm5257_vm6, %v5396_v62, %v7220_v44 }
 0x17a   :  { %v397_v19 = vpop.f32.mrf.mxu0  ;;  %v5268_v55 = vsel %vm5257_vm6, %v5203_v2, %v7205_v52  ;;  %v5269_v41 = vsel %vm5257_vm6, %v5204_v39, %v7206_v32  ;;  %v5461_v16 = vsel %vm5257_vm6, %v5397_v57, %v7221_v63  ;;  %v3358_v42 = vsel %vm2518_vm15, %v9172_v20, 0.0  ;;  %v2842_v32 = vld [vmem:[#allocation2 + $0x101] sm:$0xff] }
 0x17b   :  { %v528_v11 = vmul.f32 %v8202_v22, %v397_v19  ;;  %7433 = vrot.lane.b32.xlu1 %v7432_v18, %s8072_s11  ;;  %v9246_v27 = vand.u32 15, %v1049_v40  ;;  %v5529_v52 = vpack.c.bf16 %v5269_v41, %v5268_v55  ;;  %v7447_v34 = vpack.i.bf16 %v9235_v7, %v3358_v42 }
 0x17c   :  { %7418 = vrot.lane.b32.xlu2 %v7427_v33, %s8071_s9  ;;  %v3096_v35 = vsel %vm2518_vm15, %v9083_v51, 0.0  ;;  %v5530_v19 = vpack.c.bf16 %v5461_v16, %v5460_v29  ;;  %v798_v14 = vadd.s32 272, %v8200_v21  ;;  %v7181_v51 = vunpack.i.h.bf16 %v9110_v53 }
 0x17d   :  { %v593_v4 = vadd.f32 %v8204_v23, %v528_v11  ;;  %7443 = vrot.lane.b32.xlu0 %v7442_v59, %s8071_s9  ;;  %v9226_v37 = vpop.permute.xlu1 %7208  ;;  %v7452_v31 = vpack.i.bf16 %v9116_v50, %v3096_v35  ;;  %vm2907_vm9 = vcmp.lt.s32.totalorder %v9246_v27, 15  ;;  %v7195_v2 = vunpack.i.l.bf16 %v9012_v47 }
 0x17e   :  { %6871 = vmatmul.msk.f32.gmra.mxu0 %vm94_vm0, %v75_v58  ;;  %v9231_v33 = vpop.permute.xlu2 %7278  ;;  %v7231_v29 = vunpack.i.h.bf16 %v9105_v9  ;;  %v7230_v16 = vunpack.i.l.bf16 %v9105_v9 }
 0x17f   :  { %v657_v46 = vmax.f32 %v593_v4, 0.0  ;;  %v9237_v11 = vpop.permute.xlu0 %7243  ;;  %v9239_v18 = vpop.f32.mrf.mxu3  ;;  %v1070_v4 = vand.u32 255, %v798_v14 }
 0x180   :  { %v2843_v24 = vld [vmem:[#allocation2 + $0x109] sm:$0xff] }
 0x181   :  { %730 = vst.msk [vmem:[#allocation2 + $0x118] sm:$0xff] %vm690_vm1, %v657_v46  ;;  %v3555_v44 = vsel %vm2903_vm3, %v2843_v24, 0.0  ;;  %v3167_v40 = vsel %vm2905_vm8, %v2843_v24, 0.0  ;;  %v2716_v53 = vld [vmem:[#allocation2 + $0x110] sm:$0xff]  ;;  %v3035_v46 = vsel %vm2907_vm9, %v2843_v24, 0.0  ;;  %v7246_v24 = vunpack.i.h.bf16 %v9237_v11 }
 0x182   :  { %v400_v63 = vpop.f32.mrf.mxu0  ;;  %v5555_v58 = vpack.c.bf16 %v3555_v44, %v2842_v32  ;;  %v7235_v44 = vunpack.i.l.bf16 %v9151_v56  ;;  %v7462_v14 = vpack.i.bf16 %v3035_v46, %v2842_v32 }
 0x183   :  { %v529_v25 = vmul.f32 %v8202_v22, %v400_v63  ;;  %5884 = vmatmul.bf16.gmra.mxu1 %v5529_v52  ;;  %7448 = vrot.lane.b32.xlu1 %v7447_v34, %s8072_s11  ;;  %v5140_v52 = vsel %vm690_vm1, %v8502_v61, %v7180_v54  ;;  %v7995_v34 = vld [vmem:[#allocation2 + $0x77] sm:$0xff]  ;;  %v7467_v63 = vpack.i.bf16 %v3167_v40, %v2842_v32  ;;  %v7996_v54 = vld [vmem:[#allocation2 + $0x80] sm:$0xff] }
 0x184   :  { %6053 = vmatmul.bf16.gmra.mxu2 %v5530_v19  ;;  %7458 = vrot.lane.b32.xlu2 %v7442_v59, %s8073_s8  ;;  %v7196_v59 = vunpack.i.h.bf16 %v9012_v47  ;;  %v5141_v35 = vsel %vm690_vm1, %v7995_v34, %v7181_v51  ;;  %v7236_v47 = vunpack.i.h.bf16 %v9151_v56  ;;  %v77_v56 = vld [vmem:[%s11562_s0 + $0x188] sm:$0xff]  ;;  %v5205_v51 = vsel %vm5192_vm5, %v5140_v52, %v7195_v2 }
 0x185   :  { %v594_v62 = vadd.f32 %v8204_v23, %v529_v25  ;;  %7453 = vrot.lane.b32.xlu0 %v7452_v31, %s8073_s8  ;;  %6973 = vmatmul.msk.bf16.gmra.mxu3 %vm690_vm1, %v5555_v58  ;;  %v7249_v50 = vpop.permute.xlu1 %7248  ;;  %v7245_v58 = vunpack.i.l.bf16 %v9237_v11  ;;  %v9292_v25 = vand.u32 15, %v1070_v4  ;;  %v5334_v32 = vsel %vm690_vm1, %v7996_v54, %v7230_v16  ;;  %v7997_v4 = vld [vmem:[#allocation2 + $0x88] sm:$0xff] }
 0x186   :  { %6872 = vmatmul.msk.f32.gmra.mxu0 %vm94_vm0, %v76_v13  ;;  %v9270_v57 = vpop.permute.xlu2 %7283  ;;  %v7251_v61 = vunpack.i.h.bf16 %v7249_v50  ;;  %v7250_v31 = vunpack.i.l.bf16 %v7249_v50  ;;  %v5206_v11 = vsel %vm5192_vm5, %v5141_v35, %v7196_v59  ;;  %v5270_v40 = vsel %vm5257_vm6, %v5205_v51, %v7235_v44  ;;  %v9315_v16 = vld [vmem:[#allocation2 + $0x10f] sm:$0xff] }
 0x187   :  { %v658_v39 = vmax.f32 %v594_v62, 0.0  ;;  %v9276_v55 = vpop.permute.xlu0 %7253  ;;  %v9278_v41 = vpop.f32.mrf.mxu3  ;;  %v5398_v59 = vsel %vm5192_vm5, %v5334_v32, %v7245_v58  ;;  %vm2526_vm10 = vcmp.ge.s32.totalorder %v9292_v25, 1  ;;  %v7211_v54 = vunpack.i.h.bf16 %v9226_v37 }
 0x188   :  { %v2717_v42 = vld [vmem:[#allocation2 + $0x118] sm:$0xff]  ;;  %v5462_v35 = vsel %vm5257_vm6, %v5398_v59, %v7250_v31  ;;  %v7210_v32 = vunpack.i.l.bf16 %v9226_v37  ;;  %v7256_v27 = vunpack.i.h.bf16 %v9276_v55  ;;  %v7225_v59 = vunpack.i.l.bf16 %v9199_v3 }
 0x189   :  { %731 = vst.msk [vmem:[#allocation2 + $0x120] sm:$0xff] %vm690_vm1, %v658_v39  ;;  %v7477_v19 = vpack.i.bf16 %v2717_v42, %v2716_v53  ;;  %v5271_v53 = vsel %vm5257_vm6, %v5206_v11, %v7236_v47  ;;  %v5335_v39 = vsel %vm690_vm1, %v7997_v4, %v7231_v29  ;;  %v3098_v29 = vsel %vm2520_vm4, %v9172_v20, 0.0  ;;  %v9327_v44 = vld [vmem:[#allocation2 + $0x117] sm:$0xff] }
 0x18a   :  { %v403_v9 = vpop.f32.mrf.mxu0  ;;  %v5399_v46 = vsel %vm5192_vm5, %v5335_v39, %v7246_v24  ;;  %v799_v11 = vadd.s32 280, %v8200_v21  ;;  %v800_v39 = vadd.s32 288, %v8200_v21 }
 0x18b   :  { %v530_v13 = vmul.f32 %v8202_v22, %v403_v9  ;;  %7468 = vrot.lane.b32.xlu1 %v7467_v63, %s8071_s9  ;;  %v5463_v47 = vsel %vm5257_vm6, %v5399_v46, %v7251_v61  ;;  %v5532_v63 = vpack.c.bf16 %v5271_v53, %v5270_v40  ;;  %v3360_v9 = vsel %vm2520_vm4, %v9315_v16, 0.0 }
 0x18c   :  { %7463 = vrot.lane.b32.xlu2 %v7462_v14, %s8072_s11  ;;  %v2844_v14 = vld [vmem:[#allocation2 + $0x111] sm:$0xff]  ;;  %v797_v61 = vadd.s32 264, %v8200_v21  ;;  %v11579_v40 = vmov 0.0   ;;  %v1077_v37 = vand.u32 255, %v799_v11 }
 0x18d   :  { %v595_v62 = vadd.f32 %v8204_v23, %v530_v13  ;;  %7478 = vrot.lane.b32.xlu0 %v7477_v19, %s8073_s8  ;;  %v9305_v50 = vpop.permute.xlu1 %7258  ;;  %v7482_v19 = vpack.i.bf16 %v9235_v7, %v3098_v29  ;;  %v5533_v13 = vpack.c.bf16 %v5463_v47, %v5462_v35 }
 0x18e   :  { %6873 = vmatmul.msk.f32.gmra.mxu0 %vm94_vm0, %v77_v56  ;;  %v9311_v2 = vpop.permute.xlu2 %7303  ;;  %v7472_v56 = vpack.i.bf16 %v9327_v44, %v3360_v9  ;;  %v1063_v4 = vand.u32 255, %v797_v61 }
 0x18f   :  { %v659_v42 = vmax.f32 %v595_v62, 0.0  ;;  %v9318_v52 = vpop.permute.xlu0 %7263  ;;  %v9320_v34 = vpop.f32.mrf.mxu3 }
 0x190   :  { %v2845_v24 = vld [vmem:[#allocation2 + $0x119] sm:$0xff]  ;;  %v7266_v29 = vunpack.i.h.bf16 %v9318_v52  ;;  %v7265_v35 = vunpack.i.l.bf16 %v9318_v52  ;;  %v5142_v52 = vsel %vm690_vm1, %v8559_v48, %v7210_v32  ;;  %v9380_v11 = vand.u32 15, %v1063_v4  ;;  %v8000_v48 = vld [vmem:[#allocation2 + $0x90] sm:$0xff] }
 0x191   :  { %v9330_v58 = vld [vmem:[#allocation2 + $0x11f] sm:$0xff]  ;;  %732 = vst.msk [vmem:[#allocation2 + $0x128] sm:$0xff] %vm690_vm1, %v659_v42  ;;  %v3557_v20 = vsel %vm2905_vm8, %v2845_v24, 0.0  ;;  %v3169_v9 = vsel %vm2907_vm9, %v2845_v24, 0.0  ;;  %v7255_v24 = vunpack.i.l.bf16 %v9276_v55  ;;  %v7280_v4 = vunpack.i.l.bf16 %v9231_v33 }
 0x192   :  { %v9342_v31 = vsel %vm2526_vm10, %v9330_v58, 0.0  ;;  %v406_v7 = vpop.f32.mrf.mxu0  ;;  %v5558_v51 = vpack.c.bf16 %v3557_v20, %v2844_v14  ;;  %v7226_v20 = vunpack.i.h.bf16 %v9199_v3  ;;  %v5336_v32 = vsel %vm690_vm1, %v8000_v48, %v7265_v35  ;;  %v79_v55 = vld [vmem:[%s11562_s0 + $0x198] sm:$0xff] }
 0x193   :  { %v531_v15 = vmul.f32 %v8202_v22, %v406_v7  ;;  %5889 = vmatmul.bf16.gmra.mxu1 %v5532_v63  ;;  %7483 = vrot.lane.b32.xlu1 %v7482_v19, %s8073_s8  ;;  %v5207_v35 = vsel %vm5192_vm5, %v5142_v52, %v7225_v59  ;;  %vm2909_vm11 = vcmp.lt.s32.totalorder %v9380_v11, 15 }
 0x194   :  { %6058 = vmatmul.bf16.gmra.mxu2 %v5533_v13  ;;  %7473 = vrot.lane.b32.xlu2 %v7472_v56, %s8072_s11  ;;  %v9374_v13 = vadd.s32 256, %v8200_v21  ;;  %v7998_v56 = vld [vmem:[#allocation2 + $0x87] sm:$0xff] }
 0x195   :  { %v596_v62 = vadd.f32 %v8204_v23, %v531_v15  ;;  %7488 = vrot.lane.b32.xlu0 %v11579_v40, %s8072_s11  ;;  %6974 = vmatmul.msk.bf16.gmra.mxu3 %vm690_vm1, %v5558_v51  ;;  %v7274_v53 = vpop.permute.xlu1 %7273  ;;  %v5143_v51 = vsel %vm690_vm1, %v7998_v56, %v7211_v54  ;;  %v1084_v15 = vand.u32 255, %v800_v39 }
 0x196   :  { %6874 = vmatmul.msk.f32.gmra.mxu0 %vm94_vm0, %v78_v10  ;;  %v9362_v42 = vpop.permute.xlu2 %7318  ;;  %v7276_v61 = vunpack.i.h.bf16 %v7274_v53  ;;  %v7275_v7 = vunpack.i.l.bf16 %v7274_v53  ;;  %v9384_v53 = vand.u32 15, %v1077_v37  ;;  %v1056_v52 = vand.u32 255, %v9374_v13 }
 0x197   :  { %v660_v47 = vmax.f32 %v596_v62, 0.0  ;;  %v9366_v63 = vpop.permute.xlu0 %7268  ;;  %v9368_v19 = vpop.f32.mrf.mxu3  ;;  %v7497_v62 = vpack.i.bf16 %v3169_v9, %v2844_v14  ;;  %v7281_v14 = vunpack.i.h.bf16 %v9231_v33  ;;  %v5208_v9 = vsel %vm5192_vm5, %v5143_v51, %v7226_v20 }
 0x198   :  { %v5400_v3 = vsel %vm5192_vm5, %v5336_v32, %v7275_v7  ;;  %v5272_v33 = vsel %vm5257_vm6, %v5207_v35, %v7255_v24  ;;  %v5273_v7 = vsel %vm5257_vm6, %v5208_v9, %v7256_v27  ;;  %vm2911_vm12 = vcmp.lt.s32.totalorder %v9384_v53, 15  ;;  %v2846_v32 = vld [vmem:[#allocation2 + $0x121] sm:$0xff] }
 0x199   :  { %733 = vst.msk [vmem:[#allocation2 + $0x130] sm:$0xff] %vm690_vm1, %v660_v47  ;;  %v7999_v47 = vld [vmem:[#allocation2 + $0x98] sm:$0xff]  ;;  %v5464_v59 = vsel %vm5257_vm6, %v5400_v3, %v7280_v4  ;;  %v7036_v51 = vunpack.i.h.bf16 %v8633_v36  ;;  %v3100_v27 = vsel %vm2522_vm7, %v9315_v16, 0.0  ;;  %v11580_v4 = vunpack.i.l.bf16 %v8697_v43  ;;  %v80_v35 = vld [vmem:[%s11562_s0 + $0x1a0] sm:$0xff] }
 0x19a   :  { %v409_v10 = vpop.f32.mrf.mxu0  ;;  %v5337_v46 = vsel %vm690_vm1, %v7999_v47, %v7266_v29  ;;  %v5535_v47 = vpack.c.bf16 %v5273_v7, %v5272_v33  ;;  %v7502_v48 = vpack.i.bf16 %v9327_v44, %v3100_v27  ;;  %v11581_v44 = vunpack.i.h.bf16 %v8697_v43  ;;  %v84_v53 = vld [vmem:[%s11562_s0 + $0x1c0] sm:$0xff] }
 0x19b   :  { %v532_v54 = vmul.f32 %v8202_v22, %v409_v10  ;;  %7493 = vrot.lane.b32.xlu1 %v11579_v40, %s8073_s8  ;;  %v5401_v39 = vsel %vm5192_vm5, %v5337_v46, %v7276_v61  ;;  %v9412_v46 = vand.u32 15, %v1084_v15  ;;  %v5160_v3 = vsel %vm690_vm1, 0.0, %v11580_v4 }
 0x19c   :  { %7498 = vrot.lane.b32.xlu2 %v7497_v62, %s8071_s9  ;;  %v5465_v20 = vsel %vm5257_vm6, %v5401_v39, %v7281_v14  ;;  %v7035_v62 = vunpack.i.l.bf16 %v8633_v36  ;;  %v5161_v39 = vsel %vm690_vm1, 0.0, %v11581_v44  ;;  %v9445_v9 = vand.u32 15, %v1056_v52 }
 0x19d   :  { %v597_v37 = vadd.f32 %v8204_v23, %v532_v54  ;;  %v9401_v29 = vpop.permute.xlu1 %7288  ;;  %vm2528_vm13 = vcmp.ge.s32.totalorder %v9412_v46, 1  ;;  %v9449_v33 = vadd.s32 304, %v8200_v21  ;;  %v7241_v27 = vunpack.i.h.bf16 %v9193_v6 }
 0x19e   :  { %6875 = vmatmul.msk.f32.gmra.mxu0 %vm94_vm0, %v79_v55  ;;  %v9407_v56 = vpop.permute.xlu2 %7323  ;;  %v5536_v55 = vpack.c.bf16 %v5465_v20, %v5464_v59  ;;  %v7291_v7 = vunpack.i.h.bf16 %v9401_v29  ;;  %v7290_v43 = vunpack.i.l.bf16 %v9401_v29  ;;  %v11572_v59 = vmov 0.0|0.0  }
 0x19f   :  { %v661_v61 = vmax.f32 %v597_v37, 0.0  ;;  %v9414_v10 = vpop.permute.xlu0 %7308  ;;  %v9425_v15 = vpop.f32.mrf.mxu3  ;;  %vm2524_vm14 = vcmp.ge.s32.totalorder %v9445_v9, 1  ;;  %v7306_v4 = vunpack.i.h.bf16 %v9311_v2  ;;  %v1098_v44 = vand.u32 255, %v9449_v33  ;;  %v2399_v9 = vld [vmem:[#allocation2 + $0x127] sm:$0xff] }
 0x1a0   :  { %v2847_v24 = vld [vmem:[#allocation2 + $0x129] sm:$0xff] }
 0x1a1   :  { %734 = vst.msk [vmem:[#allocation2 + $0x138] sm:$0xff] %vm690_vm1, %v661_v61  ;;  %v3171_v13 = vsel %vm2909_vm11, %v2847_v24, 0.0  ;;  %v3039_v54 = vsel %vm2911_vm12, %v2847_v24, 0.0  ;;  %v9432_v16 = vld [vmem:[#allocation2 + $0x12f] sm:$0xff]  ;;  %v7240_v24 = vunpack.i.l.bf16 %v9193_v6 }
 0x1a2   :  { %v412_v36 = vpop.f32.mrf.mxu0  ;;  %v7517_v14 = vpack.i.bf16 %v3171_v13, %v2846_v32  ;;  %v7512_v45 = vpack.i.bf16 %v3039_v54, %v2846_v32  ;;  %v9461_v52 = vsel %vm2528_vm13, %v9432_v16, 0.0  ;;  %v9473_v32 = vsel %vm5192_vm5, %v5161_v39, %v7036_v51  ;;  %v2719_v6 = vld [vmem:[#allocation2 + $0x128] sm:$0xff] }
 0x1a3   :  { %v533_v37 = vmul.f32 %v8202_v22, %v412_v36  ;;  %5894 = vmatmul.bf16.gmra.mxu1 %v5535_v47  ;;  %11582 = vst [vmem:[#allocation8_spill] sm:$0xff] %v9461_v52  ;;  %v2720_v47 = vld [vmem:[#allocation2 + $0x130] sm:$0xff]  ;;  %v7261_v13 = vunpack.i.h.bf16 %v9305_v50  ;;  %v8001_v39 = vld [vmem:[#allocation2 + $0xa8] sm:$0xff] }
 0x1a4   :  { %6063 = vmatmul.bf16.gmra.mxu2 %v5536_v55  ;;  %7503 = vrot.lane.b32.xlu2 %v7502_v48, %s8073_s8  ;;  %v9470_v48 = vsel %vm5192_vm5, %v5160_v3, %v7035_v62  ;;  %11584 = vst [vmem:[#allocation10_spill] sm:$0xff] %v9473_v32  ;;  %v2718_v55 = vld [vmem:[#allocation2 + $0x120] sm:$0xff]  ;;  %v7305_v62 = vunpack.i.l.bf16 %v9311_v2  ;;  %v5860_v2 = vpop.f32.mrf.mxu1 }
 0x1a5   :  { %v598_v61 = vadd.f32 %v8204_v23, %v533_v37  ;;  %6272 = vmatmul.bf16.gmra.mxu3 %v11572_v59  ;;  %7518 = vrot.lane.b32.xlu0 %v7517_v14, %s8071_s9  ;;  %v9456_v20 = vpop.permute.xlu1 %7293  ;;  %11583 = vst [vmem:[#allocation9_spill] sm:$0xff] %v9470_v48  ;;  %v801_v14 = vadd.s32 296, %v8200_v21  ;;  %v5339_v37 = vsel %vm690_vm1, %v8001_v39, %v7291_v7 }
 0x1a6   :  { %7513 = vrot.lane.b32.xlu1 %v7512_v45, %s8072_s11  ;;  %6876 = vmatmul.msk.f32.gmra.mxu0 %vm94_vm0, %v80_v35  ;;  %v9467_v29 = vpop.permute.xlu2 %7328  ;;  %v7260_v45 = vunpack.i.l.bf16 %v9305_v50  ;;  %v8002_v35 = vld [vmem:[#allocation2 + $0xa0] sm:$0xff]  ;;  %v3364_v50 = vsel %vm2524_vm14, %v9432_v16, 0.0  ;;  %v7296_v40 = vunpack.i.h.bf16 %v9456_v20  ;;  %v7295_v52 = vunpack.i.l.bf16 %v9456_v20  ;;  %v81_v20 = vld [vmem:[%s11562_s0 + $0x1a8] sm:$0xff] }
 0x1a7   :  { %v662_v54 = vmax.f32 %v598_v61, 0.0  ;;  %v9476_v36 = vpop.permute.xlu0 %7313  ;;  %v5338_v61 = vsel %vm690_vm1, %v8002_v35, %v7290_v43  ;;  %v7507_v32 = vpack.i.bf16 %v2719_v6, %v2718_v55  ;;  %v5610_v43 = vld [vmem:[%s11565_s4] sm:$0x3]  ;;  %v9504_v39 = vpop.f32.mrf.mxu3  ;;  %v8003_v55 = vld [vmem:[#allocation2 + $0x97] sm:$0xff] }
 0x1a8   :  { %v2721_v3 = vld [vmem:[#allocation2 + $0x138] sm:$0xff]  ;;  %11585 = vst [vmem:[#allocation11_spill] sm:$0xff] %v9504_v39  ;;  %v5145_v6 = vsel %vm690_vm1, %v8003_v55, %v7241_v27  ;;  %v9519_v48 = vperm.slane %v5610_v43, 0 }
 0x1a9   :  { %v9483_v51 = vld [vmem:[#allocation2 + $0x137] sm:$0xff]  ;;  %735 = vst.msk [vmem:[#allocation2 + $0x140] sm:$0xff] %vm690_vm1, %v662_v54  ;;  %v9489_v59 = vpack.i.bf16 %v2721_v3, %v2720_v47  ;;  %v5144_v47 = vsel %vm690_vm1, %v8644_v0, %v7240_v24  ;;  %v7311_v54 = vunpack.i.h.bf16 %v9414_v10  ;;  %v7310_v3 = vunpack.i.l.bf16 %v9414_v10 }
 0x1aa   :  { %v415_v33 = vpop.f32.mrf.mxu0  ;;  %v7527_v7 = vpack.i.bf16 %v9483_v51, %v3364_v50  ;;  %v5402_v50 = vsel %vm5192_vm5, %v5338_v61, %v7305_v62  ;;  %v5403_v0 = vsel %vm5192_vm5, %v5339_v37, %v7306_v4  ;;  %v1091_v24 = vand.u32 255, %v801_v14  ;;  %v9551_v55 = vld [vmem:[#allocation2 + $0x131] sm:$0xff] }
 0x1ab   :  { %v534_v35 = vmul.f32 %v8202_v22, %v415_v33  ;;  %v5209_v39 = vsel %vm5192_vm5, %v5144_v47, %v7260_v45  ;;  %v5210_v27 = vsel %vm5192_vm5, %v5145_v6, %v7261_v13  ;;  %v3102_v37 = vsel %vm2524_vm14, %v9330_v58, 0.0 }
 0x1ac   :  { %7508 = vrot.lane.b32.xlu2 %v7507_v32, %s8071_s9  ;;  %v5274_v14 = vsel %vm5257_vm6, %v5209_v39, %v7295_v52  ;;  %v5275_v62 = vsel %vm5257_vm6, %v5210_v27, %v7296_v40  ;;  %v9532_v61 = vand.u32 15, %v1098_v44  ;;  %v7321_v52 = vunpack.i.h.bf16 %v9362_v42  ;;  %v5862_v27 = vpop.f32.mrf.mxu1 }
 0x1ad   :  { %v599_v10 = vadd.f32 %v8204_v23, %v534_v35  ;;  %7523 = vrot.lane.b32.xlu0 %v9489_v59, %s8071_s9  ;;  %v9517_v33 = vpop.permute.xlu1 %7298  ;;  %v5467_v35 = vsel %vm5257_vm6, %v5403_v0, %v7311_v54  ;;  %v7320_v40 = vunpack.i.l.bf16 %v9362_v42  ;;  %v9543_v58 = vand.u32 15, %v1091_v24 }
 0x1ae   :  { %7528 = vrot.lane.b32.xlu1 %v7527_v7, %s8072_s11  ;;  %6877 = vmatmul.msk.f32.gmra.mxu0 %vm94_vm0, %v81_v20  ;;  %v6029_v32 = vpop.f32.mrf.mxu2  ;;  %v9525_v4 = vpop.permute.xlu2 %7368  ;;  %v5466_v7 = vsel %vm5257_vm6, %v5402_v50, %v7310_v3  ;;  %v7271_v20 = vunpack.i.h.bf16 %v9366_v63  ;;  %v7270_v44 = vunpack.i.l.bf16 %v9366_v63  ;;  %v5538_v3 = vpack.c.bf16 %v5275_v62, %v5274_v14  ;;  %v6723_v62 = vld [vmem:[%s11566_s5 + $0xb0] sm:$0xff] }
 0x1af   :  { %v663_v45 = vmax.f32 %v599_v10, 0.0  ;;  %v6030_v47 = vadd.f32 %v6029_v32, %v5860_v2  ;;  %v9534_v13 = vpop.permute.xlu0 %7333  ;;  %v5539_v6 = vpack.c.bf16 %v5467_v35, %v5466_v7  ;;  %vm2530_vm15 = vcmp.ge.s32.totalorder %v9532_v61, 1  ;;  %v82_v10 = vld [vmem:[%s11562_s0 + $0x1b0] sm:$0xff]  ;;  %v9582_v35 = vpop.f32.mrf.mxu3  ;;  %6764 = vmatpush.msrb.mxu3 %v6723_v62 }
 0x1b0   :  { %v9541_v39 = vld [vmem:[#allocation2 + $0x139] sm:$0xff]  ;;  %v7286_v63 = vunpack.i.h.bf16 %v9270_v57  ;;  %v7285_v0 = vunpack.i.l.bf16 %v9270_v57  ;;  %v7537_v24 = vpack.i.bf16 %v2399_v9, %v3102_v37  ;;  %v9565_v32 = vperm.slane %v5610_v43, 1  ;;  %v8005_v43 = vld [vmem:[#allocation2 + $0xb0] sm:$0xff]  ;;  %11586 = vst [vmem:[#allocation12_spill] sm:$0xff] %v9582_v35 }
 0x1b1   :  { %v3561_v2 = vsel %vm2909_vm11, %v9541_v39, 0.0  ;;  %736 = vst.msk [vmem:[#allocation2 + $0x148] sm:$0xff] %vm690_vm1, %v663_v45  ;;  %v6199_v54 = vadd.f32 %v8858_v17, %v6030_v47  ;;  %v9554_v50 = vld [vmem:[#allocation2 + $0x13f] sm:$0xff]  ;;  %v3104_v17 = vsel %vm2526_vm10, %v9432_v16, 0.0  ;;  %v804_v16 = vadd.s32 320, %v8200_v21 }
 0x1b2   :  { %v5564_v42 = vpack.c.bf16 %v3561_v2, %v9551_v55  ;;  %v7542_v57 = vpack.i.bf16 %v9483_v51, %v3104_v17  ;;  %v8004_v37 = vld [vmem:[#allocation2 + $0xb8] sm:$0xff]  ;;  %v9579_v47 = vsel %vm690_vm1, %v8005_v43, %v7320_v40  ;;  %v9591_v51 = vsel %vm2530_vm15, %v9554_v50, 0.0  ;;  %v8006_v40 = vld [vmem:[#allocation2 + $0xa7] sm:$0xff] }
 0x1b3   :  { %v418_v11 = vpop.f32.mrf.mxu0  ;;  %5899 = vmatmul.bf16.gmra.mxu1 %v5538_v3  ;;  %v9576_v45 = vsel %vm690_vm1, %v8004_v37, %v7321_v52  ;;  %v6359_v7 = vmul.f32 %v9519_v48, %v6199_v54  ;;  %11587 = vst [vmem:[#allocation13_spill] sm:$0xff] %v9591_v51  ;;  %v5146_v52 = vsel %vm690_vm1, %v8703_v38, %v7270_v44  ;;  %vm2913_vm2 = vcmp.lt.s32.totalorder %v9543_v58, 15 }
 0x1b4   :  { %v535_v14 = vmul.f32 %v8202_v22, %v418_v11  ;;  %6068 = vmatmul.bf16.gmra.mxu2 %v5539_v6  ;;  %7533 = vrot.lane.b32.xlu2 %v9489_v59, %s8073_s8  ;;  %v5147_v9 = vsel %vm690_vm1, %v8006_v40, %v7271_v20  ;;  %v2722_v6 = vld [vmem:[#allocation2 + $0x140] sm:$0xff]  ;;  %v7325_v11 = vunpack.i.l.bf16 %v9407_v56  ;;  %v803_v20 = vadd.s32 312, %v8200_v21 }
 0x1b5   :  { %7538 = vrot.lane.b32.xlu0 %v7537_v24, %s8073_s8  ;;  %6975 = vmatmul.msk.bf16.gmra.mxu3 %vm690_vm1, %v5564_v42  ;;  %v9586_v59 = vpop.permute.xlu1 %7338  ;;  %v7326_v42 = vunpack.i.h.bf16 %v9407_v56  ;;  %v3173_v17 = vsel %vm2911_vm12, %v9541_v39, 0.0  ;;  %v1112_v37 = vand.u32 255, %v804_v16  ;;  %v6424_v56 = vadd.f32 %v9565_v32, %v6359_v7 }
 0x1b6   :  { %v600_v2 = vadd.f32 %v8204_v23, %v535_v14  ;;  %7543 = vrot.lane.b32.xlu1 %v7542_v57, %s8073_s8  ;;  %6878 = vmatmul.msk.f32.gmra.mxu0 %vm94_vm0, %v82_v10  ;;  %v6031_v54 = vpop.f32.mrf.mxu2  ;;  %v9599_v3 = vpop.permute.xlu2 %7373  ;;  %v3366_v57 = vsel %vm2526_vm10, %v9554_v50, 0.0  ;;  %v7336_v40 = vunpack.i.h.bf16 %v9534_v13  ;;  %v5212_v25 = vsel %vm5192_vm5, %v5147_v9, %v7286_v63 }
 0x1b7   :  { %v6032_v38 = vadd.f32 %v6031_v54, %v5862_v27  ;;  %v9604_v44 = vpop.permute.xlu0 %7343  ;;  %v5211_v54 = vsel %vm5192_vm5, %v5146_v52, %v7285_v0  ;;  %v7341_v16 = vunpack.i.h.bf16 %v9586_v59  ;;  %v7340_v7 = vunpack.i.l.bf16 %v9586_v59  ;;  %v6722_v0 = vld [vmem:[%s11566_s5 + $0xa8] sm:$0xff] }
 0x1b8   :  { %v664_v24 = vmax.f32 %v600_v2, 0.0  ;;  %v2723_v10 = vld [vmem:[#allocation2 + $0x148] sm:$0xff]  ;;  %v7335_v2 = vunpack.i.l.bf16 %v9534_v13  ;;  %v5277_v63 = vsel %vm5257_vm6, %v5212_v25, %v7326_v42  ;;  %v1105_v59 = vand.u32 255, %v803_v20  ;;  %6744 = vmatpush.msrb.mxu0 %v6722_v0 }
 0x1b9   :  { %v9610_v14 = vld [vmem:[#allocation2 + $0x147] sm:$0xff]  ;;  %v6201_v27 = vadd.f32 %v8887_v8, %v6032_v38  ;;  %v9617_v62 = vpack.i.bf16 %v2723_v10, %v2722_v6  ;;  %v83_v38 = vld [vmem:[%s11562_s0 + $0x1b8] sm:$0xff]  ;;  %v5276_v10 = vsel %vm5257_vm6, %v5211_v54, %v7325_v11  ;;  %v7330_v52 = vunpack.i.l.bf16 %v9467_v29 }
 0x1ba   :  { %v7557_v43 = vpack.i.bf16 %v9610_v14, %v3366_v57  ;;  %737 = vst.msk [vmem:[#allocation2 + $0x150] sm:$0xff] %vm690_vm1, %v664_v24  ;;  %v7547_v24 = vpack.i.bf16 %v3173_v17, %v9551_v55  ;;  %v6488_v9 = vmax.f32 %v6424_v56, 0.0  ;;  %v9645_v17 = vand.u32 15, %v1112_v37 }
 0x1bb   :  { %v6360_v8 = vmul.f32 %v9519_v48, %v6201_v27  ;;  %v421_v6 = vpop.f32.mrf.mxu0  ;;  %v7300_v42 = vunpack.i.l.bf16 %v9517_v33  ;;  %v9648_v27 = vpop.f32.mrf.mxu1  ;;  %v5404_v56 = vsel %vm5192_vm5, %v9579_v47, %v7335_v2  ;;  %v5405_v54 = vsel %vm5192_vm5, %v9576_v45, %v7336_v40 }
 0x1bc   :  { %v536_v13 = vmul.f32 %v8202_v22, %v421_v6  ;;  %7558 = vrot.lane.b32.xlu2 %v7557_v43, %s8072_s11  ;;  %v5469_v6 = vsel %vm5257_vm6, %v5405_v54, %v7341_v16  ;;  %v5541_v47 = vpack.c.bf16 %v5277_v63, %v5276_v10  ;;  %v9669_v2 = vand.u32 15, %v1105_v59  ;;  %v9681_v10 = vld [vmem:[#allocation2 + $0x141] sm:$0xff] }
 0x1bd   :  { %v6425_v57 = vadd.f32 %v9565_v32, %v6360_v8  ;;  %7568 = vrot.lane.b32.xlu0 %v9617_v62, %s8073_s8  ;;  %v9643_v11 = vpop.permute.xlu1 %7348  ;;  %v5468_v8 = vsel %vm5257_vm6, %v5404_v56, %v7340_v7  ;;  %v7301_v45 = vunpack.i.h.bf16 %v9517_v33  ;;  %v6552_v40 = vsel %vm5192_vm5, %v6488_v9, 0.0 }
 0x1be   :  { %v601_v43 = vadd.f32 %v8204_v23, %v536_v13  ;;  %7548 = vrot.lane.b32.xlu1 %v7547_v24, %s8071_s9  ;;  %6879 = vmatmul.msk.f32.gmra.mxu0 %vm94_vm0, %v83_v38  ;;  %v9653_v20 = vpop.permute.xlu2 %7393  ;;  %v3041_v13 = vsel %vm2913_vm2, %v9541_v39, 0.0  ;;  %v7331_v38 = vunpack.i.h.bf16 %v9467_v29  ;;  %v9667_v24 = vpop.f32.mrf.mxu3  ;;  %vm2532_vm3 = vcmp.ge.s32.totalorder %v9645_v17, 1 }
 0x1bf   :  { %v6489_v37 = vmax.f32 %v6425_v57, 0.0  ;;  %v9659_v25 = vpop.permute.xlu0 %7353  ;;  %11588 = vst [vmem:[#allocation14_spill] sm:$0xff] %v9667_v24  ;;  %v5542_v29 = vpack.c.bf16 %v5469_v6, %v5468_v8  ;;  %v7562_v39 = vpack.i.bf16 %v3041_v13, %v9551_v55  ;;  %v7316_v59 = vunpack.i.h.bf16 %v9476_v36  ;;  %v8009_v24 = vld [vmem:[#allocation2 + $0xc0] sm:$0xff] }
 0x1c0   :  { %v665_v0 = vmax.f32 %v601_v43, 0.0  ;;  %v9691_v9 = vsel %vm690_vm1, %v8848_v28, %v7330_v52  ;;  %v5148_v43 = vsel %vm690_vm1, %v8765_v5, %v7300_v42  ;;  %v7315_v54 = vunpack.i.l.bf16 %v9476_v36  ;;  %v8008_v5 = vld [vmem:[#allocation2 + $0xb7] sm:$0xff] }
 0x1c1   :  { %v6553_v7 = vsel %vm5192_vm5, %v6489_v37, 0.0  ;;  %v9674_v57 = vld [vmem:[#allocation2 + $0x149] sm:$0xff]  ;;  %v5149_v52 = vsel %vm690_vm1, %v8008_v5, %v7301_v45  ;;  %v7345_v42 = vunpack.i.l.bf16 %v9604_v44  ;;  %v805_v13 = vadd.s32 328, %v8200_v21 }
 0x1c2   :  { %v9677_v16 = vadd.f32 %v6553_v7, %v6552_v40  ;;  %738 = vst.msk [vmem:[#allocation2 + $0x158] sm:$0xff] %vm690_vm1, %v665_v0  ;;  %v3563_v33 = vsel %vm2911_vm12, %v9674_v57, 0.0  ;;  %v9686_v63 = vld [vmem:[#allocation2 + $0x14f] sm:$0xff]  ;;  %v8007_v37 = vld [vmem:[#allocation2 + $0xc7] sm:$0xff]  ;;  %v5213_v45 = vsel %vm5192_vm5, %v5148_v43, %v7315_v54  ;;  %vm2915_vm4 = vcmp.lt.s32.totalorder %v9669_v2, 15 }
 0x1c3   :  { %v424_v56 = vpop.f32.mrf.mxu0  ;;  %5904 = vmatmul.bf16.gmra.mxu1 %v5541_v47  ;;  %v5567_v55 = vpack.c.bf16 %v3563_v33, %v9681_v10  ;;  %v9701_v8 = vsel %vm690_vm1, %v8007_v37, %v7331_v38  ;;  %v9712_v36 = vsel %vm2532_vm3, %v9686_v63, 0.0  ;;  %v7355_v38 = vunpack.i.l.bf16 %v9659_v25  ;;  %v2724_v43 = vld [vmem:[#allocation2 + $0x150] sm:$0xff] }
 0x1c4   :  { %v537_v28 = vmul.f32 %v8202_v22, %v424_v56  ;;  %6073 = vmatmul.bf16.gmra.mxu2 %v5542_v29  ;;  %7563 = vrot.lane.b32.xlu2 %v7562_v39, %s8072_s11  ;;  %11589 = vst [vmem:[#allocation15_spill] sm:$0xff] %v9712_v36  ;;  %v7346_v40 = vunpack.i.h.bf16 %v9604_v44  ;;  %v7356_v7 = vunpack.i.h.bf16 %v9659_v25  ;;  %v5867_v56 = vpop.f32.mrf.mxu1  ;;  %v5214_v54 = vsel %vm5192_vm5, %v5149_v52, %v7316_v59 }
 0x1c5   :  { %6976 = vmatmul.msk.bf16.gmra.mxu3 %vm690_vm1, %v5567_v55  ;;  %v7364_v6 = vpop.permute.xlu1 %7363  ;;  %v3368_v44 = vsel %vm2528_vm13, %v9686_v63, 0.0  ;;  %v5278_v5 = vsel %vm5257_vm6, %v5213_v45, %v7345_v42  ;;  %v1119_v51 = vand.u32 255, %v805_v13  ;;  %v806_v36 = vadd.s32 336, %v8200_v21  ;;  %v85_v45 = vld [vmem:[%s11562_s0 + $0x1c8] sm:$0xff] }
 0x1c6   :  { %v602_v0 = vadd.f32 %v8204_v23, %v537_v28  ;;  %7553 = vrot.lane.b32.xlu1 %v9617_v62, %s8071_s9  ;;  %6880 = vmatmul.msk.f32.gmra.mxu0 %vm94_vm0, %v84_v53  ;;  %v9719_v47 = vpop.permute.xlu2 %7408  ;;  %v7365_v29 = vunpack.i.l.bf16 %v7364_v6  ;;  %v3175_v62 = vsel %vm2913_vm2, %v9674_v57, 0.0  ;;  %v7366_v53 = vunpack.i.h.bf16 %v7364_v6 }
 0x1c7   :  { %v9725_v39 = vpop.permute.xlu0 %7358  ;;  %v6034_v33 = vpop.f32.mrf.mxu2  ;;  %v5342_v6 = vsel %vm690_vm1, %v8009_v24, %v7355_v38  ;;  %v7572_v52 = vpack.i.bf16 %v3175_v62, %v9681_v10  ;;  %v5279_v24 = vsel %vm5257_vm6, %v5214_v54, %v7346_v40  ;;  %v7370_v62 = vunpack.i.l.bf16 %v9525_v4 }
 0x1c8   :  { %v666_v55 = vmax.f32 %v602_v0, 0.0  ;;  %v6035_v37 = vadd.f32 %v6034_v33, %v9648_v27  ;;  %v9740_v0 = vpop.f32.mrf.mxu3  ;;  %v8010_v33 = vld [vmem:[#allocation2 + $0xc8] sm:$0xff]  ;;  %v5406_v38 = vsel %vm5192_vm5, %v5342_v6, %v7365_v29  ;;  %v3106_v40 = vsel %vm2528_vm13, %v9554_v50, 0.0 }
 0x1c9   :  { %v9732_v28 = vld [vmem:[#allocation2 + $0x157] sm:$0xff]  ;;  %11590 = vst [vmem:[#allocation16_spill] sm:$0xff] %v9740_v0  ;;  %v5343_v35 = vsel %vm690_vm1, %v8010_v33, %v7356_v7  ;;  %v9764_v29 = vand.u32 15, %v1119_v51  ;;  %v1126_v54 = vand.u32 255, %v806_v36  ;;  %v5544_v50 = vpack.c.bf16 %v5279_v24, %v5278_v5 }
 0x1ca   :  { %v2725_v25 = vld [vmem:[#allocation2 + $0x158] sm:$0xff]  ;;  %739 = vst.msk [vmem:[#allocation2 + $0x160] sm:$0xff] %vm690_vm1, %v666_v55  ;;  %v6204_v27 = vadd.f32 %v8933_v26, %v6035_v37  ;;  %v7582_v59 = vpack.i.bf16 %v9732_v28, %v3368_v44  ;;  %v7371_v55 = vunpack.i.h.bf16 %v9525_v4  ;;  %v5407_v7 = vsel %vm5192_vm5, %v5343_v35, %v7366_v53 }
 0x1cb   :  { %v427_v42 = vpop.f32.mrf.mxu0  ;;  %v7592_v13 = vpack.i.bf16 %v2725_v25, %v2724_v43  ;;  %v7587_v51 = vpack.i.bf16 %v9610_v14, %v3106_v40  ;;  %v5470_v36 = vsel %vm5257_vm6, %v5406_v38, %v7370_v62  ;;  %v3043_v5 = vsel %vm2915_vm4, %v9674_v57, 0.0  ;;  %v87_v0 = vld [vmem:[%s11562_s0 + $0x1d8] sm:$0xff] }
 0x1cc   :  { %v6361_v26 = vmul.f32 %v9519_v48, %v6204_v27  ;;  %v538_v37 = vmul.f32 %v8202_v22, %v427_v42  ;;  %7583 = vrot.lane.b32.xlu0 %v7582_v59, %s8072_s11  ;;  %7573 = vrot.lane.b32.xlu2 %v7572_v52, %s8071_s9  ;;  %v5471_v53 = vsel %vm5257_vm6, %v5407_v7, %v7371_v55  ;;  %v7351_v59 = vunpack.i.h.bf16 %v9643_v11 }
 0x1cd   :  { %v9759_v43 = vpop.permute.xlu1 %7378  ;;  %v7350_v52 = vunpack.i.l.bf16 %v9643_v11  ;;  %v9787_v14 = vand.u32 15, %v1126_v54  ;;  %v5545_v55 = vpack.c.bf16 %v5471_v53, %v5470_v36  ;;  %v9791_v11 = vld [vmem:[#allocation2 + $0x151] sm:$0xff]  ;;  %vm2917_vm8 = vcmp.lt.s32.totalorder %v9764_v29, 15 }
 0x1ce   :  { %v6426_v6 = vadd.f32 %v9565_v32, %v6361_v26  ;;  %v603_v27 = vadd.f32 %v8204_v23, %v538_v37  ;;  %7593 = vrot.lane.b32.xlu1 %v7592_v13, %s8073_s8  ;;  %6881 = vmatmul.msk.f32.gmra.mxu0 %vm94_vm0, %v85_v45  ;;  %v9772_v4 = vpop.permute.xlu2 %7413  ;;  %v7381_v62 = vunpack.i.h.bf16 %v9759_v43  ;;  %v7380_v58 = vunpack.i.l.bf16 %v9759_v43 }
 0x1cf   :  { %v9774_v35 = vpop.permute.xlu0 %7398  ;;  %v6036_v46 = vpop.f32.mrf.mxu2  ;;  %v5215_v53 = vsel %vm5192_vm5, %v9691_v9, %v7350_v52  ;;  %v5216_v43 = vsel %vm5192_vm5, %v9701_v8, %v7351_v59  ;;  %vm2534_vm7 = vcmp.ge.s32.totalorder %v9787_v14, 1  ;;  %v9832_v9 = vadd.s32 352, %v8200_v21  ;;  %v8011_v52 = vld [vmem:[#allocation2 + $0xd8] sm:$0xff] }
 0x1d0   :  { %v6490_v33 = vmax.f32 %v6426_v6, 0.0  ;;  %v667_v42 = vmax.f32 %v603_v27, 0.0  ;;  %v5870_v26 = vpop.f32.mrf.mxu1  ;;  %v6037_v37 = vadd.f32 %v6036_v46, %v5867_v56  ;;  %v86_v6 = vld [vmem:[%s11562_s0 + $0x1d0] sm:$0xff]  ;;  %v7395_v27 = vunpack.i.l.bf16 %v9653_v20  ;;  %v9804_v46 = vpop.f32.mrf.mxu3 }
 0x1d1   :  { %v9785_v24 = vld [vmem:[#allocation2 + $0x159] sm:$0xff]  ;;  %11591 = vst [vmem:[#allocation17_spill] sm:$0xff] %v9804_v46  ;;  %v7361_v8 = vunpack.i.h.bf16 %v9725_v39  ;;  %v7360_v59 = vunpack.i.l.bf16 %v9725_v39  ;;  %v7401_v39 = vunpack.i.h.bf16 %v9774_v35 }
 0x1d2   :  { %v6555_v38 = vsel %vm5192_vm5, %v6490_v33, 0.0  ;;  %740 = vst.msk [vmem:[#allocation2 + $0x168] sm:$0xff] %vm690_vm1, %v667_v42  ;;  %v3565_v7 = vsel %vm2913_vm2, %v9785_v24, 0.0  ;;  %v6206_v57 = vadd.f32 %v8973_v60, %v6037_v37  ;;  %v7597_v60 = vpack.i.bf16 %v3043_v5, %v9681_v10  ;;  %v9826_v33 = vld [vmem:[#allocation2 + $0x15f] sm:$0xff] }
 0x1d3   :  { %v6556_v56 = vadd.f32 %v6555_v38, %v9677_v16  ;;  %v430_v40 = vpop.f32.mrf.mxu0  ;;  %5909 = vmatmul.bf16.gmra.mxu1 %v5544_v50  ;;  %v5570_v54 = vpack.c.bf16 %v3565_v7, %v9791_v11  ;;  %v9829_v42 = vadd.s32 344, %v8200_v21  ;;  %v5345_v37 = vsel %vm690_vm1, %v8011_v52, %v7381_v62  ;;  %v2726_v7 = vld [vmem:[#allocation2 + $0x160] sm:$0xff] }
 0x1d4   :  { %v539_v16 = vmul.f32 %v8202_v22, %v430_v40  ;;  %7588 = vrot.lane.b32.xlu0 %v7587_v51, %s8073_s8  ;;  %6078 = vmatmul.bf16.gmra.mxu2 %v5545_v55  ;;  %v6362_v50 = vmul.f32 %v9519_v48, %v6206_v57  ;;  %v7411_v51 = vunpack.i.h.bf16 %v9719_v47  ;;  %v8012_v57 = vld [vmem:[#allocation2 + $0xd0] sm:$0xff]  ;;  %v3370_v25 = vsel %vm2530_vm15, %v9826_v33, 0.0 }
 0x1d5   :  { %7578 = vrot.lane.b32.xlu2 %v7592_v13, %s8071_s9  ;;  %6977 = vmatmul.msk.bf16.gmra.mxu3 %vm690_vm1, %v5570_v54  ;;  %v9813_v36 = vpop.permute.xlu1 %7383  ;;  %v5344_v40 = vsel %vm690_vm1, %v8012_v57, %v7380_v58 }
 0x1d6   :  { %v604_v10 = vadd.f32 %v8204_v23, %v539_v16  ;;  %7598 = vrot.lane.b32.xlu1 %v7597_v60, %s8072_s11  ;;  %6882 = vmatmul.msk.f32.gmra.mxu0 %vm94_vm0, %v86_v6  ;;  %v9824_v13 = vpop.permute.xlu2 %7418  ;;  %v6427_v5 = vadd.f32 %v9565_v32, %v6362_v50  ;;  %v3177_v60 = vsel %vm2915_vm4, %v9785_v24, 0.0  ;;  %v7385_v62 = vunpack.i.l.bf16 %v9813_v36 }
 0x1d7   :  { %v9838_v38 = vpop.permute.xlu0 %7403  ;;  %v6039_v55 = vpop.f32.mrf.mxu2  ;;  %v7602_v46 = vpack.i.bf16 %v3177_v60, %v9791_v11  ;;  %v8013_v60 = vld [vmem:[#allocation2 + $0xe8] sm:$0xff] }
 0x1d8   :  { %v668_v54 = vmax.f32 %v604_v10, 0.0  ;;  %v6040_v6 = vadd.f32 %v6039_v55, %v5870_v26  ;;  %v5872_v16 = vpop.f32.mrf.mxu1  ;;  %v6491_v44 = vmax.f32 %v6427_v5, 0.0  ;;  %v7386_v26 = vunpack.i.h.bf16 %v9813_v36 }
 0x1d9   :  { %v2727_v50 = vld [vmem:[#allocation2 + $0x168] sm:$0xff]  ;;  %v7400_v5 = vunpack.i.l.bf16 %v9774_v35 }
 0x1da   :  { %v9846_v52 = vld [vmem:[#allocation2 + $0x167] sm:$0xff]  ;;  %741 = vst.msk [vmem:[#allocation2 + $0x170] sm:$0xff] %vm690_vm1, %v668_v54  ;;  %v6209_v58 = vadd.f32 %v9020_v12, %v6040_v6  ;;  %v7607_v10 = vpack.i.bf16 %v2727_v50, %v2726_v7  ;;  %v6557_v57 = vsel %vm5192_vm5, %v6491_v44, 0.0  ;;  %v5408_v54 = vsel %vm5192_vm5, %v5344_v40, %v7395_v27  ;;  %v9880_v40 = vpop.f32.mrf.mxu3 }
 0x1db   :  { %v7612_v55 = vpack.i.bf16 %v9846_v52, %v3370_v25  ;;  %v433_v45 = vpop.f32.mrf.mxu0  ;;  %v6558_v36 = vadd.f32 %v6557_v57, %v6556_v56  ;;  %v11592_v44 = vunpack.i.h.bf16 %v9653_v20  ;;  %v5280_v6 = vsel %vm5257_vm6, %v5215_v53, %v7385_v62 }
 0x1dc   :  { %v6363_v12 = vmul.f32 %v9519_v48, %v6209_v58  ;;  %v540_v25 = vmul.f32 %v8202_v22, %v433_v45  ;;  %7608 = vrot.lane.b32.xlu0 %v7607_v10, %s8071_s9  ;;  %v1133_v27 = vand.u32 255, %v9829_v42  ;;  %v1140_v56 = vand.u32 255, %v9832_v9 }
 0x1dd   :  { %v5409_v35 = vsel %vm5192_vm5, %v5345_v37, %v11592_v44  ;;  %7613 = vrot.lane.b32.xlu2 %v7612_v55, %s8072_s11  ;;  %v9870_v7 = vpop.permute.xlu1 %7388  ;;  %v9878_v45 = vsel %vm2534_vm7, %v9826_v33, 0.0  ;;  %v5281_v42 = vsel %vm5257_vm6, %v5216_v43, %v7386_v26  ;;  %v3108_v9 = vsel %vm2530_vm15, %v9686_v63, 0.0  ;;  %v8014_v26 = vld [vmem:[#allocation2 + $0xd7] sm:$0xff] }
 0x1de   :  { %v6428_v20 = vadd.f32 %v9565_v32, %v6363_v12  ;;  %v605_v37 = vadd.f32 %v8204_v23, %v540_v25  ;;  %7603 = vrot.lane.b32.xlu1 %v7602_v46, %s8071_s9  ;;  %6883 = vmatmul.msk.f32.gmra.mxu0 %vm94_vm0, %v87_v0  ;;  %v9886_v53 = vpop.permute.xlu2 %7458  ;;  %v9893_v62 = vsel %vm690_vm1, %v8013_v60, %v7411_v51  ;;  %v7410_v50 = vunpack.i.l.bf16 %v9719_v47 }
 0x1df   :  { %v9896_v58 = vpop.permute.xlu0 %7423  ;;  %v6041_v55 = vpop.f32.mrf.mxu2  ;;  %v5472_v46 = vsel %vm5257_vm6, %v5408_v54, %v7400_v5  ;;  %v5473_v0 = vsel %vm5257_vm6, %v5409_v35, %v7401_v39  ;;  %v5152_v43 = vsel %vm690_vm1, %v8924_v1, %v7360_v59  ;;  %v5153_v61 = vsel %vm690_vm1, %v8014_v26, %v7361_v8 }
 0x1e0   :  { %v6492_v63 = vmax.f32 %v6428_v20, 0.0  ;;  %v669_v57 = vmax.f32 %v605_v37, 0.0  ;;  %v5875_v12 = vpop.f32.mrf.mxu1  ;;  %v6042_v51 = vadd.f32 %v6041_v55, %v5872_v16  ;;  %v5547_v25 = vpack.c.bf16 %v5281_v42, %v5280_v6  ;;  %v9917_v6 = vld [vmem:[#allocation2 + $0x161] sm:$0xff] }
 0x1e1   :  { %v9903_v44 = vld [vmem:[#allocation2 + $0x169] sm:$0xff]  ;;  %v9905_v47 = vand.u32 15, %v1133_v27  ;;  %v9907_v60 = vand.u32 15, %v1140_v56  ;;  %v5548_v39 = vpack.c.bf16 %v5473_v0, %v5472_v46  ;;  %v7415_v8 = vunpack.i.l.bf16 %v9772_v4  ;;  %v88_v27 = vld [vmem:[%s11562_s0 + $0x1e0] sm:$0xff] }
 0x1e2   :  { %v6559_v5 = vsel %vm5192_vm5, %v6492_v63, 0.0  ;;  %742 = vst.msk [vmem:[#allocation2 + $0x178] sm:$0xff] %vm690_vm1, %v669_v57  ;;  %v3567_v1 = vsel %vm2915_vm4, %v9903_v44, 0.0  ;;  %v6211_v16 = vadd.f32 %v9064_v49, %v6042_v51  ;;  %v7617_v35 = vpack.i.bf16 %v9732_v28, %v3108_v9  ;;  %v8015_v56 = vld [vmem:[#allocation2 + $0xe0] sm:$0xff] }
 0x1e3   :  { %v6560_v59 = vadd.f32 %v6559_v5, %v6558_v36  ;;  %v436_v54 = vpop.f32.mrf.mxu0  ;;  %5914 = vmatmul.bf16.gmra.mxu1 %v5547_v25  ;;  %v9923_v20 = vsel %vm690_vm1, %v8015_v56, %v7410_v50  ;;  %v5573_v49 = vpack.c.bf16 %v3567_v1, %v9917_v6  ;;  %v7416_v36 = vunpack.i.h.bf16 %v9772_v4 }
 0x1e4   :  { %v541_v2 = vmul.f32 %v8202_v22, %v436_v54  ;;  %7623 = vrot.lane.b32.xlu0 %v7607_v10, %s8073_s8  ;;  %6083 = vmatmul.bf16.gmra.mxu2 %v5548_v39  ;;  %v6364_v28 = vmul.f32 %v9519_v48, %v6211_v16  ;;  %v11593_v42 = vunpack.i.l.bf16 %v9599_v3  ;;  %v11594_v50 = vunpack.i.h.bf16 %v9599_v3  ;;  %v9969_v54 = vpop.f32.mrf.mxu3 }
 0x1e5   :  { %7618 = vrot.lane.b32.xlu2 %v7617_v35, %s8073_s8  ;;  %v9931_v37 = vpop.permute.xlu1 %7428  ;;  %6978 = vmatmul.msk.bf16.gmra.mxu3 %vm690_vm1, %v5573_v49  ;;  %v9947_v46 = vsel %vm2917_vm8, %v9785_v24, 0.0  ;;  %vm2919_vm9 = vcmp.lt.s32.totalorder %v9905_v47, 15  ;;  %vm2536_vm10 = vcmp.ge.s32.totalorder %v9907_v60, 1  ;;  %v3179_v26 = vsel %vm2917_vm8, %v9903_v44, 0.0  ;;  %v9976_v49 = vld [vmem:[#allocation2 + $0x16f] sm:$0xff] }
 0x1e6   :  { %v5217_v9 = vsel %vm5192_vm5, %v5152_v43, %v11593_v42  ;;  %v5218_v55 = vsel %vm5192_vm5, %v5153_v61, %v11594_v50  ;;  %v606_v10 = vadd.f32 %v8204_v23, %v541_v2  ;;  %6884 = vmatmul.msk.f32.gmra.mxu0 %vm94_vm0, %v88_v27  ;;  %v9942_v4 = vpop.permute.xlu2 %7463  ;;  %v6429_v3 = vadd.f32 %v9565_v32, %v6364_v28  ;;  %v2728_v61 = vld [vmem:[#allocation2 + $0x170] sm:$0xff] }
 0x1e7   :  { %v9952_v0 = vpop.permute.xlu0 %7438  ;;  %v6044_v43 = vpop.f32.mrf.mxu2  ;;  %v9958_v63 = vsel %vm5257_vm6, %v5217_v9, %v7415_v8  ;;  %v9963_v24 = vsel %vm2532_vm3, %v9826_v33, 0.0  ;;  %v7421_v57 = vunpack.i.h.bf16 %v9824_v13  ;;  %v7420_v51 = vunpack.i.l.bf16 %v9824_v13 }
 0x1e8   :  { %v670_v25 = vmax.f32 %v606_v10, 0.0  ;;  %v6045_v5 = vadd.f32 %v6044_v43, %v5875_v12  ;;  %v5877_v39 = vpop.f32.mrf.mxu1  ;;  %v7406_v1 = vunpack.i.h.bf16 %v9838_v38  ;;  %v7405_v16 = vunpack.i.l.bf16 %v9838_v38 }
 0x1e9   :  { %v6493_v8 = vmax.f32 %v6429_v3, 0.0  ;;  %v2729_v35 = vld [vmem:[#allocation2 + $0x178] sm:$0xff]  ;;  %v5283_v27 = vsel %vm5257_vm6, %v5218_v55, %v7416_v36  ;;  %v7426_v33 = vunpack.i.h.bf16 %v9896_v58  ;;  %v7627_v2 = vpack.i.bf16 %v3179_v26, %v9917_v6  ;;  %v89_v36 = vld [vmem:[%s11562_s0 + $0x1e8] sm:$0xff] }
 0x1ea   :  { %743 = vst.msk [vmem:[#allocation2 + $0x180] sm:$0xff] %vm690_vm1, %v670_v25  ;;  %v6214_v56 = vadd.f32 %v9112_v30, %v6045_v5  ;;  %v7637_v12 = vpack.i.bf16 %v2729_v35, %v2728_v61  ;;  %v7425_v28 = vunpack.i.l.bf16 %v9896_v58  ;;  %v7431_v9 = vunpack.i.h.bf16 %v9931_v37  ;;  %v11595_v58 = vld [vmem:[#allocation4_spill] sm:$0xff] }
 0x1eb   :  { %v6561_v42 = vsel %vm5192_vm5, %v6493_v8, 0.0  ;;  %v439_v50 = vpop.f32.mrf.mxu0  ;;  %v7430_v10 = vunpack.i.l.bf16 %v9931_v37  ;;  %v9991_v43 = vsel %vm690_vm1, %v11595_v58, %v7420_v51  ;;  %v7390_v26 = vunpack.i.l.bf16 %v9870_v7  ;;  %v8016_v58 = vld [vmem:[#allocation2 + $0xe7] sm:$0xff] }
 0x1ec   :  { %v6562_v55 = vadd.f32 %v6561_v42, %v6560_v59  ;;  %v6365_v30 = vmul.f32 %v9519_v48, %v6214_v56  ;;  %v542_v3 = vmul.f32 %v8202_v22, %v439_v50  ;;  %7628 = vrot.lane.b32.xlu0 %v7627_v2, %s8071_s9  ;;  %7638 = vrot.lane.b32.xlu1 %v7637_v12, %s8071_s9  ;;  %v10001_v37 = vsel %vm2536_vm10, %v9976_v49, 0.0  ;;  %v10017_v2 = vld [vmem:[#allocation2 + $0x177] sm:$0xff]  ;;  %v10044_v17 = vpop.f32.mrf.mxu3 }
 0x1ed   :  { %7653 = vrot.lane.b32.xlu2 %v7637_v12, %s8073_s8  ;;  %v9995_v61 = vpop.permute.xlu1 %7433  ;;  %v5550_v59 = vpack.c.bf16 %v5283_v27, %v9958_v63  ;;  %v7391_v25 = vunpack.i.h.bf16 %v9870_v7  ;;  %v7632_v35 = vpack.i.bf16 %v9947_v46, %v9791_v11  ;;  %v5411_v63 = vsel %vm5192_vm5, %v9893_v62, %v7426_v33 }
 0x1ee   :  { %v6430_v5 = vadd.f32 %v9565_v32, %v6365_v30  ;;  %v607_v51 = vadd.f32 %v8204_v23, %v542_v3  ;;  %6885 = vmatmul.msk.f32.gmra.mxu0 %vm94_vm0, %v89_v36  ;;  %v10007_v8 = vpop.permute.xlu2 %7473  ;;  %v5410_v27 = vsel %vm5192_vm5, %v9923_v20, %v7425_v28  ;;  %v3047_v12 = vsel %vm2919_vm9, %v9903_v44, 0.0  ;;  %v11596_v20 = vld [vmem:[#allocation3_spill] sm:$0xff] }
 0x1ef   :  { %v10015_v56 = vpop.permute.xlu0 %7443  ;;  %v6046_v7 = vpop.f32.mrf.mxu2  ;;  %v809_v42 = vadd.s32 360, %v8200_v21  ;;  %v5474_v62 = vsel %vm5257_vm6, %v5410_v27, %v7430_v10  ;;  %v5475_v46 = vsel %vm5257_vm6, %v5411_v63, %v7431_v9  ;;  %v5154_v33 = vsel %vm690_vm1, %v11596_v20, %v7390_v26  ;;  %v8017_v20 = vld [vmem:[#allocation2 + $0xf7] sm:$0xff] }
 0x1f0   :  { %v6494_v50 = vmax.f32 %v6430_v5, 0.0  ;;  %v671_v36 = vmax.f32 %v607_v51, 0.0  ;;  %v10023_v11 = vpop.f32.mrf.mxu1  ;;  %v6047_v28 = vadd.f32 %v6046_v7, %v5877_v39  ;;  %v3372_v30 = vsel %vm2532_vm3, %v9976_v49, 0.0  ;;  %v11597_v51 = vld [vmem:[#allocation5_spill] sm:$0xff] }
 0x1f1   :  { %v10032_v3 = vld [vmem:[#allocation2 + $0x179] sm:$0xff]  ;;  %v10035_v44 = vadd.s32 368, %v8200_v21  ;;  %v5155_v5 = vsel %vm690_vm1, %v8016_v58, %v7391_v25  ;;  %v7642_v9 = vpack.i.bf16 %v10017_v2, %v3372_v30  ;;  %v5551_v7 = vpack.c.bf16 %v5475_v46, %v5474_v62 }
 0x1f2   :  { %v6563_v10 = vsel %vm5192_vm5, %v6494_v50, 0.0  ;;  %744 = vst.msk [vmem:[#allocation2 + $0x188] sm:$0xff] %vm690_vm1, %v671_v36  ;;  %v3569_v39 = vsel %vm2917_vm8, %v10032_v3, 0.0  ;;  %v6216_v63 = vadd.f32 %v11597_v51, %v6047_v28  ;;  %v7657_v25 = vpack.i.bf16 %v3047_v12, %v9917_v6  ;;  %v10050_v50 = vld [vmem:[#allocation2 + $0x171] sm:$0xff]  ;;  %v10078_v30 = vld [vmem:[#allocation2 + $0x17f] sm:$0xff] }
 0x1f3   :  { %v10046_v26 = vadd.f32 %v6563_v10, %v6562_v55  ;;  %v442_v27 = vpop.f32.mrf.mxu0  ;;  %5919 = vmatmul.bf16.gmra.mxu1 %v5550_v59  ;;  %v90_v36 = vld [vmem:[%s11562_s0 + $0x1f0] sm:$0xff]  ;;  %v10058_v29 = vsel %vm690_vm1, %v8017_v20, %v7421_v57  ;;  %v5576_v6 = vpack.c.bf16 %v3569_v39, %v10050_v50  ;;  %v1147_v59 = vand.u32 255, %v809_v42  ;;  %v6720_v12 = vld [vmem:[%s11566_s5 + $0x98] sm:$0xff] }
 0x1f4   :  { %v543_v55 = vmul.f32 %v8202_v22, %v442_v27  ;;  %7633 = vrot.lane.b32.xlu0 %v7632_v35, %s8072_s11  ;;  %7643 = vrot.lane.b32.xlu1 %v7642_v9, %s8072_s11  ;;  %v7461_v62 = vunpack.i.h.bf16 %v9886_v53  ;;  %v7460_v13 = vunpack.i.l.bf16 %v9886_v53  ;;  %v6366_v57 = vmul.f32 %v9519_v48, %v6216_v63 }
 0x1f5   :  { %6088 = vmatmul.bf16.gmra.mxu2 %v5551_v7  ;;  %7658 = vrot.lane.b32.xlu2 %v7657_v25, %s8072_s11  ;;  %v7449_v46 = vpop.permute.xlu1 %7448  ;;  %v7647_v35 = vpack.i.bf16 %v9846_v52, %v9963_v24  ;;  %v5219_v58 = vsel %vm5192_vm5, %v5154_v33, %v7405_v16  ;;  %v5220_v10 = vsel %vm5192_vm5, %v5155_v5, %v7406_v1  ;;  %v1154_v52 = vand.u32 255, %v10035_v44 }
 0x1f6   :  { %v608_v28 = vadd.f32 %v8204_v23, %v543_v55  ;;  %6979 = vmatmul.msk.bf16.gmra.mxu3 %vm690_vm1, %v5576_v6  ;;  %6886 = vmatmul.msk.f32.gmra.mxu0 %vm94_vm0, %v90_v36  ;;  %v10076_v42 = vpop.permute.xlu2 %7498  ;;  %v7441_v24 = vunpack.i.h.bf16 %v9952_v0  ;;  %v7440_v9 = vunpack.i.l.bf16 %v9952_v0  ;;  %v6431_v39 = vadd.f32 %v9565_v32, %v6366_v57  ;;  %v8019_v57 = vld [vmem:[#allocation2 + $0xf0] sm:$0xff] }
 0x1f7   :  { %v7454_v51 = vpop.permute.xlu0 %7453  ;;  %v6049_v63 = vpop.f32.mrf.mxu2  ;;  %v10093_v27 = vsel %vm2534_vm7, %v9976_v49, 0.0  ;;  %6765 = vmatpush.msrb.mxu3 %v6720_v12  ;;  %v3181_v1 = vsel %vm2919_vm9, %v10032_v3, 0.0  ;;  %v10098_v33 = vand.u32 15, %v1147_v59  ;;  %v10101_v0 = vadd.s32 376, %v8200_v21  ;;  %v8018_v59 = vld [vmem:[#allocation2 + $0xf8] sm:$0xff] }
 0x1f8   :  { %v672_v16 = vmax.f32 %v608_v28, 0.0  ;;  %v5882_v38 = vpop.f32.mrf.mxu1  ;;  %v6495_v44 = vmax.f32 %v6431_v39, 0.0  ;;  %v7451_v5 = vunpack.i.h.bf16 %v7449_v46  ;;  %v7450_v7 = vunpack.i.l.bf16 %v7449_v46 }
 0x1f9   :  { %v10103_v25 = vld [vmem:[#allocation2 + $0x187] sm:$0xff]  ;;  %v3374_v49 = vsel %vm2534_vm7, %v10078_v30, 0.0  ;;  %v7456_v36 = vunpack.i.h.bf16 %v7454_v51  ;;  %v7455_v20 = vunpack.i.l.bf16 %v7454_v51  ;;  %v6050_v55 = vadd.f32 %v6049_v63, %v10023_v11  ;;  %v6719_v11 = vld [vmem:[%s11566_s5 + $0x90] sm:$0xff] }
 0x1fa   :  { %745 = vst.msk [vmem:[#allocation2 + $0x190] sm:$0xff] %vm690_vm1, %v672_v16  ;;  %v7672_v6 = vpack.i.bf16 %v10103_v25, %v3374_v49  ;;  %v5349_v12 = vsel %vm690_vm1, %v8018_v59, %v7441_v24  ;;  %v5348_v46 = vsel %vm690_vm1, %v8019_v57, %v7440_v9  ;;  %v6565_v28 = vsel %vm5192_vm5, %v6495_v44, 0.0  ;;  %v91_v16 = vld [vmem:[%s11562_s0 + $0x1f8] sm:$0xff]  ;;  %v11598_v63 = vld [vmem:[#allocation7_spill] sm:$0xff]  ;;  %v10128_v44 = vpop.f32.mrf.mxu3  ;;  %6745 = vmatpush.msrb.mxu0 %v6719_v11 }
 0x1fb   :  { %v445_v39 = vpop.f32.mrf.mxu0  ;;  %v7662_v14 = vpack.i.bf16 %v3181_v1, %v10050_v50  ;;  %v6566_v24 = vadd.f32 %v6565_v28, %v10046_v26  ;;  %v6219_v49 = vadd.f32 %v11598_v63, %v6050_v55  ;;  %v5413_v59 = vsel %vm5192_vm5, %v5349_v12, %v7451_v5  ;;  %v2730_v12 = vld [vmem:[#allocation2 + $0x180] sm:$0xff] }
 0x1fc   :  { %v544_v9 = vmul.f32 %v8202_v22, %v445_v39  ;;  %7648 = vrot.lane.b32.xlu1 %v7647_v35, %s8073_s8  ;;  %7673 = vrot.lane.b32.xlu0 %v7672_v6, %s8072_s11  ;;  %v5412_v57 = vsel %vm5192_vm5, %v5348_v46, %v7450_v7  ;;  %vm2921_vm11 = vcmp.lt.s32.totalorder %v10098_v33, 15  ;;  %v5284_v6 = vsel %vm5257_vm6, %v5219_v58, %v7455_v20  ;;  %v2731_v46 = vld [vmem:[#allocation2 + $0x188] sm:$0xff] }
 0x1fd   :  { %7663 = vrot.lane.b32.xlu2 %v7662_v14, %s8071_s9  ;;  %v10133_v51 = vpop.permute.xlu1 %7468  ;;  %v6367_v26 = vmul.f32 %v9519_v48, %v6219_v49  ;;  %v5285_v5 = vsel %vm5257_vm6, %v5220_v10, %v7456_v36  ;;  %v7677_v28 = vpack.i.bf16 %v10017_v2, %v10093_v27  ;;  %v1161_v39 = vand.u32 255, %v10101_v0 }
 0x1fe   :  { %v609_v35 = vadd.f32 %v8204_v23, %v544_v9  ;;  %6887 = vmatmul.msk.f32.gmra.mxu0 %vm94_vm0, %v91_v16  ;;  %v10139_v55 = vpop.permute.xlu2 %7503  ;;  %v10146_v14 = vand.u32 15, %v1154_v52  ;;  %v10149_v11 = vadd.s32 384, %v8200_v21  ;;  %v5476_v58 = vsel %vm5257_vm6, %v5412_v57, %v7460_v13 }
 0x1ff   :  { %v6051_v7 = vpop.f32.mrf.mxu2  ;;  %v6432_v16 = vadd.f32 %v9565_v32, %v6367_v26  ;;  %v5477_v10 = vsel %vm5257_vm6, %v5413_v59, %v7461_v62  ;;  %v7436_v2 = vunpack.i.h.bf16 %v9995_v61  ;;  %v7435_v52 = vunpack.i.l.bf16 %v9995_v61 }
 0x200   :  { %v673_v63 = vmax.f32 %v609_v35, 0.0  ;;  %v5885_v49 = vpop.f32.mrf.mxu1  ;;  %v6052_v27 = vadd.f32 %v6051_v7, %v5882_v38  ;;  %v5553_v0 = vpack.c.bf16 %v5285_v5, %v5284_v6  ;;  %v7445_v20 = vunpack.i.l.bf16 %v10015_v56  ;;  %v10164_v35 = vld [vmem:[#allocation2 + $0x181] sm:$0xff]  ;;  %v10178_v7 = vpop.permute.xlu0 %7478 }
 0x201   :  { %v10160_v36 = vld [vmem:[#allocation2 + $0x189] sm:$0xff]  ;;  %v6496_v9 = vmax.f32 %v6432_v16, 0.0  ;;  %v7682_v26 = vpack.i.bf16 %v2731_v46, %v2730_v12  ;;  %v5554_v61 = vpack.c.bf16 %v5477_v10, %v5476_v58  ;;  %v7476_v59 = vunpack.i.h.bf16 %v10007_v8 }
 0x202   :  { %746 = vst.msk [vmem:[#allocation2 + $0x198] sm:$0xff] %vm690_vm1, %v673_v63  ;;  %v3571_v53 = vsel %vm2919_vm9, %v10160_v36, 0.0  ;;  %v6221_v62 = vadd.f32 %v9239_v18, %v6052_v27  ;;  %v7470_v6 = vunpack.i.l.bf16 %v10133_v51  ;;  %v7471_v18 = vunpack.i.h.bf16 %v10133_v51  ;;  %v10192_v58 = vld [vmem:[#allocation2 + $0x18f] sm:$0xff] }
 0x203   :  { %v448_v13 = vpop.f32.mrf.mxu0  ;;  %5924 = vmatmul.bf16.gmra.mxu1 %v5553_v0  ;;  %v5579_v38 = vpack.c.bf16 %v3571_v53, %v10164_v35  ;;  %v6567_v57 = vsel %vm5192_vm5, %v6496_v9, 0.0  ;;  %v3049_v16 = vsel %vm2921_vm11, %v10032_v3, 0.0  ;;  %v5222_v63 = vsel %vm5192_vm5, %v10058_v29, %v7436_v2  ;;  %v11599_v0 = vld [vmem:[#allocation6_spill] sm:$0xff]  ;;  %v10203_v2 = vpop.f32.mrf.mxu3  ;;  %v2732_v53 = vld [vmem:[#allocation2 + $0x190] sm:$0xff] }
 0x204   :  { %v545_v5 = vmul.f32 %v8202_v22, %v448_v13  ;;  %7683 = vrot.lane.b32.xlu1 %v7682_v26, %s8073_s8  ;;  %7678 = vrot.lane.b32.xlu0 %v7677_v28, %s8073_s8  ;;  %v6568_v47 = vadd.f32 %v6567_v57, %v6566_v24  ;;  %v6368_v12 = vmul.f32 %v9519_v48, %v6221_v62  ;;  %v7475_v28 = vunpack.i.l.bf16 %v10007_v8  ;;  %v8020_v62 = vld [vmem:[#allocation2 + $0x100] sm:$0xff] }
 0x205   :  { %6093 = vmatmul.bf16.gmra.mxu2 %v5554_v61  ;;  %7668 = vrot.lane.b32.xlu2 %v7682_v26, %s8071_s9  ;;  %v7484_v46 = vpop.permute.xlu1 %7483  ;;  %v10194_v10 = vand.u32 15, %v1161_v39  ;;  %v5221_v27 = vsel %vm5192_vm5, %v9991_v43, %v7435_v52  ;;  %v7446_v3 = vunpack.i.h.bf16 %v10015_v56  ;;  %v10201_v29 = vsel %vm690_vm1, %v11599_v0, %v7445_v20  ;;  %v8021_v52 = vld [vmem:[#allocation2 + $0x108] sm:$0xff] }
 0x206   :  { %v610_v24 = vadd.f32 %v8204_v23, %v545_v5  ;;  %6980 = vmatmul.msk.bf16.gmra.mxu3 %vm690_vm1, %v5579_v38  ;;  %v10190_v51 = vpop.permute.xlu2 %7508  ;;  %v6433_v9 = vadd.f32 %v9565_v32, %v6368_v12  ;;  %v5350_v13 = vsel %vm690_vm1, %v8020_v62, %v7470_v6  ;;  %v7687_v43 = vpack.i.bf16 %v3049_v16, %v10050_v50 }
 0x207   :  { %v6054_v26 = vpop.f32.mrf.mxu2  ;;  %v5351_v56 = vsel %vm690_vm1, %v8021_v52, %v7471_v18  ;;  %v3376_v12 = vsel %vm2536_vm10, %v10192_v58, 0.0  ;;  %v10215_v0 = vadd.s32 392, %v8200_v21  ;;  %v7485_v6 = vunpack.i.l.bf16 %v7484_v46 }
 0x208   :  { %v674_v39 = vmax.f32 %v610_v24, 0.0  ;;  %v6055_v61 = vadd.f32 %v6054_v26, %v5885_v49  ;;  %v5887_v38 = vpop.f32.mrf.mxu1  ;;  %v6497_v57 = vmax.f32 %v6433_v9, 0.0  ;;  %v7486_v49 = vunpack.i.h.bf16 %v7484_v46 }
 0x209   :  { %v2733_v20 = vld [vmem:[#allocation2 + $0x198] sm:$0xff]  ;;  %v7480_v18 = vunpack.i.l.bf16 %v10178_v7  ;;  %v5414_v62 = vsel %vm5192_vm5, %v5350_v13, %v7475_v28  ;;  %vm2538_vm0 = vcmp.ge.s32.totalorder %v10146_v14, 1  ;;  %v7481_v52 = vunpack.i.h.bf16 %v10178_v7 }
 0x20a   :  { %v10209_v5 = vld [vmem:[#allocation2 + $0x197] sm:$0xff]  ;;  %747 = vst.msk [vmem:[#allocation2 + $0x1a0] sm:$0xff] %vm690_vm1, %v674_v39  ;;  %v6224_v50 = vadd.f32 %v9278_v41, %v6055_v61  ;;  %v7697_v16 = vpack.i.bf16 %v2733_v20, %v2732_v53  ;;  %v6569_v24 = vsel %vm5192_vm5, %v6497_v57, 0.0  ;;  %v8022_v41 = vld [vmem:[#allocation2 + $0x107] sm:$0xff]  ;;  %v3183_v28 = vsel %vm2921_vm11, %v10160_v36, 0.0 }
 0x20b   :  { %v451_v9 = vpop.f32.mrf.mxu0  ;;  %v7702_v26 = vpack.i.bf16 %v10209_v5, %v3376_v12  ;;  %v6570_v1 = vadd.f32 %v6569_v24, %v6568_v47  ;;  %v5159_v53 = vsel %vm690_vm1, %v8022_v41, %v7446_v3  ;;  %v5415_v47 = vsel %vm5192_vm5, %v5351_v56, %v7476_v59  ;;  %v10250_v56 = vpop.permute.xlu0 %7488 }
 0x20c   :  { %v6369_v39 = vmul.f32 %v9519_v48, %v6224_v50  ;;  %v546_v46 = vmul.f32 %v8202_v22, %v451_v9  ;;  %7688 = vrot.lane.b32.xlu1 %v7687_v43, %s8072_s11  ;;  %7698 = vrot.lane.b32.xlu0 %v7697_v16, %s8071_s9  ;;  %v3114_v7 = vsel %vm2536_vm10, %v10078_v30, 0.0  ;;  %v5286_v57 = vsel %vm5257_vm6, %v5221_v27, %v7485_v6  ;;  %v10255_v27 = vpop.f32.mrf.mxu3 }
 0x20d   :  { %7703 = vrot.lane.b32.xlu2 %v7702_v26, %s8072_s11  ;;  %v10242_v43 = vpop.permute.xlu1 %7493  ;;  %v5287_v20 = vsel %vm5257_vm6, %v5222_v63, %v7486_v49  ;;  %v7501_v8 = vunpack.i.h.bf16 %v10076_v42  ;;  %v7500_v59 = vunpack.i.l.bf16 %v10076_v42  ;;  %v5478_v12 = vsel %vm5257_vm6, %v5414_v62, %v7480_v18 }
 0x20e   :  { %v6434_v13 = vadd.f32 %v9565_v32, %v6369_v39  ;;  %v611_v61 = vadd.f32 %v8204_v23, %v546_v46  ;;  %v10244_v3 = vpop.permute.xlu2 %7533  ;;  %v1175_v50 = vand.u32 255, %v10215_v0  ;;  %v5479_v46 = vsel %vm5257_vm6, %v5415_v47, %v7481_v52  ;;  %v10265_v0 = vld [vmem:[#allocation2 + $0x191] sm:$0xff] }
 0x20f   :  { %v6056_v60 = vpop.f32.mrf.mxu2  ;;  %v5556_v63 = vpack.c.bf16 %v5287_v20, %v5286_v57  ;;  %v7692_v49 = vpack.i.bf16 %v3183_v28, %v10164_v35  ;;  %v1168_v42 = vand.u32 255, %v10149_v11  ;;  %v814_v41 = vadd.s32 400, %v8200_v21 }
 0x210   :  { %v6498_v24 = vmax.f32 %v6434_v13, 0.0  ;;  %v675_v9 = vmax.f32 %v611_v61, 0.0  ;;  %v6057_v26 = vadd.f32 %v6056_v60, %v5887_v38  ;;  %v5890_v39 = vpop.f32.mrf.mxu1  ;;  %v5557_v47 = vpack.c.bf16 %v5479_v46, %v5478_v12 }
 0x211   :  { %v10258_v6 = vld [vmem:[#allocation2 + $0x199] sm:$0xff]  ;;  %v7707_v11 = vpack.i.bf16 %v10103_v25, %v3114_v7  ;;  %vm2923_vm12 = vcmp.lt.s32.totalorder %v10194_v10, 15  ;;  %v8024_v7 = vld [vmem:[#allocation2 + $0x110] sm:$0xff]  ;;  %v11601_v60 = vunpack.i.h.bf16 %v9942_v4  ;;  %v1182_v12 = vand.u32 255, %v814_v41 }
 0x212   :  { %v6571_v18 = vsel %vm5192_vm5, %v6498_v24, 0.0  ;;  %748 = vst.msk [vmem:[#allocation2 + $0x1a8] sm:$0xff] %vm690_vm1, %v675_v9  ;;  %v6226_v38 = vadd.f32 %v9320_v34, %v6057_v26  ;;  %v3573_v62 = vsel %vm2921_vm11, %v10258_v6, 0.0  ;;  %v11600_v34 = vunpack.i.l.bf16 %v9942_v4 }
 0x213   :  { %v6572_v52 = vadd.f32 %v6571_v18, %v6570_v1  ;;  %v454_v28 = vpop.f32.mrf.mxu0  ;;  %5929 = vmatmul.bf16.gmra.mxu1 %v5556_v63  ;;  %v5582_v13 = vpack.c.bf16 %v3573_v62, %v10265_v0  ;;  %v8023_v1 = vld [vmem:[#allocation2 + $0x118] sm:$0xff]  ;;  %v5352_v20 = vsel %vm690_vm1, %v8024_v7, %v7500_v59  ;;  %v7506_v24 = vunpack.i.h.bf16 %v10139_v55  ;;  %v2734_v63 = vld [vmem:[#allocation2 + $0x1a0] sm:$0xff] }
 0x214   :  { %v6370_v61 = vmul.f32 %v9519_v48, %v6226_v38  ;;  %v547_v57 = vmul.f32 %v8202_v22, %v454_v28  ;;  %7693 = vrot.lane.b32.xlu1 %v7692_v49, %s8071_s9  ;;  %7713 = vrot.lane.b32.xlu0 %v7697_v16, %s8073_s8  ;;  %v5223_v33 = vsel %vm5192_vm5, %v10201_v29, %v11600_v34  ;;  %v10296_v59 = vsel %vm2538_vm0, %v10078_v30, 0.0 }
 0x215   :  { %v5353_v25 = vsel %vm690_vm1, %v8023_v1, %v7501_v8  ;;  %6098 = vmatmul.bf16.gmra.mxu2 %v5557_v47  ;;  %7708 = vrot.lane.b32.xlu2 %v7707_v11, %s8073_s8  ;;  %v5224_v16 = vsel %vm5192_vm5, %v5159_v53, %v11601_v60  ;;  %v7505_v4 = vunpack.i.l.bf16 %v10139_v55  ;;  %v3185_v46 = vsel %vm2923_vm12, %v10258_v6, 0.0  ;;  %v10324_v1 = vpop.f32.mrf.mxu3 }
 0x216   :  { %v6435_v9 = vadd.f32 %v9565_v32, %v6370_v61  ;;  %v612_v29 = vadd.f32 %v8204_v23, %v547_v57  ;;  %6981 = vmatmul.msk.bf16.gmra.mxu3 %vm690_vm1, %v5582_v13  ;;  %v10291_v8 = vpop.permute.xlu2 %7558  ;;  %v10304_v49 = vand.u32 15, %v1175_v50  ;;  %v10306_v41 = vand.u32 15, %v1168_v42 }
 0x217   :  { %v10299_v26 = vpop.permute.xlu0 %7518  ;;  %v6059_v53 = vpop.f32.mrf.mxu2  ;;  %v10313_v30 = vsel %vm2923_vm12, %v10160_v36, 0.0  ;;  %v10315_v55 = vand.u32 15, %v1182_v12  ;;  %v7491_v28 = vunpack.i.h.bf16 %v10250_v56  ;;  %v7511_v47 = vunpack.i.h.bf16 %v10190_v51 }
 0x218   :  { %v6499_v18 = vmax.f32 %v6435_v9, 0.0  ;;  %v676_v38 = vmax.f32 %v612_v29, 0.0  ;;  %v10308_v62 = vpop.permute.xlu1 %7513  ;;  %v7510_v50 = vunpack.i.l.bf16 %v10190_v51  ;;  %v6060_v11 = vadd.f32 %v6059_v53, %v5890_v39  ;;  %v5892_v42 = vpop.f32.mrf.mxu1  ;;  %v10328_v39 = vld [vmem:[#allocation2 + $0x19f] sm:$0xff] }
 0x219   :  { %v2735_v13 = vld [vmem:[#allocation2 + $0x1a8] sm:$0xff]  ;;  %v7490_v61 = vunpack.i.l.bf16 %v10250_v56  ;;  %v7717_v36 = vpack.i.bf16 %v3185_v46, %v10265_v0  ;;  %v7496_v7 = vunpack.i.h.bf16 %v10242_v43  ;;  %vm2540_vm13 = vcmp.ge.s32.totalorder %v10306_v41, 1 }
 0x21a   :  { %v6573_v57 = vsel %vm5192_vm5, %v6499_v18, 0.0  ;;  %749 = vst.msk [vmem:[#allocation2 + $0x1b0] sm:$0xff] %vm690_vm1, %v676_v38  ;;  %v7727_v34 = vpack.i.bf16 %v2735_v13, %v2734_v63  ;;  %v6229_v12 = vadd.f32 %v9368_v19, %v6060_v11  ;;  %v7495_v56 = vunpack.i.l.bf16 %v10242_v43 }
 0x21b   :  { %v6574_v60 = vadd.f32 %v6573_v57, %v6572_v52  ;;  %v457_v51 = vpop.f32.mrf.mxu0  ;;  %vm2542_vm14 = vcmp.ge.s32.totalorder %v10315_v55, 1  ;;  %v10338_v52 = vsel %vm690_vm1, %v9342_v31, %v7510_v50  ;;  %v5288_v29 = vsel %vm5257_vm6, %v5223_v33, %v7505_v4 }
 0x21c   :  { %v548_v9 = vmul.f32 %v8202_v22, %v457_v51  ;;  %7718 = vrot.lane.b32.xlu0 %v7717_v36, %s8071_s9  ;;  %7728 = vrot.lane.b32.xlu1 %v7727_v34, %s8071_s9  ;;  %v6371_v19 = vmul.f32 %v9519_v48, %v6229_v12  ;;  %v5289_v53 = vsel %vm5257_vm6, %v5224_v16, %v7506_v24  ;;  %vm2925_vm15 = vcmp.lt.s32.totalorder %v10304_v49, 15  ;;  %v8025_v24 = vld [vmem:[#allocation2 + $0x127] sm:$0xff] }
 0x21d   :  { %7743 = vrot.lane.b32.xlu2 %v7727_v34, %s8073_s8  ;;  %v10351_v63 = vsel %vm2540_vm13, %v10192_v58, 0.0  ;;  %v10356_v31 = vsel %vm2542_vm14, %v10328_v39, 0.0  ;;  %v5416_v33 = vsel %vm5192_vm5, %v5352_v20, %v7490_v61  ;;  %v5417_v16 = vsel %vm5192_vm5, %v5353_v25, %v7491_v28  ;;  %v10368_v36 = vld [vmem:[#allocation2 + $0x1a7] sm:$0xff] }
 0x21e   :  { %v613_v43 = vadd.f32 %v8204_v23, %v548_v9  ;;  %v10345_v46 = vpop.permute.xlu2 %7563  ;;  %11602 = vst [vmem:[#allocation4_spill] sm:$0xff] %v10351_v63  ;;  %v10361_v4 = vsel %vm690_vm1, %v8025_v24, %v7511_v47  ;;  %v6436_v18 = vadd.f32 %v9565_v32, %v6371_v19  ;;  %v5480_v34 = vsel %vm5257_vm6, %v5416_v33, %v7495_v56  ;;  %v10397_v33 = vld [vmem:[#allocation2 + $0x1a1] sm:$0xff] }
 0x21f   :  { %11603 = vst [vmem:[#allocation3_spill] sm:$0xff] %v10356_v31  ;;  %v10364_v38 = vpop.permute.xlu0 %7523  ;;  %v6061_v50 = vpop.f32.mrf.mxu2  ;;  %v5481_v20 = vsel %vm5257_vm6, %v5417_v16, %v7496_v7  ;;  %v5559_v61 = vpack.c.bf16 %v5289_v53, %v5288_v29  ;;  %v7722_v47 = vpack.i.bf16 %v10313_v30, %v10164_v35  ;;  %v3053_v12 = vsel %vm2925_vm15, %v10258_v6, 0.0  ;;  %v8027_v24 = vld [vmem:[#allocation2 + $0x120] sm:$0xff] }
 0x220   :  { %v677_v11 = vmax.f32 %v613_v43, 0.0  ;;  %v10366_v13 = vpop.permute.xlu1 %7528  ;;  %v6062_v57 = vadd.f32 %v6061_v50, %v5892_v42  ;;  %v6500_v25 = vmax.f32 %v6436_v18, 0.0  ;;  %v5895_v28 = vpop.f32.mrf.mxu1  ;;  %v3378_v7 = vsel %vm2538_vm0, %v10328_v39, 0.0  ;;  %v11604_v31 = vld [vmem:[#allocation11_spill] sm:$0xff] }
 0x221   :  { %v10377_v51 = vld [vmem:[#allocation2 + $0x1a9] sm:$0xff]  ;;  %v815_v35 = vadd.s32 408, %v8200_v21  ;;  %v7732_v6 = vpack.i.bf16 %v10368_v36, %v3378_v7  ;;  %v5560_v19 = vpack.c.bf16 %v5481_v20, %v5480_v34  ;;  %v7747_v10 = vpack.i.bf16 %v3053_v12, %v10265_v0  ;;  %v10399_v16 = vpop.f32.mrf.mxu3 }
 0x222   :  { %750 = vst.msk [vmem:[#allocation2 + $0x1b8] sm:$0xff] %vm690_vm1, %v677_v11  ;;  %v6231_v42 = vadd.f32 %v9425_v15, %v6062_v57  ;;  %v3575_v56 = vsel %vm2923_vm12, %v10377_v51, 0.0  ;;  %v6575_v30 = vsel %vm5192_vm5, %v6500_v25, 0.0  ;;  %v3116_v15 = vsel %vm2538_vm0, %v10192_v58, 0.0  ;;  %v10411_v11 = vld [vmem:[#allocation2 + $0x1af] sm:$0xff] }
 0x223   :  { %v460_v9 = vpop.f32.mrf.mxu0  ;;  %5934 = vmatmul.bf16.gmra.mxu1 %v5559_v61  ;;  %v6576_v29 = vadd.f32 %v6575_v30, %v6574_v60  ;;  %v5585_v14 = vpack.c.bf16 %v3575_v56, %v10397_v33  ;;  %v7737_v58 = vpack.i.bf16 %v10209_v5, %v3116_v15  ;;  %v10416_v57 = vsel %vm2540_vm13, %v10328_v39, 0.0 }
 0x224   :  { %v6372_v53 = vmul.f32 %v9519_v48, %v6231_v42  ;;  %v549_v43 = vmul.f32 %v8202_v22, %v460_v9  ;;  %7723 = vrot.lane.b32.xlu0 %v7722_v47, %s8072_s11  ;;  %7733 = vrot.lane.b32.xlu1 %v7732_v6, %s8072_s11  ;;  %v1189_v34 = vand.u32 255, %v815_v35  ;;  %v7521_v20 = vunpack.i.h.bf16 %v10299_v26 }
 0x225   :  { %6103 = vmatmul.bf16.gmra.mxu2 %v5560_v19  ;;  %7748 = vrot.lane.b32.xlu2 %v7747_v10, %s8072_s11  ;;  %v10423_v12 = vadd.s32 416, %v8200_v21  ;;  %v7520_v42 = vunpack.i.l.bf16 %v10299_v26  ;;  %v7531_v7 = vunpack.i.h.bf16 %v10366_v13  ;;  %v7530_v30 = vunpack.i.l.bf16 %v10366_v13 }
 0x226   :  { %v6437_v60 = vadd.f32 %v9565_v32, %v6372_v53  ;;  %v614_v50 = vadd.f32 %v8204_v23, %v549_v43  ;;  %v10409_v0 = vpop.permute.xlu2 %7573  ;;  %6982 = vmatmul.msk.bf16.gmra.mxu3 %vm690_vm1, %v5585_v14  ;;  %v3380_v15 = vsel %vm2540_vm13, %v10411_v11, 0.0  ;;  %v3187_v26 = vsel %vm2925_vm15, %v10377_v51, 0.0  ;;  %v8026_v14 = vld [vmem:[#allocation2 + $0x128] sm:$0xff] }
 0x227   :  { %v7539_v61 = vpop.permute.xlu0 %7538  ;;  %v6064_v47 = vpop.f32.mrf.mxu2  ;;  %v10443_v25 = vand.u32 15, %v1189_v34  ;;  %v5354_v18 = vsel %vm690_vm1, %v8027_v24, %v7520_v42  ;;  %v817_v34 = vadd.s32 424, %v8200_v21  ;;  %v819_v55 = vadd.s32 440, %v8200_v21 }
 0x228   :  { %v6501_v39 = vmax.f32 %v6437_v60, 0.0  ;;  %v678_v56 = vmax.f32 %v614_v50, 0.0  ;;  %v10427_v35 = vpop.permute.xlu1 %7543  ;;  %v7541_v9 = vunpack.i.h.bf16 %v7539_v61  ;;  %v5897_v6 = vpop.f32.mrf.mxu1  ;;  %v7540_v43 = vunpack.i.l.bf16 %v7539_v61 }
 0x229   :  { %v10430_v19 = vld [vmem:[#allocation2 + $0x1b7] sm:$0xff]  ;;  %v6065_v10 = vadd.f32 %v6064_v47, %v5895_v28  ;;  %v5355_v60 = vsel %vm690_vm1, %v8026_v14, %v7521_v20  ;;  %v7516_v50 = vunpack.i.h.bf16 %v10308_v62  ;;  %v7752_v28 = vpack.i.bf16 %v3187_v26, %v10397_v33  ;;  %v10462_v26 = vpop.f32.mrf.mxu3 }
 0x22a   :  { %v6577_v53 = vsel %vm5192_vm5, %v6501_v39, 0.0  ;;  %751 = vst.msk [vmem:[#allocation2 + $0x1c0] sm:$0xff] %vm690_vm1, %v678_v56  ;;  %v7762_v13 = vpack.i.bf16 %v10430_v19, %v3380_v15  ;;  %v7515_v61 = vunpack.i.l.bf16 %v10308_v62  ;;  %v5419_v20 = vsel %vm5192_vm5, %v5355_v60, %v7531_v7  ;;  %v11605_v47 = vld [vmem:[#allocation9_spill] sm:$0xff]  ;;  %v11606_v15 = vld [vmem:[#allocation10_spill] sm:$0xff] }
 0x22b   :  { %v6578_v5 = vadd.f32 %v6577_v53, %v6576_v29  ;;  %v463_v41 = vpop.f32.mrf.mxu0  ;;  %v6234_v39 = vadd.f32 %v11604_v31, %v6065_v10  ;;  %v5418_v29 = vsel %vm5192_vm5, %v5354_v18, %v7530_v30  ;;  %v5290_v42 = vsel %vm5257_vm6, %v11605_v47, %v7540_v43  ;;  %v2737_v14 = vld [vmem:[#allocation2 + $0x1b8] sm:$0xff] }
 0x22c   :  { %v550_v56 = vmul.f32 %v8202_v22, %v463_v41  ;;  %7763 = vrot.lane.b32.xlu0 %v7762_v13, %s8072_s11  ;;  %7738 = vrot.lane.b32.xlu1 %v7737_v58, %s8073_s8  ;;  %v5291_v62 = vsel %vm5257_vm6, %v11606_v15, %v7541_v9  ;;  %v10466_v18 = vsel %vm5192_vm5, %v10361_v4, %v7516_v50  ;;  %v7526_v58 = vunpack.i.h.bf16 %v10364_v38  ;;  %v2736_v13 = vld [vmem:[#allocation2 + $0x1b0] sm:$0xff] }
 0x22d   :  { %v6373_v24 = vmul.f32 %v9519_v48, %v6234_v39  ;;  %7753 = vrot.lane.b32.xlu2 %v7752_v28, %s8071_s9  ;;  %v7767_v30 = vpack.i.bf16 %v10368_v36, %v10416_v57  ;;  %vm2927_vm2 = vcmp.lt.s32.totalorder %v10443_v25, 15  ;;  %v11607_v4 = vunpack.i.l.bf16 %v10244_v3 }
 0x22e   :  { %v615_v31 = vadd.f32 %v8204_v23, %v550_v56  ;;  %v11608_v50 = vunpack.i.h.bf16 %v10244_v3  ;;  %v7566_v36 = vunpack.i.h.bf16 %v10345_v46  ;;  %v5562_v39 = vpack.c.bf16 %v5291_v62, %v5290_v42 }
 0x22f   :  { %v10469_v7 = vpop.permute.xlu2 %7578  ;;  %v6438_v53 = vadd.f32 %v9565_v32, %v6373_v24  ;;  %v6066_v9 = vpop.f32.mrf.mxu2  ;;  %v5482_v60 = vsel %vm5257_vm6, %v5418_v29, %v11607_v4  ;;  %v1203_v28 = vand.u32 255, %v817_v34  ;;  %v1196_v24 = vand.u32 255, %v10423_v12  ;;  %v10493_v34 = vld [vmem:[#allocation2 + $0x1b1] sm:$0xff] }
 0x230   :  { %v679_v43 = vmax.f32 %v615_v31, 0.0  ;;  %v10475_v10 = vpop.permute.xlu1 %7548  ;;  %v5483_v41 = vsel %vm5257_vm6, %v5419_v20, %v11608_v50  ;;  %v5900_v57 = vpop.f32.mrf.mxu1  ;;  %v7525_v31 = vunpack.i.l.bf16 %v10364_v38  ;;  %v6067_v15 = vadd.f32 %v6066_v9, %v5897_v6  ;;  %v8028_v20 = vld [vmem:[#allocation2 + $0x137] sm:$0xff]  ;;  %v11609_v38 = vld [vmem:[#allocation12_spill] sm:$0xff] }
 0x231   :  { %v10484_v56 = vld [vmem:[#allocation2 + $0x1b9] sm:$0xff]  ;;  %v6502_v47 = vmax.f32 %v6438_v53, 0.0  ;;  %v5165_v29 = vsel %vm690_vm1, %v8028_v20, %v7526_v58  ;;  %v7772_v42 = vpack.i.bf16 %v2737_v14, %v2736_v13  ;;  %v5563_v62 = vpack.c.bf16 %v5483_v41, %v5482_v60  ;;  %v11610_v60 = vld [vmem:[#allocation8_spill] sm:$0xff]  ;;  %v10511_v41 = vpop.permute.xlu0 %7568 }
 0x232   :  { %752 = vst.msk [vmem:[#allocation2 + $0x1c8] sm:$0xff] %vm690_vm1, %v679_v43  ;;  %v3577_v3 = vsel %vm2925_vm15, %v10484_v56, 0.0  ;;  %v6236_v53 = vadd.f32 %v11609_v38, %v6067_v15  ;;  %v5227_v6 = vsel %vm5192_vm5, %v10338_v52, %v7515_v61  ;;  %v7565_v58 = vunpack.i.l.bf16 %v10345_v46  ;;  %v6717_v14 = vld [vmem:[%s11566_s5 + $0x80] sm:$0xff] }
 0x233   :  { %v466_v4 = vpop.f32.mrf.mxu0  ;;  %5939 = vmatmul.bf16.gmra.mxu1 %v5562_v39  ;;  %v6579_v12 = vsel %vm5192_vm5, %v6502_v47, 0.0  ;;  %v5588_v49 = vpack.c.bf16 %v3577_v3, %v10493_v34  ;;  %v7551_v13 = vunpack.i.h.bf16 %v10475_v10  ;;  %v7550_v50 = vunpack.i.l.bf16 %v10475_v10  ;;  %6766 = vmatpush.msrb.mxu3 %v6717_v14 }
 0x234   :  { %v551_v43 = vmul.f32 %v8202_v22, %v466_v4  ;;  %7768 = vrot.lane.b32.xlu0 %v7767_v30, %s8073_s8  ;;  %v6580_v9 = vadd.f32 %v6579_v12, %v6578_v5  ;;  %7773 = vrot.lane.b32.xlu1 %v7772_v42, %s8073_s8  ;;  %v5164_v30 = vsel %vm690_vm1, %v11610_v60, %v7525_v31  ;;  %v10516_v5 = vld [vmem:[#allocation2 + $0x1bf] sm:$0xff]  ;;  %v3055_v10 = vsel %vm2927_vm2, %v10377_v51, 0.0 }
 0x235   :  { %6108 = vmatmul.bf16.gmra.mxu2 %v5563_v62  ;;  %v6374_v52 = vmul.f32 %v9519_v48, %v6236_v53  ;;  %7758 = vrot.lane.b32.xlu2 %v7772_v42, %s8071_s9  ;;  %v10519_v61 = vsel %vm5192_vm5, %v5165_v29, %v7566_v36  ;;  %v2738_v31 = vld [vmem:[#allocation2 + $0x1c0] sm:$0xff]  ;;  %v10527_v47 = vand.u32 15, %v1203_v28  ;;  %v10529_v15 = vand.u32 15, %v1196_v24  ;;  %v10536_v62 = vpop.f32.mrf.mxu3  ;;  %v8029_v28 = vld [vmem:[#allocation2 + $0x138] sm:$0xff] }
 0x236   :  { %v616_v46 = vadd.f32 %v8204_v23, %v551_v43  ;;  %6983 = vmatmul.msk.bf16.gmra.mxu3 %vm690_vm1, %v5588_v49  ;;  %v7546_v3 = vunpack.i.h.bf16 %v10427_v35  ;;  %v7545_v20 = vunpack.i.l.bf16 %v10427_v35  ;;  %v10539_v51 = vsel %vm5192_vm5, %v5164_v30, %v7565_v58  ;;  %v8030_v49 = vld [vmem:[#allocation2 + $0x130] sm:$0xff] }
 0x237   :  { %v10522_v39 = vpop.permute.xlu2 %7613  ;;  %v6439_v36 = vadd.f32 %v9565_v32, %v6374_v52  ;;  %v6069_v42 = vpop.f32.mrf.mxu2  ;;  %v5357_v24 = vsel %vm690_vm1, %v8029_v28, %v7551_v13  ;;  %v3382_v35 = vsel %vm2542_vm14, %v10516_v5, 0.0  ;;  %v5356_v14 = vsel %vm690_vm1, %v8030_v49, %v7550_v50 }
 0x238   :  { %v680_v29 = vmax.f32 %v616_v46, 0.0  ;;  %v10534_v4 = vpop.permute.xlu1 %7553  ;;  %v6070_v12 = vadd.f32 %v6069_v42, %v5900_v57  ;;  %v5902_v38 = vpop.f32.mrf.mxu1  ;;  %v7576_v13 = vunpack.i.h.bf16 %v10409_v0  ;;  %v11611_v57 = vld [vmem:[#allocation14_spill] sm:$0xff]  ;;  %v7777_v42 = vpack.i.bf16 %v3055_v10, %v10397_v33 }
 0x239   :  { %v2739_v53 = vld [vmem:[#allocation2 + $0x1c8] sm:$0xff]  ;;  %v6503_v60 = vmax.f32 %v6439_v36, 0.0  ;;  %vm2544_vm3 = vcmp.ge.s32.totalorder %v10529_v15, 1  ;;  %v5292_v50 = vsel %vm5257_vm6, %v5227_v6, %v7545_v20  ;;  %v11612_v33 = vunpack.i.l.bf16 %v10291_v8  ;;  %v6716_v6 = vld [vmem:[%s11566_s5 + $0x78] sm:$0xff] }
 0x23a   :  { %v10542_v43 = vld [vmem:[#allocation2 + $0x1c7] sm:$0xff]  ;;  %753 = vst.msk [vmem:[#allocation2 + $0x1d0] sm:$0xff] %vm690_vm1, %v680_v29  ;;  %v7787_v58 = vpack.i.bf16 %v2739_v53, %v2738_v31  ;;  %v6239_v52 = vadd.f32 %v11611_v57, %v6070_v12  ;;  %v5293_v31 = vsel %vm5257_vm6, %v10466_v18, %v7546_v3  ;;  %v11613_v12 = vunpack.i.h.bf16 %v10291_v8  ;;  %6746 = vmatpush.msrb.mxu0 %v6716_v6 }
 0x23b   :  { %v7792_v30 = vpack.i.bf16 %v10542_v43, %v3382_v35  ;;  %v469_v46 = vpop.f32.mrf.mxu0  ;;  %v6581_v28 = vsel %vm5192_vm5, %v6503_v60, 0.0  ;;  %v5420_v10 = vsel %vm5192_vm5, %v5356_v14, %v11612_v33  ;;  %v7571_v20 = vunpack.i.h.bf16 %v10511_v41 }
 0x23c   :  { %v552_v63 = vmul.f32 %v8202_v22, %v469_v46  ;;  %7788 = vrot.lane.b32.xlu0 %v7787_v58, %s8071_s9  ;;  %v6582_v36 = vadd.f32 %v6581_v28, %v6580_v9  ;;  %v6375_v29 = vmul.f32 %v9519_v48, %v6239_v52  ;;  %7778 = vrot.lane.b32.xlu1 %v7777_v42, %s8072_s11  ;;  %v7570_v18 = vunpack.i.l.bf16 %v10511_v41 }
 0x23d   :  { %v5421_v53 = vsel %vm5192_vm5, %v5357_v24, %v11613_v12  ;;  %7793 = vrot.lane.b32.xlu2 %v7792_v30, %s8072_s11  ;;  %v10580_v8 = vsel %vm2544_vm3, %v10411_v11, 0.0  ;;  %v8031_v24 = vld [vmem:[#allocation2 + $0x148] sm:$0xff]  ;;  %v7575_v49 = vunpack.i.l.bf16 %v10409_v0  ;;  %v3189_v52 = vsel %vm2927_vm2, %v10484_v56, 0.0 }
 0x23e   :  { %v617_v9 = vadd.f32 %v8204_v23, %v552_v63  ;;  %v10575_v3 = vpop.permute.xlu0 %7583  ;;  %11614 = vst [vmem:[#allocation5_spill] sm:$0xff] %v10580_v8  ;;  %v10583_v35 = vsel %vm690_vm1, %v8031_v24, %v7576_v13  ;;  %v6440_v41 = vadd.f32 %v9565_v32, %v6375_v29  ;;  %v3120_v63 = vsel %vm2542_vm14, %v10411_v11, 0.0  ;;  %v10605_v12 = vld [vmem:[#allocation2 + $0x1c1] sm:$0xff] }
 0x23f   :  { %v10587_v14 = vpop.permute.xlu2 %7618  ;;  %v6071_v57 = vpop.f32.mrf.mxu2  ;;  %v5484_v13 = vsel %vm5257_vm6, %v5420_v10, %v7570_v18  ;;  %v5485_v0 = vsel %vm5257_vm6, %v5421_v53, %v7571_v20  ;;  %v5565_v28 = vpack.c.bf16 %v5293_v31, %v5292_v50  ;;  %vm2929_vm4 = vcmp.lt.s32.totalorder %v10527_v47, 15  ;;  %v11615_v24 = vld [vmem:[#allocation16_spill] sm:$0xff] }
 0x240   :  { %v681_v60 = vmax.f32 %v617_v9, 0.0  ;;  %v10592_v30 = vpop.permute.xlu1 %7593  ;;  %v6504_v46 = vmax.f32 %v6440_v41, 0.0  ;;  %v5905_v42 = vpop.f32.mrf.mxu1  ;;  %v7580_v11 = vunpack.i.l.bf16 %v10469_v7  ;;  %v6072_v33 = vadd.f32 %v6071_v57, %v5902_v38 }
 0x241   :  { %v10599_v29 = vld [vmem:[#allocation2 + $0x1c9] sm:$0xff]  ;;  %v10610_v53 = vpop.f32.mrf.mxu3  ;;  %v7782_v6 = vpack.i.bf16 %v3189_v52, %v10493_v34  ;;  %v5566_v20 = vpack.c.bf16 %v5485_v0, %v5484_v13  ;;  %v7797_v25 = vpack.i.bf16 %v10430_v19, %v3120_v63  ;;  %v1217_v52 = vand.u32 255, %v819_v55 }
 0x242   :  { %754 = vst.msk [vmem:[#allocation2 + $0x1d8] sm:$0xff] %vm690_vm1, %v681_v60  ;;  %v3579_v10 = vsel %vm2927_vm2, %v10599_v29, 0.0  ;;  %v6583_v50 = vsel %vm5192_vm5, %v6504_v46, 0.0  ;;  %v6241_v38 = vadd.f32 %v11615_v24, %v6072_v33  ;;  %v8032_v60 = vld [vmem:[#allocation2 + $0x140] sm:$0xff]  ;;  %v10623_v13 = vadd.s32 432, %v8200_v21 }
 0x243   :  { %v472_v31 = vpop.f32.mrf.mxu0  ;;  %5944 = vmatmul.bf16.gmra.mxu1 %v5565_v28  ;;  %v5591_v18 = vpack.c.bf16 %v3579_v10, %v10605_v12  ;;  %v6584_v9 = vadd.f32 %v6583_v50, %v6582_v36  ;;  %v5358_v57 = vsel %vm690_vm1, %v8032_v60, %v7575_v49  ;;  %v11616_v36 = vld [vmem:[#allocation15_spill] sm:$0xff]  ;;  %v3191_v63 = vsel %vm2929_vm4, %v10599_v29, 0.0  ;;  %v2740_v10 = vld [vmem:[#allocation2 + $0x1d0] sm:$0xff] }
 0x244   :  { %v553_v41 = vmul.f32 %v8202_v22, %v472_v31  ;;  %7803 = vrot.lane.b32.xlu0 %v7787_v58, %s8073_s8  ;;  %7783 = vrot.lane.b32.xlu1 %v7782_v6, %s8071_s9  ;;  %v10627_v0 = vsel %vm690_vm1, %v11616_v36, %v7580_v11  ;;  %v6376_v58 = vmul.f32 %v9519_v48, %v6241_v38  ;;  %v10644_v50 = vsel %vm2929_vm4, %v10484_v56, 0.0 }
 0x245   :  { %6113 = vmatmul.bf16.gmra.mxu2 %v5566_v20  ;;  %7798 = vrot.lane.b32.xlu2 %v7797_v25, %s8073_s8  ;;  %v7586_v31 = vunpack.i.h.bf16 %v10575_v3  ;;  %v7585_v6 = vunpack.i.l.bf16 %v10575_v3  ;;  %v10650_v55 = vand.u32 15, %v1217_v52  ;;  %v7555_v3 = vunpack.i.l.bf16 %v10534_v4 }
 0x246   :  { %v618_v19 = vadd.f32 %v8204_v23, %v553_v41  ;;  %v7589_v49 = vpop.permute.xlu0 %7588  ;;  %6984 = vmatmul.msk.bf16.gmra.mxu3 %vm690_vm1, %v5591_v18  ;;  %v6441_v20 = vadd.f32 %v9565_v32, %v6376_v58  ;;  %v7807_v18 = vpack.i.bf16 %v3191_v63, %v10605_v12  ;;  %v7596_v58 = vunpack.i.h.bf16 %v10592_v30 }
 0x247   :  { %v10639_v11 = vpop.permute.xlu2 %7653  ;;  %v6074_v38 = vpop.f32.mrf.mxu2  ;;  %v7591_v41 = vunpack.i.h.bf16 %v7589_v49  ;;  %v7590_v56 = vunpack.i.l.bf16 %v7589_v49  ;;  %v5423_v52 = vsel %vm5192_vm5, %v10583_v35, %v7586_v31  ;;  %v5422_v63 = vsel %vm5192_vm5, %v5358_v57, %v7585_v6  ;;  %v11619_v6 = vld [vmem:[#allocation13_spill] sm:$0xff] }
 0x248   :  { %v682_v24 = vmax.f32 %v618_v19, 0.0  ;;  %v6075_v25 = vadd.f32 %v6074_v38, %v5905_v42  ;;  %v5907_v60 = vpop.f32.mrf.mxu1  ;;  %v6505_v33 = vmax.f32 %v6441_v20, 0.0  ;;  %v10653_v46 = vpop.permute.xlu1 %7598  ;;  %v7595_v19 = vunpack.i.l.bf16 %v10592_v30  ;;  %v11617_v42 = vld [vmem:[#allocation17_spill] sm:$0xff] }
 0x249   :  { %v2741_v36 = vld [vmem:[#allocation2 + $0x1d8] sm:$0xff]  ;;  %vm2931_vm7 = vcmp.lt.s32.totalorder %v10650_v55, 15  ;;  %v1210_v30 = vand.u32 255, %v10623_v13  ;;  %v820_v31 = vadd.s32 448, %v8200_v21  ;;  %v7621_v47 = vunpack.i.h.bf16 %v10587_v14 }
 0x24a   :  { %755 = vst.msk [vmem:[#allocation2 + $0x1e0] sm:$0xff] %vm690_vm1, %v682_v24  ;;  %v7817_v28 = vpack.i.bf16 %v2741_v36, %v2740_v10  ;;  %v6244_v38 = vadd.f32 %v11617_v42, %v6075_v25  ;;  %v6585_v20 = vsel %vm5192_vm5, %v6505_v33, 0.0  ;;  %v10665_v10 = vpop.f32.mrf.mxu3  ;;  %v10679_v33 = vld [vmem:[#allocation2 + $0x1cf] sm:$0xff]  ;;  %v5166_v25 = vsel %vm690_vm1, %v11619_v6, %v7555_v3 }
 0x24b   :  { %v475_v8 = vpop.f32.mrf.mxu0  ;;  %11618 = vst [vmem:[#allocation7_spill] sm:$0xff] %v10665_v10  ;;  %v6586_v24 = vadd.f32 %v6585_v20, %v6584_v9  ;;  %v5295_v9 = vsel %vm5257_vm6, %v10519_v61, %v7591_v41  ;;  %v5487_v42 = vsel %vm5257_vm6, %v5423_v52, %v7596_v58  ;;  %v7812_v61 = vpack.i.bf16 %v10644_v50, %v10493_v34  ;;  %v10691_v41 = vld [vmem:[#allocation2 + $0x1d7] sm:$0xff] }
 0x24c   :  { %v554_v49 = vmul.f32 %v8202_v22, %v475_v8  ;;  %7808 = vrot.lane.b32.xlu0 %v7807_v18, %s8071_s9  ;;  %v6377_v36 = vmul.f32 %v9519_v48, %v6244_v38  ;;  %7818 = vrot.lane.b32.xlu1 %v7817_v28, %s8071_s9  ;;  %v5294_v8 = vsel %vm5257_vm6, %v10539_v51, %v7590_v56  ;;  %v3059_v56 = vsel %vm2931_vm7, %v10599_v29, 0.0 }
 0x24d   :  { %7833 = vrot.lane.b32.xlu2 %v7817_v28, %s8073_s8  ;;  %v5486_v28 = vsel %vm5257_vm6, %v5422_v63, %v7595_v19  ;;  %v10699_v3 = vsel %vm2544_vm3, %v10516_v5, 0.0  ;;  %v5568_v63 = vpack.c.bf16 %v5295_v9, %v5294_v8  ;;  %v3384_v58 = vsel %vm2544_vm3, %v10679_v33, 0.0 }
 0x24e   :  { %v619_v35 = vadd.f32 %v8204_v23, %v554_v49  ;;  %v10673_v57 = vpop.permute.xlu0 %7608  ;;  %v6442_v13 = vadd.f32 %v9565_v32, %v6377_v36  ;;  %v10706_v34 = vand.u32 15, %v1210_v30  ;;  %v7600_v50 = vunpack.i.l.bf16 %v10653_v46 }
 0x24f   :  { %v10685_v18 = vpop.permute.xlu2 %7658  ;;  %v6076_v51 = vpop.f32.mrf.mxu2  ;;  %v5569_v49 = vpack.c.bf16 %v5487_v42, %v5486_v28  ;;  %v1224_v36 = vand.u32 255, %v820_v31  ;;  %v7822_v8 = vpack.i.bf16 %v10691_v41, %v3384_v58  ;;  %v7837_v15 = vpack.i.bf16 %v3059_v56, %v10605_v12  ;;  %v10720_v28 = vld [vmem:[#allocation2 + $0x1d1] sm:$0xff]  ;;  %v8033_v42 = vld [vmem:[#allocation2 + $0x147] sm:$0xff] }
 0x250   :  { %v683_v38 = vmax.f32 %v619_v35, 0.0  ;;  %v6506_v20 = vmax.f32 %v6442_v13, 0.0  ;;  %v5910_v19 = vpop.f32.mrf.mxu1  ;;  %v6077_v29 = vadd.f32 %v6076_v51, %v5907_v60  ;;  %v7601_v9 = vunpack.i.h.bf16 %v10653_v46  ;;  %v7604_v10 = vpop.permute.xlu1 %7603 }
 0x251   :  { %v10704_v52 = vld [vmem:[#allocation2 + $0x1d9] sm:$0xff]  ;;  %v7620_v58 = vunpack.i.l.bf16 %v10587_v14  ;;  %vm2546_vm8 = vcmp.ge.s32.totalorder %v10706_v34, 1  ;;  %vm6816_vm3 = vcmask 1043456  }
 0x252   :  { %756 = vst.msk [vmem:[#allocation2 + $0x1e8] sm:$0xff] %vm690_vm1, %v683_v38  ;;  %v6587_v35 = vsel %vm5192_vm5, %v6506_v20, 0.0  ;;  %v3581_v30 = vsel %vm2929_vm4, %v10704_v52, 0.0  ;;  %v6246_v60 = vadd.f32 %v9880_v40, %v6077_v29  ;;  %v11620_v38 = vunpack.i.h.bf16 %v10534_v4  ;;  %v10736_v56 = vld [vmem:[#allocation2 + $0x1df] sm:$0xff] }
 0x253   :  { %v478_v6 = vpop.f32.mrf.mxu0  ;;  %5949 = vmatmul.bf16.gmra.mxu1 %v5568_v63  ;;  %v6588_v13 = vadd.f32 %v6587_v35, %v6586_v24  ;;  %v5594_v46 = vpack.c.bf16 %v3581_v30, %v10720_v28  ;;  %v7827_v40 = vpack.i.bf16 %v10542_v43, %v10699_v3  ;;  %v5231_v24 = vsel %vm5192_vm5, %v5166_v25, %v7600_v50  ;;  %v10740_v63 = vpop.f32.mrf.mxu3 }
 0x254   :  { %v555_v31 = vmul.f32 %v8202_v22, %v478_v6  ;;  %7813 = vrot.lane.b32.xlu0 %v7812_v61, %s8072_s11  ;;  %v5167_v12 = vsel %vm690_vm1, %v8033_v42, %v11620_v38  ;;  %7823 = vrot.lane.b32.xlu1 %v7822_v8, %s8072_s11  ;;  %v6378_v51 = vmul.f32 %v9519_v48, %v6246_v60  ;;  %v10738_v20 = vand.u32 15, %v1224_v36  ;;  %v8035_v38 = vld [vmem:[#allocation2 + $0x150] sm:$0xff] }
 0x255   :  { %6118 = vmatmul.bf16.gmra.mxu2 %v5569_v49  ;;  %7838 = vrot.lane.b32.xlu2 %v7837_v15, %s8072_s11  ;;  %v7606_v29 = vunpack.i.h.bf16 %v7604_v10  ;;  %v7605_v43 = vunpack.i.l.bf16 %v7604_v10  ;;  %v5232_v3 = vsel %vm5192_vm5, %v5167_v12, %v7601_v9  ;;  %v3193_v36 = vsel %vm2931_vm7, %v10704_v52, 0.0 }
 0x256   :  { %v620_v61 = vadd.f32 %v8204_v23, %v555_v31  ;;  %v10734_v4 = vpop.permute.xlu0 %7623  ;;  %6985 = vmatmul.msk.bf16.gmra.mxu3 %vm690_vm1, %v5594_v46  ;;  %v6443_v50 = vadd.f32 %v9565_v32, %v6378_v51  ;;  %v3386_v10 = vsel %vm2546_vm8, %v10736_v56, 0.0  ;;  %v5296_v15 = vsel %vm5257_vm6, %v5231_v24, %v7620_v58 }
 0x257   :  { %v10744_v25 = vpop.permute.xlu2 %7663  ;;  %v6079_v35 = vpop.f32.mrf.mxu2  ;;  %v822_v30 = vadd.s32 464, %v8200_v21  ;;  %v821_v31 = vadd.s32 456, %v8200_v21  ;;  %vm2548_vm9 = vcmp.ge.s32.totalorder %v10738_v20, 1  ;;  %v5360_v12 = vsel %vm690_vm1, %v8035_v38, %v7605_v43 }
 0x258   :  { %v684_v49 = vmax.f32 %v620_v61, 0.0  ;;  %v6080_v6 = vadd.f32 %v6079_v35, %v5910_v19  ;;  %v5912_v14 = vpop.f32.mrf.mxu1  ;;  %v6507_v9 = vmax.f32 %v6443_v50, 0.0  ;;  %v8034_v19 = vld [vmem:[#allocation2 + $0x158] sm:$0xff]  ;;  %v7842_v51 = vpack.i.bf16 %v3193_v36, %v10720_v28 }
 0x259   :  { %v10752_v8 = vld [vmem:[#allocation2 + $0x1e7] sm:$0xff]  ;;  %v5361_v42 = vsel %vm690_vm1, %v8034_v19, %v7606_v29  ;;  %v7626_v58 = vunpack.i.h.bf16 %v10734_v4  ;;  %v7625_v50 = vunpack.i.l.bf16 %v10734_v4  ;;  %v1238_v43 = vand.u32 255, %v822_v30 }
 0x25a   :  { %757 = vst.msk [vmem:[#allocation2 + $0x1f0] sm:$0xff] %vm690_vm1, %v684_v49  ;;  %v7852_v60 = vpack.i.bf16 %v10752_v8, %v3386_v10  ;;  %v6249_v46 = vadd.f32 %v9969_v54, %v6080_v6  ;;  %v6589_v61 = vsel %vm5192_vm5, %v6507_v9, 0.0  ;;  %v5297_v54 = vsel %vm5257_vm6, %v5232_v3, %v7621_v47  ;;  %v8036_v47 = vld [vmem:[#allocation2 + $0x157] sm:$0xff]  ;;  %v2743_v19 = vld [vmem:[#allocation2 + $0x1e8] sm:$0xff] }
 0x25b   :  { %v481_v24 = vpop.f32.mrf.mxu0  ;;  %v6590_v35 = vadd.f32 %v6589_v61, %v6588_v13  ;;  %v1231_v4 = vand.u32 255, %v821_v31  ;;  %v10784_v13 = vsel %vm2546_vm8, %v10516_v5, 0.0  ;;  %v11623_v3 = vunpack.i.h.bf16 %v10469_v7  ;;  %v2742_v31 = vld [vmem:[#allocation2 + $0x1e0] sm:$0xff] }
 0x25c   :  { %v556_v49 = vmul.f32 %v8202_v22, %v481_v24  ;;  %7853 = vrot.lane.b32.xlu0 %v7852_v60, %s8072_s11  ;;  %v6379_v29 = vmul.f32 %v9519_v48, %v6249_v46  ;;  %7828 = vrot.lane.b32.xlu1 %v7827_v40, %s8073_s8  ;;  %11621 = vst [vmem:[#allocation6_spill] sm:$0xff] %v10784_v13  ;;  %v10789_v40 = vsel %vm2548_vm9, %v10679_v33, 0.0  ;;  %v11624_v5 = vunpack.i.l.bf16 %v10522_v39 }
 0x25d   :  { %7843 = vrot.lane.b32.xlu2 %v7842_v51, %s8071_s9  ;;  %11622 = vst [vmem:[#allocation11_spill] sm:$0xff] %v10789_v40  ;;  %v10794_v30 = vsel %vm690_vm1, %v8036_v47, %v11623_v3  ;;  %v11625_v46 = vunpack.i.h.bf16 %v10522_v39  ;;  %v3124_v7 = vsel %vm2546_vm8, %v10679_v33, 0.0  ;;  %v10810_v47 = vpop.f32.mrf.mxu3  ;;  %v5571_v13 = vpack.c.bf16 %v5297_v54, %v5296_v15  ;;  %v10822_v15 = vld [vmem:[#allocation2 + $0x1e1] sm:$0xff] }
 0x25e   :  { %v621_v36 = vadd.f32 %v8204_v23, %v556_v49  ;;  %v10777_v6 = vpop.permute.xlu0 %7628  ;;  %v10779_v10 = vpop.permute.xlu1 %7638  ;;  %v6444_v9 = vadd.f32 %v9565_v32, %v6379_v29  ;;  %v5424_v38 = vsel %vm5192_vm5, %v5360_v12, %v11624_v5  ;;  %11626 = vst [vmem:[#allocation9_spill] sm:$0xff] %v10810_v47  ;;  %v7857_v12 = vpack.i.bf16 %v10691_v41, %v3124_v7 }
 0x25f   :  { %v10797_v60 = vpop.permute.xlu2 %7668  ;;  %v5425_v24 = vsel %vm5192_vm5, %v5361_v42, %v11625_v46  ;;  %v6081_v61 = vpop.f32.mrf.mxu2  ;;  %v5488_v49 = vsel %vm5257_vm6, %v5424_v38, %v7625_v50  ;;  %v10815_v42 = vand.u32 15, %v1238_v43  ;;  %v7862_v34 = vpack.i.bf16 %v2743_v19, %v2742_v31 }
 0x260   :  { %v685_v51 = vmax.f32 %v621_v36, 0.0  ;;  %v5489_v29 = vsel %vm5257_vm6, %v5425_v24, %v7626_v58  ;;  %v6508_v3 = vmax.f32 %v6444_v9, 0.0  ;;  %v5915_v40 = vpop.f32.mrf.mxu1  ;;  %v7610_v36 = vunpack.i.l.bf16 %v10673_v57 }
 0x261   :  { %v10813_v39 = vld [vmem:[#allocation2 + $0x1e9] sm:$0xff]  ;;  %v6082_v33 = vadd.f32 %v6081_v61, %v5912_v14  ;;  %v10819_v50 = vand.u32 15, %v1231_v4  ;;  %v5572_v9 = vpack.c.bf16 %v5489_v29, %v5488_v49  ;;  %vm2550_vm10 = vcmp.ge.s32.totalorder %v10815_v42, 1 }
 0x262   :  { %758 = vst.msk [vmem:[#allocation2 + $0x1f8] sm:$0xff] %vm690_vm1, %v685_v51  ;;  %v6591_v58 = vsel %vm5192_vm5, %v6508_v3, 0.0  ;;  %v3583_v41 = vsel %vm2931_vm7, %v10813_v39, 0.0  ;;  %v10840_v24 = vld [vmem:[#allocation2 + $0x1ef] sm:$0xff]  ;;  %v10845_v51 = vsel %vm2550_vm10, %v10736_v56, 0.0  ;;  %v10849_v61 = vsel %vm690_vm1, %v9878_v45, %v7610_v36 }
 0x263   :  { %v484_v5 = vpop.f32.mrf.mxu0  ;;  %5954 = vmatmul.bf16.gmra.mxu1 %v5571_v13  ;;  %v6592_v54 = vadd.f32 %v6591_v58, %v6590_v35  ;;  %v6251_v43 = vadd.f32 %v10044_v17, %v6082_v33  ;;  %v5597_v14 = vpack.c.bf16 %v3583_v41, %v10822_v15  ;;  %11627 = vst [vmem:[#allocation10_spill] sm:$0xff] %v10845_v51  ;;  %v7631_v49 = vunpack.i.h.bf16 %v10777_v6  ;;  %v2744_v3 = vld [vmem:[#allocation2 + $0x1f0] sm:$0xff] }
 0x264   :  { %v557_v38 = vmul.f32 %v8202_v22, %v484_v5  ;;  %7858 = vrot.lane.b32.xlu0 %v7857_v12, %s8073_s8  ;;  %7863 = vrot.lane.b32.xlu1 %v7862_v34, %s8073_s8  ;;  %vm2933_vm11 = vcmp.lt.s32.totalorder %v10819_v50, 15  ;;  %v7630_v12 = vunpack.i.l.bf16 %v10777_v6  ;;  %v823_v6 = vadd.s32 472, %v8200_v21 }
 0x265   :  { %6123 = vmatmul.bf16.gmra.mxu2 %v5572_v9  ;;  %v6380_v17 = vmul.f32 %v9519_v48, %v6251_v43  ;;  %7848 = vrot.lane.b32.xlu2 %v7862_v34, %s8071_s9  ;;  %v3195_v45 = vsel %vm2933_vm11, %v10813_v39, 0.0  ;;  %v10870_v55 = vpop.f32.mrf.mxu3  ;;  %v3126_v47 = vsel %vm2548_vm9, %v10736_v56, 0.0 }
 0x266   :  { %v622_v35 = vadd.f32 %v8204_v23, %v557_v38  ;;  %v7634_v19 = vpop.permute.xlu0 %7633  ;;  %v7644_v46 = vpop.permute.xlu1 %7643  ;;  %6986 = vmatmul.msk.bf16.gmra.mxu3 %vm690_vm1, %v5597_v14  ;;  %v3388_v38 = vsel %vm2548_vm9, %v10840_v24, 0.0  ;;  %v7867_v51 = vpack.i.bf16 %v3195_v45, %v10822_v15  ;;  %v7892_v50 = vpack.i.bf16 %v10752_v8, %v3126_v47 }
 0x267   :  { %v10854_v29 = vpop.permute.xlu2 %7703  ;;  %v6445_v33 = vadd.f32 %v9565_v32, %v6380_v17  ;;  %v6084_v58 = vpop.f32.mrf.mxu2  ;;  %v7646_v36 = vunpack.i.h.bf16 %v7644_v46  ;;  %v7645_v5 = vunpack.i.l.bf16 %v7644_v46  ;;  %v8037_v46 = vld [vmem:[#allocation2 + $0x168] sm:$0xff]  ;;  %v7636_v4 = vunpack.i.h.bf16 %v7634_v19 }
 0x268   :  { %v686_v34 = vmax.f32 %v622_v35, 0.0  ;;  %v5917_v9 = vpop.f32.mrf.mxu1  ;;  %v6085_v17 = vadd.f32 %v6084_v58, %v5915_v40  ;;  %v5363_v31 = vsel %vm690_vm1, %v8037_v46, %v7631_v49  ;;  %v7666_v58 = vunpack.i.h.bf16 %v10744_v25  ;;  %v8038_v49 = vld [vmem:[#allocation2 + $0x160] sm:$0xff] }
 0x269   :  { %v2745_v41 = vld [vmem:[#allocation2 + $0x1f8] sm:$0xff]  ;;  %v6509_v14 = vmax.f32 %v6445_v33, 0.0  ;;  %v5427_v45 = vsel %vm5192_vm5, %v5363_v31, %v7646_v36 }
 0x26a   :  { %v10862_v43 = vld [vmem:[#allocation2 + $0x1f7] sm:$0xff]  ;;  %759 = vst.msk [vmem:[#allocation2 + $0x200] sm:$0xff] %vm690_vm1, %v686_v34  ;;  %v7872_v35 = vpack.i.bf16 %v2745_v41, %v2744_v3  ;;  %v7635_v34 = vunpack.i.l.bf16 %v7634_v19  ;;  %v6254_v40 = vadd.f32 %v10128_v44, %v6085_v17  ;;  %v5362_v41 = vsel %vm690_vm1, %v8038_v49, %v7630_v12 }
 0x26b   :  { %v7877_v7 = vpack.i.bf16 %v10862_v43, %v3388_v38  ;;  %v487_v13 = vpop.f32.mrf.mxu0  ;;  %v6593_v33 = vsel %vm5192_vm5, %v6509_v14, 0.0  ;;  %v5426_v56 = vsel %vm5192_vm5, %v5362_v41, %v7645_v5  ;;  %v1245_v14 = vand.u32 255, %v823_v6 }
 0x26c   :  { %v558_v3 = vmul.f32 %v8202_v22, %v487_v13  ;;  %7873 = vrot.lane.b32.xlu0 %v7872_v35, %s8071_s9  ;;  %v6594_v38 = vadd.f32 %v6593_v33, %v6592_v54  ;;  %7868 = vrot.lane.b32.xlu1 %v7867_v51, %s8071_s9  ;;  %v6381_v20 = vmul.f32 %v9519_v48, %v6254_v40  ;;  %v3061_v51 = vsel %vm2933_vm11, %v10704_v52, 0.0 }
 0x26d   :  { %7878 = vrot.lane.b32.xlu2 %v7877_v7, %s8072_s11  ;;  %v5234_v12 = vsel %vm5192_vm5, %v10794_v30, %v7636_v4  ;;  %v5233_v36 = vsel %vm5192_vm5, %v10627_v0, %v7635_v34  ;;  %v11628_v30 = vunpack.i.l.bf16 %v10639_v11  ;;  %v10912_v34 = vld [vmem:[#allocation2 + $0x1f1] sm:$0xff] }
 0x26e   :  { %v623_v44 = vadd.f32 %v8204_v23, %v558_v3  ;;  %v7649_v13 = vpop.permute.xlu1 %7648  ;;  %v10889_v19 = vpop.permute.xlu0 %7673  ;;  %v6446_v7 = vadd.f32 %v9565_v32, %v6381_v20  ;;  %v11629_v3 = vunpack.i.h.bf16 %v10639_v11  ;;  %v10917_v20 = vand.u32 15, %v1245_v14  ;;  %v8039_v14 = vld [vmem:[#allocation2 + $0x167] sm:$0xff] }
 0x26f   :  { %v7651_v54 = vunpack.i.h.bf16 %v7649_v13  ;;  %v7650_v17 = vunpack.i.l.bf16 %v7649_v13  ;;  %v10893_v31 = vpop.permute.xlu2 %7708  ;;  %v6086_v46 = vpop.f32.mrf.mxu2  ;;  %v5490_v4 = vsel %vm5257_vm6, %v5426_v56, %v11628_v30  ;;  %v11631_v30 = vunpack.i.h.bf16 %v10685_v18 }
 0x270   :  { %v687_v5 = vmax.f32 %v623_v44, 0.0  ;;  %v6087_v33 = vadd.f32 %v6086_v46, %v5917_v9  ;;  %v5920_v6 = vpop.f32.mrf.mxu1  ;;  %v5491_v49 = vsel %vm5257_vm6, %v5427_v45, %v11629_v3  ;;  %v6510_v41 = vmax.f32 %v6446_v7, 0.0 }
 0x271   :  { %v5298_v40 = vsel %vm5257_vm6, %v5233_v36, %v7650_v17  ;;  %v10908_v52 = vld [vmem:[#allocation2 + $0x1f9] sm:$0xff]  ;;  %v5299_v0 = vsel %vm5257_vm6, %v5234_v12, %v7651_v54  ;;  %v7887_v45 = vpack.i.bf16 %v3061_v51, %v10720_v28  ;;  %v5575_v54 = vpack.c.bf16 %v5491_v49, %v5490_v4  ;;  %v10926_v36 = vpop.f32.mrf.mxu3 }
 0x272   :  { %760 = vst.msk [vmem:[#allocation2 + $0x208] sm:$0xff] %vm690_vm1, %v687_v5  ;;  %v3585_v9 = vsel %vm2933_vm11, %v10908_v52, 0.0  ;;  %v6256_v56 = vadd.f32 %v10203_v2, %v6087_v33  ;;  %v5574_v44 = vpack.c.bf16 %v5299_v0, %v5298_v40  ;;  %v6595_v17 = vsel %vm5192_vm5, %v6510_v41, 0.0  ;;  %v2746_v40 = vld [vmem:[#allocation2 + $0x200] sm:$0xff]  ;;  %v8040_v41 = vld [vmem:[#allocation2 + $0x178] sm:$0xff] }
 0x273   :  { %v490_v11 = vpop.f32.mrf.mxu0  ;;  %v5600_v13 = vpack.c.bf16 %v3585_v9, %v10912_v34  ;;  %v11630_v2 = vunpack.i.h.bf16 %v10673_v57  ;;  %v7665_v28 = vunpack.i.l.bf16 %v10744_v25  ;;  %v6596_v51 = vadd.f32 %v6595_v17, %v6594_v38 }
 0x274   :  { %v559_v12 = vmul.f32 %v8202_v22, %v490_v11  ;;  %7883 = vrot.lane.b32.xlu0 %v7872_v35, %s8073_s8  ;;  %v6382_v5 = vmul.f32 %v9519_v48, %v6256_v56  ;;  %5959 = vmatmul.bf16.gmra.mxu1 %v5574_v44  ;;  %v6714_v35 = vld [vmem:[%s11566_s5 + $0x68] sm:$0xff]  ;;  %vm2935_vm0 = vcmp.lt.s32.totalorder %v10917_v20, 15  ;;  %v825_v38 = vadd.s32 488, %v8200_v21  ;;  %v8041_v44 = vld [vmem:[#allocation2 + $0x170] sm:$0xff] }
 0x275   :  { %v5171_v7 = vsel %vm690_vm1, %v8039_v14, %v11630_v2  ;;  %7888 = vrot.lane.b32.xlu1 %v7887_v45, %s8072_s11  ;;  %6128 = vmatmul.bf16.gmra.mxu2 %v5575_v54  ;;  %v3197_v33 = vsel %vm2935_vm0, %v10908_v52, 0.0  ;;  %v11632_v3 = vunpack.i.l.bf16 %v10685_v18  ;;  %v5365_v0 = vsel %vm690_vm1, %v8040_v41, %v7666_v58 }
 0x276   :  { %v624_v8 = vadd.f32 %v8204_v23, %v559_v12  ;;  %7893 = vrot.lane.b32.xlu2 %v7892_v50, %s8073_s8  ;;  %v10939_v57 = vpop.permute.xlu1 %7683  ;;  %v7679_v47 = vpop.permute.xlu0 %7678  ;;  %v6447_v46 = vadd.f32 %v9565_v32, %v6382_v5  ;;  %6987 = vmatmul.msk.bf16.gmra.mxu3 %vm690_vm1, %v5600_v13  ;;  %v5236_v4 = vsel %vm5192_vm5, %v5171_v7, %v11631_v30  ;;  %v824_v54 = vadd.s32 480, %v8200_v21 }
 0x277   :  { %v5235_v49 = vsel %vm5192_vm5, %v10849_v61, %v11632_v3  ;;  %v10958_v56 = vpop.permute.xlu2 %7743  ;;  %6767 = vmatpush.msrb.mxu3 %v6714_v35  ;;  %v5364_v45 = vsel %vm690_vm1, %v8041_v44, %v7665_v28  ;;  %v7897_v25 = vpack.i.bf16 %v3197_v33, %v10912_v34  ;;  %v1259_v58 = vand.u32 255, %v825_v38 }
 0x278   :  { %v688_v9 = vmax.f32 %v624_v8, 0.0  ;;  %v6089_v11 = vpop.f32.mrf.mxu2  ;;  %v6511_v13 = vmax.f32 %v6447_v46, 0.0  ;;  %v5922_v12 = vpop.f32.mrf.mxu1  ;;  %v7681_v14 = vunpack.i.h.bf16 %v7679_v47  ;;  %v7680_v2 = vunpack.i.l.bf16 %v7679_v47 }
 0x279   :  { %v6090_v17 = vadd.f32 %v6089_v11, %v5920_v6  ;;  %v2747_v18 = vld [vmem:[#allocation2 + $0x208] sm:$0xff]  ;;  %v7676_v28 = vunpack.i.h.bf16 %v10889_v19  ;;  %v7675_v6 = vunpack.i.l.bf16 %v10889_v19  ;;  %v7686_v46 = vunpack.i.h.bf16 %v10939_v57  ;;  %v6713_v19 = vld [vmem:[%s11566_s5 + $0x60] sm:$0xff] }
 0x27a   :  { %761 = vst.msk [vmem:[#allocation2 + $0x210] sm:$0xff] %vm690_vm1, %v688_v9  ;;  %v7902_v61 = vpack.i.bf16 %v2747_v18, %v2746_v40  ;;  %v6597_v50 = vsel %vm5192_vm5, %v6511_v13, 0.0  ;;  %v7685_v38 = vunpack.i.l.bf16 %v10939_v57  ;;  %v10987_v40 = vld [vmem:[#allocation2 + $0x1ff] sm:$0xff]  ;;  %v10989_v30 = vand.u32 15, %v1259_v58  ;;  %6747 = vmatpush.msrb.mxu0 %v6713_v19 }
 0x27b   :  { %v6259_v7 = vadd.f32 %v10255_v27, %v6090_v17  ;;  %v493_v5 = vpop.f32.mrf.mxu0  ;;  %v6598_v35 = vadd.f32 %v6597_v50, %v6596_v51  ;;  %v3063_v27 = vsel %vm2935_vm0, %v10813_v39, 0.0  ;;  %v1252_v3 = vand.u32 255, %v824_v54  ;;  %v10991_v39 = vpop.f32.mrf.mxu3  ;;  %v11000_v54 = vld [vmem:[#allocation2 + $0x207] sm:$0xff] }
 0x27c   :  { %v560_v8 = vmul.f32 %v8202_v22, %v493_v5  ;;  %7898 = vrot.lane.b32.xlu0 %v7897_v25, %s8071_s9  ;;  %v7641_v22 = vunpack.i.h.bf16 %v10779_v10  ;;  %v7640_v41 = vunpack.i.l.bf16 %v10779_v10  ;;  %v5301_v11 = vsel %vm5257_vm6, %v5236_v4, %v7681_v14 }
 0x27d   :  { %v6383_v33 = vmul.f32 %v9519_v48, %v6259_v7  ;;  %7903 = vrot.lane.b32.xlu1 %v7902_v61, %s8071_s9  ;;  %v5429_v44 = vsel %vm5192_vm5, %v5365_v0, %v7676_v28  ;;  %v5428_v13 = vsel %vm5192_vm5, %v5364_v45, %v7675_v6  ;;  %v7917_v25 = vpack.i.bf16 %v3063_v27, %v10822_v15  ;;  %v8042_v27 = vld [vmem:[#allocation2 + $0x177] sm:$0xff] }
 0x27e   :  { %v625_v51 = vadd.f32 %v8204_v23, %v560_v8  ;;  %7913 = vrot.lane.b32.xlu2 %v7902_v61, %s8073_s8  ;;  %v10983_v47 = vpop.permute.xlu1 %7688  ;;  %v10985_v57 = vpop.permute.xlu0 %7698  ;;  %v5300_v23 = vsel %vm5257_vm6, %v5235_v49, %v7680_v2  ;;  %v3390_v10 = vsel %vm2550_vm10, %v10987_v40, 0.0  ;;  %v5492_v49 = vsel %vm5257_vm6, %v5428_v13, %v7685_v38 }
 0x27f   :  { %v6448_v9 = vadd.f32 %v9565_v32, %v6383_v33  ;;  %v5493_v4 = vsel %vm5257_vm6, %v5429_v44, %v7686_v46  ;;  %v11010_v0 = vpop.permute.xlu2 %7748  ;;  %v5577_v15 = vpack.c.bf16 %v5301_v11, %v5300_v23  ;;  %vm2937_vm12 = vcmp.lt.s32.totalorder %v10989_v30, 15  ;;  %v11025_v46 = vld [vmem:[#allocation2 + $0x201] sm:$0xff] }
 0x280   :  { %v689_v17 = vmax.f32 %v625_v51, 0.0  ;;  %v6091_v18 = vpop.f32.mrf.mxu2  ;;  %v5925_v58 = vpop.f32.mrf.mxu1  ;;  %v11013_v14 = vand.u32 15, %v1252_v3  ;;  %v7907_v7 = vpack.i.bf16 %v11000_v54, %v3390_v10  ;;  %v5578_v8 = vpack.c.bf16 %v5493_v4, %v5492_v49 }
 0x281   :  { %v6512_v61 = vmax.f32 %v6448_v9, 0.0  ;;  %v11007_v50 = vld [vmem:[#allocation2 + $0x209] sm:$0xff]  ;;  %v6092_v45 = vadd.f32 %v6091_v18, %v5922_v12  ;;  %v826_v38 = vadd.s32 496, %v8200_v21  ;;  %v5173_v19 = vsel %vm690_vm1, %v8042_v27, %v7641_v22 }
 0x282   :  { %762 = vst.msk [vmem:[#allocation2 + $0x218] sm:$0xff] %vm690_vm1, %v689_v17  ;;  %v3587_v5 = vsel %vm2935_vm0, %v11007_v50, 0.0  ;;  %v3199_v28 = vsel %vm2937_vm12, %v11007_v50, 0.0  ;;  %v11035_v3 = vld [vmem:[#allocation2 + $0x20f] sm:$0xff]  ;;  %v5172_v9 = vsel %vm690_vm1, %v10001_v37, %v7640_v41  ;;  %v3128_v22 = vsel %vm2550_vm10, %v10840_v24, 0.0 }
 0x283   :  { %v6599_v2 = vsel %vm5192_vm5, %v6512_v61, 0.0  ;;  %v6261_v12 = vadd.f32 %v10324_v1, %v6092_v45  ;;  %v5603_v20 = vpack.c.bf16 %v3587_v5, %v11025_v46  ;;  %v7927_v33 = vpack.i.bf16 %v3199_v28, %v11025_v46  ;;  %v8044_v5 = vld [vmem:[#allocation2 + $0x180] sm:$0xff] }
 0x284   :  { %v6600_v6 = vadd.f32 %v6599_v2, %v6598_v35  ;;  %7918 = vrot.lane.b32.xlu0 %v7917_v25, %s8072_s11  ;;  %5964 = vmatmul.bf16.gmra.mxu1 %v5577_v15  ;;  %v7706_v44 = vunpack.i.h.bf16 %v10854_v29  ;;  %vm2552_vm13 = vcmp.ge.s32.totalorder %v11013_v14, 1  ;;  %v1266_v18 = vand.u32 255, %v826_v38  ;;  %v11047_v25 = vpop.f32.mrf.mxu3 }
 0x285   :  { %7908 = vrot.lane.b32.xlu1 %v7907_v7, %s8072_s11  ;;  %v6384_v35 = vmul.f32 %v9519_v48, %v6261_v12  ;;  %6133 = vmatmul.bf16.gmra.mxu2 %v5578_v8  ;;  %v7705_v37 = vunpack.i.l.bf16 %v10854_v29  ;;  %v7691_v41 = vunpack.i.h.bf16 %v10983_v47  ;;  %v7690_v61 = vunpack.i.l.bf16 %v10983_v47  ;;  %v8043_v29 = vld [vmem:[#allocation2 + $0x188] sm:$0xff] }
 0x286   :  { %v7694_v1 = vpop.permute.xlu1 %7693  ;;  %v11033_v51 = vpop.permute.xlu0 %7713  ;;  %6988 = vmatmul.msk.bf16.gmra.mxu3 %vm690_vm1, %v5603_v20  ;;  %7928 = vrot.lane.b32.xlu2 %v7927_v33, %s8071_s9  ;;  %v3392_v42 = vsel %vm2552_vm13, %v11035_v3, 0.0  ;;  %v3065_v2 = vsel %vm2937_vm12, %v10908_v52, 0.0  ;;  %v7922_v28 = vpack.i.bf16 %v10862_v43, %v3128_v22  ;;  %v827_v12 = vadd.s32 504, %v8200_v21 }
 0x287   :  { %v7696_v23 = vunpack.i.h.bf16 %v7694_v1  ;;  %v7695_v11 = vunpack.i.l.bf16 %v7694_v1  ;;  %v6449_v13 = vadd.f32 %v9565_v32, %v6384_v35  ;;  %v7711_v8 = vunpack.i.h.bf16 %v10893_v31  ;;  %v11067_v38 = vpop.permute.xlu2 %7753 }
 0x288   :  { %v6094_v17 = vpop.f32.mrf.mxu2  ;;  %v5927_v10 = vpop.f32.mrf.mxu1  ;;  %v11071_v52 = vand.u32 15, %v1266_v18  ;;  %v5238_v33 = vsel %vm5192_vm5, %v5173_v19, %v7691_v41  ;;  %v5237_v27 = vsel %vm5192_vm5, %v5172_v9, %v7690_v61  ;;  %v7942_v21 = vpack.i.bf16 %v3065_v2, %v10912_v34 }
 0x289   :  { %v11052_v49 = vld [vmem:[#allocation2 + $0x217] sm:$0xff]  ;;  %v6513_v4 = vmax.f32 %v6449_v13, 0.0  ;;  %v6095_v45 = vadd.f32 %v6094_v17, %v5925_v58  ;;  %v5367_v7 = vsel %vm690_vm1, %v8043_v29, %v7696_v23  ;;  %v5366_v47 = vsel %vm690_vm1, %v8044_v5, %v7695_v11 }
 0x28a   :  { %v7932_v15 = vpack.i.bf16 %v11052_v49, %v3392_v42  ;;  %v7710_v43 = vunpack.i.l.bf16 %v10893_v31  ;;  %v11083_v11 = vld [vmem:[#allocation2 + $0x210] sm:$0xff]  ;;  %v11085_v22 = vld [vmem:[#allocation2 + $0x218] sm:$0xff]  ;;  %v5430_v19 = vsel %vm5192_vm5, %v5366_v47, %v7705_v37  ;;  %v7716_v9 = vunpack.i.h.bf16 %v11033_v51 }
 0x28b   :  { %v6601_v58 = vsel %vm5192_vm5, %v6513_v4, 0.0  ;;  %v6264_v20 = vadd.f32 %v10399_v16, %v6095_v45  ;;  %v7715_v34 = vunpack.i.l.bf16 %v11033_v51  ;;  %v3130_v31 = vsel %vm2552_vm13, %v10987_v40, 0.0  ;;  %v3137_v13 = vld [vmem:[#allocation2 + $0x219] sm:$0xff]  ;;  %v3136_v29 = vld [vmem:[#allocation2 + $0x211] sm:$0xff] }
 0x28c   :  { %7933 = vrot.lane.b32.xlu0 %v7932_v15, %s8072_s11  ;;  %v6602_v35 = vadd.f32 %v6601_v58, %v6600_v6  ;;  %v5431_v6 = vsel %vm5192_vm5, %v5367_v7, %v7706_v44  ;;  %v1273_v17 = vand.u32 255, %v827_v12  ;;  %v5302_v61 = vsel %vm5257_vm6, %v5237_v27, %v7710_v43  ;;  %v11106_v5 = vpop.f32.mrf.mxu3 }
 0x28d   :  { %7923 = vrot.lane.b32.xlu1 %v7922_v28, %s8073_s8  ;;  %v6385_v1 = vmul.f32 %v9519_v48, %v6264_v20  ;;  %v5303_v37 = vsel %vm5257_vm6, %v5238_v33, %v7711_v8  ;;  %vm2554_vm14 = vcmp.ge.s32.totalorder %v11071_v52, 1  ;;  %v7937_v51 = vpack.i.bf16 %v11085_v22, %v11083_v11 }
 0x28e   :  { %v11079_v23 = vpop.permute.xlu0 %7718  ;;  %v11081_v16 = vpop.permute.xlu1 %7728  ;;  %7943 = vrot.lane.b32.xlu2 %v7942_v21, %s8072_s11  ;;  %v7947_v42 = vpack.i.bf16 %v11000_v54, %v3130_v31  ;;  %v5494_v4 = vsel %vm5257_vm6, %v5430_v19, %v7715_v34  ;;  %v5495_v45 = vsel %vm5257_vm6, %v5431_v6, %v7716_v9  ;;  %v3589_v7 = vsel %vm2937_vm12, %v3137_v13, 0.0 }
 0x28f   :  { %v6450_v18 = vadd.f32 %v9565_v32, %v6385_v1  ;;  %v5580_v47 = vpack.c.bf16 %v5303_v37, %v5302_v61  ;;  %v11108_v28 = vand.u32 15, %v1273_v17  ;;  %v11113_v12 = vsel %vm2552_vm13, %v10840_v24, 0.0  ;;  %v11124_v14 = vpop.permute.xlu2 %7758  ;;  %v8045_v61 = vld [vmem:[#allocation2 + $0x198] sm:$0xff] }
 0x290   :  { %v6096_v41 = vpop.f32.mrf.mxu2  ;;  %v5930_v44 = vpop.f32.mrf.mxu1  ;;  %v11118_v54 = vsel %vm2554_vm14, %v10987_v40, 0.0  ;;  %v5581_v8 = vpack.c.bf16 %v5495_v45, %v5494_v4  ;;  %v5606_v20 = vpack.c.bf16 %v3589_v7, %v3136_v29  ;;  %v11633_v40 = vmov 0.0  }
 0x291   :  { %v6514_v15 = vmax.f32 %v6450_v18, 0.0  ;;  %v6097_v2 = vadd.f32 %v6096_v41, %v5927_v10  ;;  %vm2939_vm15 = vcmp.lt.s32.totalorder %v11108_v28, 15  ;;  %v7721_v27 = vunpack.i.h.bf16 %v11079_v23 }
 0x292   :  { %v3201_v1 = vsel %vm2939_vm15, %v3137_v13, 0.0  ;;  %v7671_v17 = vunpack.i.h.bf16 %v10797_v60  ;;  %v7670_v18 = vunpack.i.l.bf16 %v10797_v60 }
 0x293   :  { %v6603_v10 = vsel %vm5192_vm5, %v6514_v15, 0.0  ;;  %v6266_v30 = vadd.f32 %v10462_v26, %v6097_v2  ;;  %v7957_v41 = vpack.i.bf16 %v3201_v1, %v3136_v29  ;;  %v5369_v37 = vsel %vm690_vm1, %v8045_v61, %v7721_v27 }
 0x294   :  { %7948 = vrot.lane.b32.xlu0 %v7947_v42, %s8073_s8  ;;  %v6604_v58 = vadd.f32 %v6603_v10, %v6602_v35  ;;  %5969 = vmatmul.bf16.gmra.mxu1 %v5580_v47  ;;  %v7720_v35 = vunpack.i.l.bf16 %v11079_v23  ;;  %v3132_v23 = vsel %vm2554_vm14, %v11035_v3, 0.0  ;;  %v8047_v47 = vld [vmem:[#allocation2 + $0x187] sm:$0xff] }
 0x295   :  { %7938 = vrot.lane.b32.xlu1 %v7937_v51, %s8073_s8  ;;  %v6386_v24 = vmul.f32 %v9519_v48, %v6266_v30  ;;  %6138 = vmatmul.bf16.gmra.mxu2 %v5581_v8  ;;  %v8046_v51 = vld [vmem:[#allocation2 + $0x190] sm:$0xff]  ;;  %v7972_v3 = vpack.i.bf16 %v11052_v49, %v3132_v23  ;;  %v5175_v10 = vsel %vm690_vm1, %v8047_v47, %v7671_v17  ;;  %v7746_v30 = vunpack.i.h.bf16 %v10958_v56 }
 0x296   :  { %v7724_v33 = vpop.permute.xlu0 %7723  ;;  %7953 = vrot.lane.b32.xlu2 %v11633_v40, %s8072_s11  ;;  %6989 = vmatmul.msk.bf16.gmra.mxu3 %vm690_vm1, %v5606_v20  ;;  %v7734_v26 = vpop.permute.xlu1 %7733  ;;  %v5368_v13 = vsel %vm690_vm1, %v8046_v51, %v7720_v35  ;;  %v7745_v8 = vunpack.i.l.bf16 %v10958_v56  ;;  %v11634_v51 = vmov 0.0|0.0   ;;  %v7755_v47 = vunpack.i.l.bf16 %v11067_v38 }
 0x297   :  { %v6451_v21 = vadd.f32 %v9565_v32, %v6386_v24  ;;  %v7736_v9 = vunpack.i.h.bf16 %v7734_v26  ;;  %v7735_v34 = vunpack.i.l.bf16 %v7734_v26  ;;  %v7726_v45 = vunpack.i.h.bf16 %v7724_v33 }
 0x298   :  { %v6099_v43 = vpop.f32.mrf.mxu2  ;;  %v5932_v19 = vpop.f32.mrf.mxu1  ;;  %v7725_v15 = vunpack.i.l.bf16 %v7724_v33 }
 0x299   :  { %v6515_v6 = vmax.f32 %v6451_v21, 0.0  ;;  %v6100_v31 = vadd.f32 %v6099_v43, %v5930_v44  ;;  %v11147_v44 = vpop.f32.mrf.mxu3  ;;  %v5433_v52 = vsel %vm5192_vm5, %v5369_v37, %v7736_v9  ;;  %v5432_v2 = vsel %vm5192_vm5, %v5368_v13, %v7735_v34 }
 0x29a   :  { %v5240_v26 = vsel %vm5192_vm5, %v5175_v10, %v7726_v45  ;;  %v5496_v56 = vsel %vm5257_vm6, %v5432_v2, %v7745_v8  ;;  %v5497_v21 = vsel %vm5257_vm6, %v5433_v52, %v7746_v30  ;;  %v7750_v52 = vunpack.i.l.bf16 %v11010_v0  ;;  %v11636_v30 = vld [vmem:[#allocation7_spill] sm:$0xff] }
 0x29b   :  { %v6605_v42 = vsel %vm5192_vm5, %v6515_v6, 0.0  ;;  %v6269_v4 = vadd.f32 %v10536_v62, %v6100_v31  ;;  %v5174_v62 = vsel %vm690_vm1, %v10296_v59, %v7670_v18  ;;  %v3067_v59 = vsel %vm2939_vm15, %v11007_v50, 0.0 }
 0x29c   :  { %7963 = vrot.lane.b32.xlu0 %v11633_v40, %s8073_s8  ;;  %v6606_v60 = vadd.f32 %v6605_v42, %v6604_v58  ;;  %v11162_v58 = vpop.permute.xlu2 %7793  ;;  %v5239_v27 = vsel %vm5192_vm5, %v5174_v62, %v7725_v15  ;;  %v7967_v31 = vpack.i.bf16 %v3067_v59, %v11025_v46  ;;  %v5584_v17 = vpack.c.bf16 %v5497_v21, %v5496_v56  ;;  %v8048_v42 = vld [vmem:[#allocation2 + $0x197] sm:$0xff]  ;;  %v11635_v15 = vld [vmem:[#allocation4_spill] sm:$0xff] }
 0x29d   :  { %7958 = vrot.lane.b32.xlu1 %v7957_v41, %s8071_s9  ;;  %v6387_v29 = vmul.f32 %v9519_v48, %v6269_v4  ;;  %v7701_v18 = vunpack.i.h.bf16 %v10985_v57  ;;  %v7756_v62 = vunpack.i.h.bf16 %v11067_v38  ;;  %v8049_v56 = vld [vmem:[#allocation2 + $0x1a8] sm:$0xff] }
 0x29e   :  { %v11154_v7 = vpop.permute.xlu0 %7763  ;;  %7973 = vrot.lane.b32.xlu2 %v7972_v3, %s8073_s8  ;;  %v7739_v49 = vpop.permute.xlu1 %7738  ;;  %v7751_v3 = vunpack.i.h.bf16 %v11010_v0 }
 0x29f   :  { %v6452_v20 = vadd.f32 %v9565_v32, %v6387_v29  ;;  %v7741_v24 = vunpack.i.h.bf16 %v7739_v49  ;;  %v7740_v33 = vunpack.i.l.bf16 %v7739_v49  ;;  %v5177_v4 = vsel %vm690_vm1, %v8048_v42, %v7701_v18 }
 0x2a0   :  { %v6101_v40 = vpop.f32.mrf.mxu2  ;;  %v5935_v35 = vpop.f32.mrf.mxu1  ;;  %v7766_v10 = vunpack.i.h.bf16 %v11154_v7  ;;  %v7765_v49 = vunpack.i.l.bf16 %v11154_v7  ;;  %v5371_v21 = vsel %vm690_vm1, %v8049_v56, %v7756_v62 }
 0x2a1   :  { %v6516_v43 = vmax.f32 %v6452_v20, 0.0  ;;  %v6102_v1 = vadd.f32 %v6101_v40, %v5932_v19  ;;  %v5304_v6 = vsel %vm5257_vm6, %v5239_v27, %v7740_v33  ;;  %v5305_v9 = vsel %vm5257_vm6, %v5240_v26, %v7741_v24  ;;  %v11181_v37 = vpop.f32.mrf.mxu3 }
 0x2a2   :  { %v5583_v34 = vpack.c.bf16 %v5305_v9, %v5304_v6  ;;  %v7700_v19 = vunpack.i.l.bf16 %v10985_v57  ;;  %v5242_v27 = vsel %vm5192_vm5, %v5177_v4, %v7751_v3  ;;  %v5435_v9 = vsel %vm5192_vm5, %v5371_v21, %v7766_v10  ;;  %v6711_v4 = vld [vmem:[%s11566_s5 + $0x50] sm:$0xff] }
 0x2a3   :  { %v6607_v50 = vsel %vm5192_vm5, %v6516_v43, 0.0  ;;  %v6271_v28 = vadd.f32 %v10610_v53, %v6102_v1  ;;  %v8050_v43 = vld [vmem:[#allocation2 + $0x1a0] sm:$0xff]  ;;  %6768 = vmatpush.msrb.mxu3 %v6711_v4  ;;  %v7731_v3 = vunpack.i.h.bf16 %v11081_v16 }
 0x2a4   :  { %v6608_v41 = vadd.f32 %v6607_v50, %v6606_v60  ;;  %5974 = vmatmul.bf16.gmra.mxu1 %v5583_v34  ;;  %v5176_v57 = vsel %vm690_vm1, %v11635_v15, %v7700_v19  ;;  %v11190_v2 = vpop.permute.xlu2 %7798  ;;  %v5370_v7 = vsel %vm690_vm1, %v8050_v43, %v7755_v47 }
 0x2a5   :  { %7968 = vrot.lane.b32.xlu1 %v7967_v31, %s8072_s11  ;;  %v6388_v23 = vmul.f32 %v9519_v48, %v6271_v28  ;;  %6143 = vmatmul.bf16.gmra.mxu2 %v5584_v17  ;;  %v5241_v38 = vsel %vm5192_vm5, %v5176_v57, %v7750_v52  ;;  %v5434_v34 = vsel %vm5192_vm5, %v5370_v7, %v7765_v49 }
 0x2a6   :  { %v7769_v61 = vpop.permute.xlu0 %7768  ;;  %v7774_v46 = vpop.permute.xlu1 %7773  ;;  %6352 = vmatmul.bf16.gmra.mxu3 %v11634_v51 }
 0x2a7   :  { %v6453_v53 = vadd.f32 %v9565_v32, %v6388_v23  ;;  %v7771_v24 = vunpack.i.h.bf16 %v7769_v61  ;;  %v7770_v33 = vunpack.i.l.bf16 %v7769_v61  ;;  %v7776_v59 = vunpack.i.h.bf16 %v7774_v46 }
 0x2a8   :  { %v6104_v13 = vpop.f32.mrf.mxu2  ;;  %v5937_v45 = vpop.f32.mrf.mxu1  ;;  %v7775_v0 = vunpack.i.l.bf16 %v7774_v46 }
 0x2a9   :  { %v6105_v60 = vadd.f32 %v6104_v13, %v5935_v35  ;;  %v6517_v29 = vmax.f32 %v6453_v53, 0.0  ;;  %v5306_v50 = vsel %vm5257_vm6, %v5241_v38, %v7770_v33  ;;  %v5307_v28 = vsel %vm5257_vm6, %v5242_v27, %v7771_v24  ;;  %v8051_v33 = vld [vmem:[#allocation2 + $0x1b8] sm:$0xff] }
 0x2aa   :  { %v5499_v19 = vsel %vm5257_vm6, %v5435_v9, %v7776_v59  ;;  %v5586_v46 = vpack.c.bf16 %v5307_v28, %v5306_v50  ;;  %v8052_v59 = vld [vmem:[#allocation2 + $0x1b0] sm:$0xff]  ;;  %v7796_v27 = vunpack.i.h.bf16 %v11162_v58  ;;  %v7795_v38 = vunpack.i.l.bf16 %v11162_v58  ;;  %v6710_v9 = vld [vmem:[%s11566_s5 + $0x48] sm:$0xff] }
 0x2ab   :  { %v6274_v8 = vadd.f32 %v11636_v30, %v6105_v60  ;;  %v6609_v20 = vsel %vm5192_vm5, %v6517_v29, 0.0  ;;  %6748 = vmatpush.msrb.mxu0 %v6710_v9 }
 0x2ac   :  { %v6610_v40 = vadd.f32 %v6609_v20, %v6608_v41  ;;  %v5498_v41 = vsel %vm5257_vm6, %v5434_v34, %v7775_v0  ;;  %v11213_v51 = vpop.permute.xlu2 %7833  ;;  %v11637_v20 = vld [vmem:[#allocation3_spill] sm:$0xff]  ;;  %v7801_v34 = vunpack.i.h.bf16 %v11190_v2 }
 0x2ad   :  { %v6389_v26 = vmul.f32 %v9519_v48, %v6274_v8  ;;  %v5587_v42 = vpack.c.bf16 %v5499_v19, %v5498_v41 }
 0x2ae   :  { %v11200_v35 = vpop.permute.xlu0 %7788  ;;  %v7779_v6 = vpop.permute.xlu1 %7778 }
 0x2af   :  { %v6454_v1 = vadd.f32 %v9565_v32, %v6389_v26  ;;  %v7781_v47 = vunpack.i.h.bf16 %v7779_v6  ;;  %v7780_v10 = vunpack.i.l.bf16 %v7779_v6 }
 0x2b0   :  { %v6106_v31 = vpop.f32.mrf.mxu2  ;;  %v5940_v18 = vpop.f32.mrf.mxu1 }
 0x2b1   :  { %v6518_v17 = vmax.f32 %v6454_v1, 0.0  ;;  %v6107_v23 = vadd.f32 %v6106_v31, %v5937_v45  ;;  %v7730_v45 = vunpack.i.l.bf16 %v11081_v16  ;;  %v8053_v16 = vld [vmem:[#allocation2 + $0x1a7] sm:$0xff]  ;;  %v11638_v1 = vld [vmem:[#allocation9_spill] sm:$0xff]  ;;  %v7800_v31 = vunpack.i.l.bf16 %v11190_v2 }
 0x2b2   :  { %v5179_v26 = vsel %vm690_vm1, %v8053_v16, %v7731_v3 }
 0x2b3   :  { %v6611_v61 = vsel %vm5192_vm5, %v6518_v17, 0.0  ;;  %v6276_v13 = vadd.f32 %v10740_v63, %v6107_v23  ;;  %v5178_v24 = vsel %vm690_vm1, %v11637_v20, %v7730_v45  ;;  %v5244_v21 = vsel %vm5192_vm5, %v5179_v26, %v7781_v47  ;;  %v8055_v26 = vld [vmem:[#allocation2 + $0x1c0] sm:$0xff] }
 0x2b4   :  { %v6612_v53 = vadd.f32 %v6611_v61, %v6610_v40  ;;  %5979 = vmatmul.bf16.gmra.mxu1 %v5586_v46  ;;  %v5243_v43 = vsel %vm5192_vm5, %v5178_v24, %v7780_v10  ;;  %v11241_v50 = vpop.permute.xlu2 %7838  ;;  %v5309_v46 = vsel %vm5257_vm6, %v5244_v21, %v7801_v34 }
 0x2b5   :  { %v6390_v60 = vmul.f32 %v9519_v48, %v6276_v13  ;;  %6148 = vmatmul.bf16.gmra.mxu2 %v5587_v42  ;;  %v5308_v61 = vsel %vm5257_vm6, %v5243_v43, %v7800_v31 }
 0x2b6   :  { %v7804_v15 = vpop.permute.xlu0 %7803  ;;  %v7784_v57 = vpop.permute.xlu1 %7783 }
 0x2b7   :  { %v6455_v52 = vadd.f32 %v9565_v32, %v6390_v60  ;;  %v7786_v29 = vunpack.i.h.bf16 %v7784_v57  ;;  %v7785_v63 = vunpack.i.l.bf16 %v7784_v57  ;;  %v7805_v41 = vunpack.i.l.bf16 %v7804_v15 }
 0x2b8   :  { %v6109_v62 = vpop.f32.mrf.mxu2  ;;  %v5942_v8 = vpop.f32.mrf.mxu1  ;;  %v5589_v60 = vpack.c.bf16 %v5309_v46, %v5308_v61 }
 0x2b9   :  { %v6110_v30 = vadd.f32 %v6109_v62, %v5940_v18  ;;  %v6519_v49 = vmax.f32 %v6455_v52, 0.0  ;;  %v5373_v40 = vsel %vm690_vm1, %v8051_v33, %v7786_v29  ;;  %v5372_v0 = vsel %vm690_vm1, %v8052_v59, %v7785_v63 }
 0x2ba   :  { %v5436_v28 = vsel %vm5192_vm5, %v5372_v0, %v7795_v38  ;;  %v5437_v17 = vsel %vm5192_vm5, %v5373_v40, %v7796_v27  ;;  %v7806_v18 = vunpack.i.h.bf16 %v7804_v15  ;;  %v7761_v59 = vunpack.i.h.bf16 %v11124_v14  ;;  %v8054_v0 = vld [vmem:[#allocation2 + $0x1c8] sm:$0xff] }
 0x2bb   :  { %v6613_v56 = vsel %vm5192_vm5, %v6519_v49, 0.0  ;;  %v6279_v6 = vadd.f32 %v11638_v1, %v6110_v30  ;;  %v5500_v13 = vsel %vm5257_vm6, %v5436_v28, %v7805_v41  ;;  %v11639_v28 = vld [vmem:[#allocation5_spill] sm:$0xff] }
 0x2bc   :  { %v11233_v7 = vadd.f32 %v6613_v56, %v6612_v53  ;;  %v5501_v42 = vsel %vm5257_vm6, %v5437_v17, %v7806_v18  ;;  %v11255_v63 = vpop.permute.xlu2 %7843  ;;  %v7836_v17 = vunpack.i.h.bf16 %v11213_v51  ;;  %v7835_v18 = vunpack.i.l.bf16 %v11213_v51 }
 0x2bd   :  { %v6391_v53 = vmul.f32 %v9519_v48, %v6279_v6  ;;  %v5590_v45 = vpack.c.bf16 %v5501_v42, %v5500_v13 }
 0x2be   :  { %v7809_v58 = vpop.permute.xlu0 %7808  ;;  %v11245_v19 = vpop.permute.xlu1 %7818 }
 0x2bf   :  { %v6456_v57 = vadd.f32 %v9565_v32, %v6391_v53  ;;  %v7811_v62 = vunpack.i.h.bf16 %v7809_v58  ;;  %v7810_v47 = vunpack.i.l.bf16 %v7809_v58  ;;  %v11270_v58 = vpop.f32.mrf.mxu3 }
 0x2c0   :  { %v6111_v23 = vpop.f32.mrf.mxu2  ;;  %v5945_v2 = vpop.f32.mrf.mxu1 }
 0x2c1   :  { %v6112_v4 = vadd.f32 %v6111_v23, %v5942_v8  ;;  %v6520_v30 = vmax.f32 %v6456_v57, 0.0  ;;  %v5375_v16 = vsel %vm690_vm1, %v8054_v0, %v7811_v62  ;;  %v5374_v27 = vsel %vm690_vm1, %v8055_v26, %v7810_v47  ;;  %v8056_v23 = vld [vmem:[#allocation2 + $0x1b7] sm:$0xff] }
 0x2c2   :  { %v5181_v61 = vsel %vm690_vm1, %v8056_v23, %v7761_v59 }
 0x2c3   :  { %v6281_v15 = vadd.f32 %v10870_v55, %v6112_v4  ;;  %v7760_v55 = vunpack.i.l.bf16 %v11124_v14  ;;  %v6629_v56 = vsel %vm5192_vm5, %v6520_v30, 0.0 }
 0x2c4   :  { %5984 = vmatmul.bf16.gmra.mxu1 %v5589_v60 }
 0x2c5   :  { %6153 = vmatmul.bf16.gmra.mxu2 %v5590_v45  ;;  %v6392_v52 = vmul.f32 %v9519_v48, %v6281_v15  ;;  %v11282_v15 = vpop.permute.xlu2 %7848 }
 0x2c6   :  { %v7814_v3 = vpop.permute.xlu0 %7813  ;;  %v7824_v29 = vpop.permute.xlu1 %7823 }
 0x2c7   :  { %v6457_v8 = vadd.f32 %v9565_v32, %v6392_v52  ;;  %v7826_v20 = vunpack.i.h.bf16 %v7824_v29  ;;  %v7825_v24 = vunpack.i.l.bf16 %v7824_v29  ;;  %v7816_v43 = vunpack.i.h.bf16 %v7814_v3  ;;  %v11292_v0 = vpop.f32.mrf.mxu3 }
 0x2c8   :  { %v6114_v10 = vpop.f32.mrf.mxu2  ;;  %v5947_v49 = vpop.f32.mrf.mxu1  ;;  %v7815_v1 = vunpack.i.l.bf16 %v7814_v3 }
 0x2c9   :  { %v6115_v33 = vadd.f32 %v6114_v10, %v5945_v2  ;;  %v6521_v40 = vmax.f32 %v6457_v8, 0.0  ;;  %v5439_v9 = vsel %vm5192_vm5, %v5375_v16, %v7826_v20  ;;  %v5438_v34 = vsel %vm5192_vm5, %v5374_v27, %v7825_v24  ;;  %v11640_v16 = vld [vmem:[#allocation6_spill] sm:$0xff] }
 0x2ca   :  { %v5246_v42 = vsel %vm5192_vm5, %v5181_v61, %v7816_v43  ;;  %v5502_v45 = vsel %vm5257_vm6, %v5438_v34, %v7835_v18  ;;  %v5503_v57 = vsel %vm5257_vm6, %v5439_v9, %v7836_v17  ;;  %v7790_v8 = vunpack.i.l.bf16 %v11200_v35 }
 0x2cb   :  { %v6284_v38 = vadd.f32 %v10926_v36, %v6115_v33  ;;  %v6630_v21 = vsel %vm5192_vm5, %v6521_v40, 0.0  ;;  %v5180_v36 = vsel %vm690_vm1, %v11639_v28, %v7760_v55  ;;  %v5593_v30 = vpack.c.bf16 %v5503_v57, %v5502_v45 }
 0x2cc   :  { %v6631_v6 = vadd.f32 %v6630_v21, %v6629_v56  ;;  %v5245_v4 = vsel %vm5192_vm5, %v5180_v36, %v7815_v1  ;;  %v7791_v24 = vunpack.i.h.bf16 %v11200_v35  ;;  %v7841_v35 = vunpack.i.h.bf16 %v11241_v50 }
 0x2cd   :  { %v6393_v14 = vmul.f32 %v9519_v48, %v6284_v38  ;;  %v8057_v38 = vld [vmem:[#allocation2 + $0x1c7] sm:$0xff]  ;;  %v7840_v21 = vunpack.i.l.bf16 %v11241_v50  ;;  %v7846_v1 = vunpack.i.h.bf16 %v11255_v63 }
 0x2ce   :  { %v11268_v31 = vpop.permute.xlu0 %7853  ;;  %v7829_v41 = vpop.permute.xlu1 %7828  ;;  %v5183_v56 = vsel %vm690_vm1, %v8057_v38, %v7791_v24 }
 0x2cf   :  { %v6458_v46 = vadd.f32 %v9565_v32, %v6393_v14  ;;  %v7831_v53 = vunpack.i.h.bf16 %v7829_v41  ;;  %v7830_v2 = vunpack.i.l.bf16 %v7829_v41  ;;  %v7856_v9 = vunpack.i.h.bf16 %v11268_v31  ;;  %v11303_v14 = vpop.permute.xlu2 %7878 }
 0x2d0   :  { %v6116_v13 = vpop.f32.mrf.mxu2  ;;  %v5950_v60 = vpop.f32.mrf.mxu1  ;;  %v7855_v28 = vunpack.i.l.bf16 %v11268_v31 }
 0x2d1   :  { %v6522_v51 = vmax.f32 %v6458_v46, 0.0  ;;  %v6117_v3 = vadd.f32 %v6116_v13, %v5947_v49  ;;  %v5310_v52 = vsel %vm5257_vm6, %v5245_v4, %v7830_v2  ;;  %v5311_v29 = vsel %vm5257_vm6, %v5246_v42, %v7831_v53  ;;  %v8059_v13 = vld [vmem:[#allocation2 + $0x1d0] sm:$0xff] }
 0x2d2   :  { %v5592_v62 = vpack.c.bf16 %v5311_v29, %v5310_v52  ;;  %v5248_v46 = vsel %vm5192_vm5, %v5183_v56, %v7841_v35 }
 0x2d3   :  { %v6632_v47 = vsel %vm5192_vm5, %v6522_v51, 0.0  ;;  %v6286_v10 = vadd.f32 %v10991_v39, %v6117_v3  ;;  %v5182_v39 = vsel %vm690_vm1, %v11640_v16, %v7790_v8  ;;  %v7821_v16 = vunpack.i.h.bf16 %v11245_v19 }
 0x2d4   :  { %v6633_v20 = vadd.f32 %v6632_v47, %v6631_v6  ;;  %5989 = vmatmul.bf16.gmra.mxu1 %v5592_v62  ;;  %v7845_v6 = vunpack.i.l.bf16 %v11255_v63  ;;  %v5247_v53 = vsel %vm5192_vm5, %v5182_v39, %v7840_v21  ;;  %v7820_v39 = vunpack.i.l.bf16 %v11245_v19 }
 0x2d5   :  { %v6394_v33 = vmul.f32 %v9519_v48, %v6286_v10  ;;  %6158 = vmatmul.bf16.gmra.mxu2 %v5593_v30  ;;  %v11321_v30 = vpop.f32.mrf.mxu3 }
 0x2d6   :  { %v7859_v49 = vpop.permute.xlu0 %7858  ;;  %v7864_v55 = vpop.permute.xlu1 %7863  ;;  %v5376_v31 = vsel %vm690_vm1, %v8059_v13, %v7845_v6 }
 0x2d7   :  { %v6459_v40 = vadd.f32 %v9565_v32, %v6394_v33  ;;  %v7861_v17 = vunpack.i.h.bf16 %v7859_v49  ;;  %v7860_v18 = vunpack.i.l.bf16 %v7859_v49  ;;  %v7866_v23 = vunpack.i.h.bf16 %v7864_v55 }
 0x2d8   :  { %v6119_v59 = vpop.f32.mrf.mxu2  ;;  %v5952_v27 = vpop.f32.mrf.mxu1  ;;  %v7865_v50 = vunpack.i.l.bf16 %v7864_v55  ;;  %v5440_v45 = vsel %vm5192_vm5, %v5376_v31, %v7855_v28  ;;  %v8060_v28 = vld [vmem:[#allocation2 + $0x1d7] sm:$0xff] }
 0x2d9   :  { %v6120_v26 = vadd.f32 %v6119_v59, %v5950_v60  ;;  %v6523_v43 = vmax.f32 %v6459_v40, 0.0  ;;  %v5312_v51 = vsel %vm5257_vm6, %v5247_v53, %v7860_v18  ;;  %v5313_v3 = vsel %vm5257_vm6, %v5248_v46, %v7861_v17  ;;  %v7894_v40 = vpop.permute.xlu2 %7893  ;;  %v8061_v18 = vld [vmem:[#allocation2 + $0x1e8] sm:$0xff] }
 0x2da   :  { %v5504_v47 = vsel %vm5257_vm6, %v5440_v45, %v7865_v50  ;;  %v5595_v24 = vpack.c.bf16 %v5313_v3, %v5312_v51 }
 0x2db   :  { %v6289_v34 = vadd.f32 %v11047_v25, %v6120_v26  ;;  %v6634_v36 = vsel %vm5192_vm5, %v6523_v43, 0.0  ;;  %v8058_v25 = vld [vmem:[#allocation2 + $0x1d8] sm:$0xff] }
 0x2dc   :  { %v6635_v41 = vadd.f32 %v6634_v36, %v6633_v20  ;;  %v5377_v2 = vsel %vm690_vm1, %v8058_v25, %v7846_v1  ;;  %v5185_v36 = vsel %vm690_vm1, %v8060_v28, %v7821_v16  ;;  %v7851_v28 = vunpack.i.h.bf16 %v11282_v15 }
 0x2dd   :  { %v6395_v61 = vmul.f32 %v9519_v48, %v6289_v34  ;;  %v5441_v60 = vsel %vm5192_vm5, %v5377_v2, %v7856_v9  ;;  %v11641_v9 = vld [vmem:[#allocation11_spill] sm:$0xff]  ;;  %v11336_v53 = vpop.f32.mrf.mxu3 }
 0x2de   :  { %v11309_v63 = vpop.permute.xlu0 %7873  ;;  %v7869_v4 = vpop.permute.xlu1 %7868  ;;  %v5505_v10 = vsel %vm5257_vm6, %v5441_v60, %v7866_v23  ;;  %v5184_v34 = vsel %vm690_vm1, %v11641_v9, %v7820_v39  ;;  %v8062_v23 = vld [vmem:[#allocation2 + $0x1e0] sm:$0xff]  ;;  %v7895_v60 = vunpack.i.l.bf16 %v7894_v40 }
 0x2df   :  { %v6460_v42 = vadd.f32 %v9565_v32, %v6395_v61  ;;  %v5596_v49 = vpack.c.bf16 %v5505_v10, %v5504_v47  ;;  %v7871_v38 = vunpack.i.h.bf16 %v7869_v4  ;;  %v7870_v56 = vunpack.i.l.bf16 %v7869_v4 }
 0x2e0   :  { %v6121_v57 = vpop.f32.mrf.mxu2  ;;  %v5955_v62 = vpop.f32.mrf.mxu1  ;;  %v7896_v4 = vunpack.i.h.bf16 %v7894_v40 }
 0x2e1   :  { %v6524_v52 = vmax.f32 %v6460_v42, 0.0  ;;  %v6122_v29 = vadd.f32 %v6121_v57, %v5952_v27  ;;  %v5378_v50 = vsel %vm690_vm1, %v8062_v23, %v7870_v56  ;;  %v7881_v42 = vunpack.i.h.bf16 %v11303_v14  ;;  %v11346_v3 = vpop.permute.xlu2 %7913  ;;  %v8063_v23 = vld [vmem:[#allocation2 + $0x1f8] sm:$0xff] }
 0x2e3   :  { %v6636_v8 = vsel %vm5192_vm5, %v6524_v52, 0.0  ;;  %v6291_v20 = vadd.f32 %v11106_v5, %v6122_v29 }
 0x2e4   :  { %v6637_v33 = vadd.f32 %v6636_v8, %v6635_v41  ;;  %5994 = vmatmul.bf16.gmra.mxu1 %v5595_v24  ;;  %v5379_v41 = vsel %vm690_vm1, %v8061_v18, %v7871_v38 }
 0x2e5   :  { %v6396_v55 = vmul.f32 %v9519_v48, %v6291_v20  ;;  %6163 = vmatmul.bf16.gmra.mxu2 %v5596_v49  ;;  %v5443_v10 = vsel %vm5192_vm5, %v5379_v41, %v7881_v42  ;;  %v11360_v38 = vpop.f32.mrf.mxu3 }
 0x2e6   :  { %v7884_v59 = vpop.permute.xlu0 %7883 }
 0x2e7   :  { %v6461_v26 = vadd.f32 %v9565_v32, %v6396_v55  ;;  %v7889_v27 = vpop.permute.xlu1 %7888  ;;  %v7886_v46 = vunpack.i.h.bf16 %v7884_v59  ;;  %v7885_v13 = vunpack.i.l.bf16 %v7884_v59 }
 0x2e8   :  { %v6124_v35 = vpop.f32.mrf.mxu2  ;;  %v7891_v21 = vunpack.i.h.bf16 %v7889_v27  ;;  %v7890_v43 = vunpack.i.l.bf16 %v7889_v27  ;;  %v5957_v6 = vpop.f32.mrf.mxu1 }
 0x2e9   :  { %v6525_v5 = vmax.f32 %v6461_v26, 0.0  ;;  %v6125_v1 = vadd.f32 %v6124_v35, %v5955_v62  ;;  %v5507_v24 = vsel %vm5257_vm6, %v5443_v10, %v7886_v46  ;;  %v6708_v26 = vld [vmem:[%s11566_s5 + $0x38] sm:$0xff] }
 0x2ea   :  { %v5250_v25 = vsel %vm5192_vm5, %v5185_v36, %v7891_v21  ;;  %v5249_v2 = vsel %vm5192_vm5, %v5184_v34, %v7890_v43  ;;  %6769 = vmatpush.msrb.mxu3 %v6708_v26 }
 0x2eb   :  { %v6638_v17 = vsel %vm5192_vm5, %v6525_v5, 0.0  ;;  %v6294_v19 = vadd.f32 %v11147_v44, %v6125_v1  ;;  %v7880_v44 = vunpack.i.l.bf16 %v11303_v14  ;;  %v5314_v29 = vsel %vm5257_vm6, %v5249_v2, %v7895_v60  ;;  %v11363_v1 = vpop.permute.xlu2 %7928 }
 0x2ec   :  { %v6639_v61 = vadd.f32 %v6638_v17, %v6637_v33  ;;  %v5315_v62 = vsel %vm5257_vm6, %v5250_v25, %v7896_v4  ;;  %v7916_v4 = vunpack.i.h.bf16 %v11346_v3  ;;  %v7915_v60 = vunpack.i.l.bf16 %v11346_v3 }
 0x2ed   :  { %v6397_v31 = vmul.f32 %v9519_v48, %v6294_v19  ;;  %v5442_v47 = vsel %vm5192_vm5, %v5378_v50, %v7880_v44  ;;  %v5598_v40 = vpack.c.bf16 %v5315_v62, %v5314_v29  ;;  %v7850_v19 = vunpack.i.l.bf16 %v11282_v15  ;;  %v8065_v15 = vld [vmem:[#allocation2 + $0x1e7] sm:$0xff] }
 0x2ee   :  { %v7899_v45 = vpop.permute.xlu0 %7898  ;;  %v5506_v20 = vsel %vm5257_vm6, %v5442_v47, %v7885_v13  ;;  %v6707_v13 = vld [vmem:[%s11566_s5 + $0x30] sm:$0xff]  ;;  %v5187_v44 = vsel %vm690_vm1, %v8065_v15, %v7851_v28 }
 0x2ef   :  { %v6462_v57 = vadd.f32 %v9565_v32, %v6397_v31  ;;  %v11344_v51 = vpop.permute.xlu1 %7903  ;;  %v5599_v16 = vpack.c.bf16 %v5507_v24, %v5506_v20  ;;  %v7901_v5 = vunpack.i.h.bf16 %v7899_v45  ;;  %6749 = vmatpush.msrb.mxu0 %v6707_v13 }
 0x2f0   :  { %v6126_v52 = vpop.f32.mrf.mxu2 }
 0x2f1   :  { %v6526_v8 = vmax.f32 %v6462_v57, 0.0  ;;  %v6127_v14 = vadd.f32 %v6126_v52, %v5957_v6  ;;  %v5960_v33 = vpop.f32.mrf.mxu1  ;;  %v5381_v50 = vsel %vm690_vm1, %v8063_v23, %v7901_v5  ;;  %v11642_v52 = vld [vmem:[#allocation10_spill] sm:$0xff] }
 0x2f2   :  { %v5186_v29 = vsel %vm690_vm1, %v11642_v52, %v7850_v19  ;;  %v8068_v52 = vld [vmem:[#allocation2 + $0x200] sm:$0xff] }
 0x2f3   :  { %v6640_v49 = vsel %vm5192_vm5, %v6526_v8, 0.0  ;;  %v6296_v55 = vadd.f32 %v11181_v37, %v6127_v14  ;;  %v7900_v37 = vunpack.i.l.bf16 %v7899_v45  ;;  %v11385_v8 = vpop.f32.mrf.mxu3  ;;  %v7944_v26 = vpop.permute.xlu2 %7943 }
 0x2f4   :  { %v6641_v59 = vadd.f32 %v6640_v49, %v6639_v61  ;;  %5999 = vmatmul.bf16.gmra.mxu1 %v5598_v40  ;;  %v8064_v61 = vld [vmem:[#allocation2 + $0x1f0] sm:$0xff]  ;;  %v7946_v23 = vunpack.i.h.bf16 %v7944_v26 }
 0x2f5   :  { %v6398_v39 = vmul.f32 %v9519_v48, %v6296_v55  ;;  %6168 = vmatmul.bf16.gmra.mxu2 %v5599_v16  ;;  %v5380_v46 = vsel %vm690_vm1, %v8064_v61, %v7900_v37 }
 0x2f6   :  { %v7919_v27 = vpop.permute.xlu0 %7918 }
 0x2f7   :  { %v6463_v56 = vadd.f32 %v9565_v32, %v6398_v39  ;;  %v7909_v35 = vpop.permute.xlu1 %7908  ;;  %v7921_v41 = vunpack.i.h.bf16 %v7919_v27  ;;  %v7920_v25 = vunpack.i.l.bf16 %v7919_v27 }
 0x2f8   :  { %v6129_v43 = vpop.f32.mrf.mxu2  ;;  %v7911_v6 = vunpack.i.h.bf16 %v7909_v35  ;;  %v7910_v9 = vunpack.i.l.bf16 %v7909_v35 }
 0x2f9   :  { %v6527_v21 = vmax.f32 %v6463_v56, 0.0  ;;  %v5962_v34 = vpop.f32.mrf.mxu1  ;;  %v6130_v17 = vadd.f32 %v6129_v43, %v5960_v33  ;;  %v5252_v62 = vsel %vm5192_vm5, %v5187_v44, %v7921_v41  ;;  %v5251_v14 = vsel %vm5192_vm5, %v5186_v29, %v7920_v25  ;;  %v8066_v44 = vld [vmem:[#allocation2 + $0x1f7] sm:$0xff] }
 0x2fa   :  { %v5445_v31 = vsel %vm5192_vm5, %v5381_v50, %v7911_v6  ;;  %v5444_v42 = vsel %vm5192_vm5, %v5380_v46, %v7910_v9  ;;  %v7876_v6 = vunpack.i.h.bf16 %v11309_v63  ;;  %v7875_v9 = vunpack.i.l.bf16 %v11309_v63 }
 0x2fb   :  { %v6642_v36 = vsel %vm5192_vm5, %v6527_v21, 0.0  ;;  %v6299_v2 = vadd.f32 %v11270_v58, %v6130_v17  ;;  %v5508_v3 = vsel %vm5257_vm6, %v5444_v42, %v7915_v60  ;;  %v5509_v33 = vsel %vm5257_vm6, %v5445_v31, %v7916_v4  ;;  %v8067_v60 = vld [vmem:[#allocation2 + $0x208] sm:$0xff] }
 0x2fc   :  { %v6643_v18 = vadd.f32 %v6642_v36, %v6641_v59  ;;  %v5602_v56 = vpack.c.bf16 %v5509_v33, %v5508_v3  ;;  %v7931_v36 = vunpack.i.h.bf16 %v11363_v1  ;;  %v7945_v50 = vunpack.i.l.bf16 %v7944_v26 }
 0x2fd   :  { %v6399_v45 = vmul.f32 %v9519_v48, %v6299_v2  ;;  %v5188_v15 = vsel %vm690_vm1, %v11113_v12, %v7875_v9  ;;  %v5189_v4 = vsel %vm690_vm1, %v8066_v44, %v7876_v6 }
 0x2fe   :  { %v11380_v58 = vpop.permute.xlu0 %7933 }
 0x2ff   :  { %v7924_v57 = vpop.permute.xlu1 %7923  ;;  %v6464_v20 = vadd.f32 %v9565_v32, %v6399_v45  ;;  %v7936_v61 = vunpack.i.h.bf16 %v11380_v58  ;;  %v7935_v46 = vunpack.i.l.bf16 %v11380_v58  ;;  %v5383_v45 = vsel %vm690_vm1, %v8067_v60, %v7931_v36 }
 0x300   :  { %v7926_v47 = vunpack.i.h.bf16 %v7924_v57  ;;  %v7925_v10 = vunpack.i.l.bf16 %v7924_v57  ;;  %v6131_v24 = vpop.f32.mrf.mxu2  ;;  %v7954_v57 = vpop.permute.xlu2 %7953 }
 0x301   :  { %v6132_v49 = vadd.f32 %v6131_v24, %v5962_v34  ;;  %v5965_v55 = vpop.f32.mrf.mxu1  ;;  %v6528_v16 = vmax.f32 %v6464_v20, 0.0 }
 0x302   :  { %v5316_v40 = vsel %vm5257_vm6, %v5251_v14, %v7925_v10  ;;  %v5317_v59 = vsel %vm5257_vm6, %v5252_v62, %v7926_v47  ;;  %v5253_v62 = vsel %vm5192_vm5, %v5188_v15, %v7945_v50  ;;  %v5447_v47 = vsel %vm5192_vm5, %v5383_v45, %v7936_v61 }
 0x303   :  { %v5601_v39 = vpack.c.bf16 %v5317_v59, %v5316_v40  ;;  %v6301_v27 = vadd.f32 %v11292_v0, %v6132_v49  ;;  %v6644_v35 = vsel %vm5192_vm5, %v6528_v16, 0.0  ;;  %v7930_v0 = vunpack.i.l.bf16 %v11363_v1 }
 0x304   :  { %v6645_v5 = vadd.f32 %v6644_v35, %v6643_v18  ;;  %v11401_v18 = vpop.f32.mrf.mxu3 }
 0x305   :  { %6004 = vmatmul.bf16.gmra.mxu1 %v5601_v39  ;;  %v6400_v37 = vmul.f32 %v9519_v48, %v6301_v27  ;;  %6173 = vmatmul.bf16.gmra.mxu2 %v5602_v56  ;;  %v5382_v29 = vsel %vm690_vm1, %v8068_v52, %v7930_v0 }
 0x306   :  { %v7949_v34 = vpop.permute.xlu0 %7948  ;;  %v5446_v12 = vsel %vm5192_vm5, %v5382_v29, %v7935_v46 }
 0x307   :  { %v7939_v21 = vpop.permute.xlu1 %7938  ;;  %v6465_v43 = vadd.f32 %v9565_v32, %v6400_v37  ;;  %v7951_v63 = vunpack.i.h.bf16 %v7949_v34  ;;  %v7950_v2 = vunpack.i.l.bf16 %v7949_v34  ;;  %v7906_v37 = vunpack.i.h.bf16 %v11344_v51 }
 0x308   :  { %v6134_v28 = vpop.f32.mrf.mxu2  ;;  %v7941_v42 = vunpack.i.h.bf16 %v7939_v21  ;;  %v7940_v1 = vunpack.i.l.bf16 %v7939_v21  ;;  %v7905_v21 = vunpack.i.l.bf16 %v11344_v51  ;;  %v7974_v34 = vpop.permute.xlu2 %7973 }
 0x309   :  { %v6529_v17 = vmax.f32 %v6465_v43, 0.0  ;;  %v6135_v19 = vadd.f32 %v6134_v28, %v5965_v55  ;;  %v5967_v41 = vpop.f32.mrf.mxu1  ;;  %v5318_v20 = vsel %vm5257_vm6, %v5253_v62, %v7950_v2  ;;  %v7975_v60 = vunpack.i.l.bf16 %v7974_v34 }
 0x30a   :  { %v5510_v33 = vsel %vm5257_vm6, %v5446_v12, %v7940_v1  ;;  %v5511_v49 = vsel %vm5257_vm6, %v5447_v47, %v7941_v42  ;;  %v5190_v46 = vsel %vm690_vm1, %v11118_v54, %v7905_v21 }
 0x30b   :  { %v6646_v25 = vsel %vm5192_vm5, %v6529_v17, 0.0  ;;  %v6304_v13 = vadd.f32 %v11321_v30, %v6135_v19  ;;  %v5254_v30 = vsel %vm5192_vm5, %v5189_v4, %v7946_v23  ;;  %v5605_v27 = vpack.c.bf16 %v5511_v49, %v5510_v33 }
 0x30c   :  { %v6647_v31 = vadd.f32 %v6646_v25, %v6645_v5  ;;  %v5319_v24 = vsel %vm5257_vm6, %v5254_v30, %v7951_v63  ;;  %v11424_v56 = vpop.f32.mrf.mxu3  ;;  %v7956_v19 = vunpack.i.h.bf16 %v7954_v57  ;;  %v8069_v25 = vld [vmem:[#allocation2 + $0x207] sm:$0xff] }
 0x30d   :  { %v6401_v58 = vmul.f32 %v9519_v48, %v6304_v13  ;;  %v5604_v16 = vpack.c.bf16 %v5319_v24, %v5318_v20  ;;  %v5191_v51 = vsel %vm690_vm1, %v8069_v25, %v7906_v37  ;;  %v7976_v13 = vunpack.i.h.bf16 %v7974_v34 }
 0x30e   :  { %v7964_v36 = vpop.permute.xlu0 %7963 }
 0x30f   :  { %v7959_v10 = vpop.permute.xlu1 %7958  ;;  %v6466_v14 = vadd.f32 %v9565_v32, %v6401_v58  ;;  %v7966_v42 = vunpack.i.h.bf16 %v7964_v36  ;;  %v7965_v44 = vunpack.i.l.bf16 %v7964_v36 }
 0x310   :  { %v6136_v3 = vpop.f32.mrf.mxu2  ;;  %v7961_v43 = vunpack.i.h.bf16 %v7959_v10  ;;  %v7960_v6 = vunpack.i.l.bf16 %v7959_v10 }
 0x311   :  { %v6530_v55 = vmax.f32 %v6466_v14, 0.0  ;;  %v6137_v40 = vadd.f32 %v6136_v3, %v5967_v41  ;;  %v5970_v59 = vpop.f32.mrf.mxu1  ;;  %v7955_v41 = vunpack.i.l.bf16 %v7954_v57 }
 0x312   :  { %v5385_v63 = vsel %vm690_vm1, %v11085_v22, %v7961_v43  ;;  %v5384_v2 = vsel %vm690_vm1, %v11083_v11, %v7960_v6 }
 0x313   :  { %v6648_v39 = vsel %vm5192_vm5, %v6530_v55, 0.0  ;;  %v6306_v26 = vadd.f32 %v11336_v53, %v6137_v40  ;;  %v5448_v22 = vsel %vm5192_vm5, %v5384_v2, %v7955_v41  ;;  %v5449_v57 = vsel %vm5192_vm5, %v5385_v63, %v7956_v19 }
 0x314   :  { %v6649_v35 = vadd.f32 %v6648_v39, %v6647_v31  ;;  %v6318_v11 = vpop.f32.mrf.mxu3  ;;  %v5512_v30 = vsel %vm5257_vm6, %v5448_v22, %v7965_v44  ;;  %v5513_v62 = vsel %vm5257_vm6, %v5449_v57, %v7966_v42 }
 0x315   :  { %6009 = vmatmul.bf16.gmra.mxu1 %v5604_v16  ;;  %v6402_v5 = vmul.f32 %v9519_v48, %v6306_v26  ;;  %6178 = vmatmul.bf16.gmra.mxu2 %v5605_v27  ;;  %v5608_v3 = vpack.c.bf16 %v5513_v62, %v5512_v30 }
 0x317   :  { %v7969_v9 = vpop.permute.xlu1 %7968  ;;  %v6467_v28 = vadd.f32 %v9565_v32, %v6402_v5 }
 0x318   :  { %v7971_v53 = vunpack.i.h.bf16 %v7969_v9  ;;  %v7970_v0 = vunpack.i.l.bf16 %v7969_v9  ;;  %v6139_v17 = vpop.f32.mrf.mxu2 }
 0x319   :  { %v6531_v23 = vmax.f32 %v6467_v28, 0.0  ;;  %v6140_v50 = vadd.f32 %v6139_v17, %v5970_v59  ;;  %v5972_v61 = vpop.f32.mrf.mxu1 }
 0x31a   :  { %v5256_v4 = vsel %vm5192_vm5, %v5191_v51, %v7971_v53  ;;  %v5255_v54 = vsel %vm5192_vm5, %v5190_v46, %v7970_v0  ;;  %v6705_v0 = vld [vmem:[%s11566_s5 + $0x20] sm:$0xff] }
 0x31b   :  { %v6650_v31 = vsel %vm5192_vm5, %v6531_v23, 0.0  ;;  %v6309_v1 = vadd.f32 %v11360_v38, %v6140_v50  ;;  %v5320_v52 = vsel %vm5257_vm6, %v5255_v54, %v7975_v60  ;;  %v5321_v38 = vsel %vm5257_vm6, %v5256_v4, %v7976_v13  ;;  %6770 = vmatpush.msrb.mxu3 %v6705_v0 }
 0x31c   :  { %v6651_v15 = vadd.f32 %v6650_v31, %v6649_v35  ;;  %v5607_v14 = vpack.c.bf16 %v5321_v38, %v5320_v52  ;;  %v6320_v40 = vpop.f32.mrf.mxu3  ;;  %vm6699_vm6 = vcmask 1040384  }
 0x31d   :  { %v6403_v45 = vmul.f32 %v9519_v48, %v6309_v1 }
 0x31f   :  { %v6468_v58 = vadd.f32 %v9565_v32, %v6403_v45 }
 0x320   :  { %v6141_v29 = vpop.f32.mrf.mxu2 }
 0x321   :  { %v6532_v47 = vmax.f32 %v6468_v58, 0.0  ;;  %v6142_v10 = vadd.f32 %v6141_v29, %v5972_v61  ;;  %v5975_v12 = vpop.f32.mrf.mxu1 }
 0x323   :  { %v6652_v20 = vsel %vm5192_vm5, %v6532_v47, 0.0  ;;  %v6311_v24 = vadd.f32 %v11385_v8, %v6142_v10 }
 0x324   :  { %v6653_v33 = vadd.f32 %v6652_v20, %v6651_v15  ;;  %v6323_v34 = vpop.f32.mrf.mxu3 }
 0x325   :  { %6014 = vmatmul.bf16.gmra.mxu1 %v5607_v14  ;;  %v6404_v49 = vmul.f32 %v9519_v48, %v6311_v24  ;;  %6183 = vmatmul.bf16.gmra.mxu2 %v5608_v3 }
 0x327   :  { %v6469_v55 = vadd.f32 %v9565_v32, %v6404_v49 }
 0x328   :  { %v6144_v59 = vpop.f32.mrf.mxu2 }
 0x329   :  { %v6533_v16 = vmax.f32 %v6469_v55, 0.0  ;;  %v6145_v39 = vadd.f32 %v6144_v59, %v5975_v12  ;;  %v5977_v26 = vpop.f32.mrf.mxu1 }
 0x32b   :  { %v6654_v27 = vsel %vm5192_vm5, %v6533_v16, 0.0  ;;  %v6314_v35 = vadd.f32 %v11401_v18, %v6145_v39 }
 0x32c   :  { %v6655_v5 = vadd.f32 %v6654_v27, %v6653_v33  ;;  %v6325_v25 = vpop.f32.mrf.mxu3 }
 0x32d   :  { %v6405_v8 = vmul.f32 %v9519_v48, %v6314_v35 }
 0x32f   :  { %v6470_v37 = vadd.f32 %v9565_v32, %v6405_v8 }
 0x330   :  { %v6146_v21 = vpop.f32.mrf.mxu2 }
 0x331   :  { %v6534_v43 = vmax.f32 %v6470_v37, 0.0  ;;  %v6147_v6 = vadd.f32 %v6146_v21, %v5977_v26  ;;  %v5980_v9 = vpop.f32.mrf.mxu1 }
 0x333   :  { %v6656_v28 = vsel %vm5192_vm5, %v6534_v43, 0.0  ;;  %v6316_v36 = vadd.f32 %v11424_v56, %v6147_v6  ;;  %v6704_v56 = vld [vmem:[%s11566_s5 + $0x18] sm:$0xff] }
 0x334   :  { %v6657_v53 = vadd.f32 %v6656_v28, %v6655_v5  ;;  %6750 = vmatpush.msrb.mxu0 %v6704_v56  ;;  %v6328_v60 = vpop.f32.mrf.mxu3 }
 0x335   :  { %v6406_v18 = vmul.f32 %v9519_v48, %v6316_v36 }
 0x337   :  { %v6471_v17 = vadd.f32 %v9565_v32, %v6406_v18 }
 0x338   :  { %v6149_v19 = vpop.f32.mrf.mxu2 }
 0x339   :  { %v6535_v41 = vmax.f32 %v6471_v17, 0.0  ;;  %v6150_v23 = vadd.f32 %v6149_v19, %v5980_v9  ;;  %v5982_v50 = vpop.f32.mrf.mxu1  ;;  %v6702_v19 = vld [vmem:[%s11566_s5 + $0x8] sm:$0xff] }
 0x33a   :  { %6771 = vmatpush.msrb.mxu3 %v6702_v19 }
 0x33b   :  { %v6658_v61 = vsel %vm5192_vm5, %v6535_v41, 0.0  ;;  %v6319_v46 = vadd.f32 %v6318_v11, %v6150_v23 }
 0x33c   :  { %v6659_v51 = vadd.f32 %v6658_v61, %v6657_v53  ;;  %v6330_v47 = vpop.f32.mrf.mxu3  ;;  %v6701_v61 = vld [vmem:[%s11566_s5] sm:$0xff] }
 0x33d   :  { %v6407_v63 = vmul.f32 %v9519_v48, %v6319_v46  ;;  %6751 = vmatpush.msrb.mxu0 %v6701_v61  ;;  %v6715_v61 = vld [vmem:[%s11566_s5 + $0x70] sm:$0xff] }
 0x33f   :  { %v6472_v2 = vadd.f32 %v9565_v32, %v6407_v63 }
 0x340   :  { %v6151_v13 = vpop.f32.mrf.mxu2 }
 0x341   :  { %v6536_v31 = vmax.f32 %v6472_v2, 0.0  ;;  %v6152_v42 = vadd.f32 %v6151_v13, %v5982_v50  ;;  %v5985_v1 = vpop.f32.mrf.mxu1 }
 0x343   :  { %v6660_v15 = vsel %vm5192_vm5, %v6536_v31, 0.0  ;;  %v6321_v44 = vadd.f32 %v6320_v40, %v6152_v42 }
 0x344   :  { %v6661_v4 = vadd.f32 %v6660_v15, %v6659_v51  ;;  %v6333_v26 = vpop.f32.mrf.mxu3 }
 0x345   :  { %v6408_v54 = vmul.f32 %v9519_v48, %v6321_v44 }
 0x347   :  { %v6473_v45 = vadd.f32 %v9565_v32, %v6408_v54 }
 0x348   :  { %v6154_v22 = vpop.f32.mrf.mxu2 }
 0x349   :  { %v6537_v57 = vmax.f32 %v6473_v45, 0.0  ;;  %v6155_v11 = vadd.f32 %v6154_v22, %v5985_v1  ;;  %v5987_v58 = vpop.f32.mrf.mxu1 }
 0x34b   :  { %v6662_v52 = vsel %vm5192_vm5, %v6537_v57, 0.0  ;;  %v6324_v38 = vadd.f32 %v6323_v34, %v6155_v11 }
 0x34c   :  { %v6663_v29 = vadd.f32 %v6662_v52, %v6661_v4  ;;  %v6335_v34 = vpop.f32.mrf.mxu3 }
 0x34d   :  { %v6409_v30 = vmul.f32 %v9519_v48, %v6324_v38 }
 0x34f   :  { %v6474_v62 = vadd.f32 %v9565_v32, %v6409_v30 }
 0x350   :  { %v6156_v10 = vpop.f32.mrf.mxu2 }
 0x351   :  { %v6538_v12 = vmax.f32 %v6474_v62, 0.0  ;;  %v6157_v14 = vadd.f32 %v6156_v10, %v5987_v58  ;;  %v5990_v20 = vpop.f32.mrf.mxu1 }
 0x353   :  { %v6664_v24 = vsel %vm5192_vm5, %v6538_v12, 0.0  ;;  %v6326_v3 = vadd.f32 %v6325_v25, %v6157_v14 }
 0x354   :  { %v6665_v33 = vadd.f32 %v6664_v24, %v6663_v29  ;;  %v6338_v0 = vpop.f32.mrf.mxu3 }
 0x355   :  { %v6410_v49 = vmul.f32 %v9519_v48, %v6326_v3 }
 0x357   :  { %v6475_v55 = vadd.f32 %v9565_v32, %v6410_v49 }
 0x358   :  { %v6159_v40 = vpop.f32.mrf.mxu2 }
 0x359   :  { %v6539_v59 = vmax.f32 %v6475_v55, 0.0  ;;  %v6160_v16 = vadd.f32 %v6159_v40, %v5990_v20  ;;  %v5992_v39 = vpop.f32.mrf.mxu1 }
 0x35b   :  { %v6666_v27 = vsel %vm5192_vm5, %v6539_v59, 0.0  ;;  %v6329_v35 = vadd.f32 %v6328_v60, %v6160_v16 }
 0x35c   :  { %v6667_v5 = vadd.f32 %v6666_v27, %v6665_v33  ;;  %v6340_v41 = vpop.f32.mrf.mxu3 }
 0x35d   :  { %v6411_v8 = vmul.f32 %v9519_v48, %v6329_v35 }
 0x35f   :  { %v6476_v37 = vadd.f32 %v9565_v32, %v6411_v8  ;;  %v6724_v8 = vld [vmem:[%s11566_s5 + $0xb8] sm:$0xff] }
 0x360   :  { %v6161_v21 = vpop.f32.mrf.mxu2  ;;  %6784 = vmatpush.msra.mxu0 %v6724_v8 }
 0x361   :  { %v6540_v43 = vmax.f32 %v6476_v37, 0.0  ;;  %v5995_v6 = vpop.f32.mrf.mxu1  ;;  %v6162_v31 = vadd.f32 %v6161_v21, %v5992_v39  ;;  %v6721_v37 = vld [vmem:[%s11566_s5 + $0xa0] sm:$0xff] }
 0x362   :  { %6785 = vmatpush.msra.mxu0 %v6721_v37 }
 0x363   :  { %v6668_v9 = vsel %vm5192_vm5, %v6540_v43, 0.0  ;;  %v6331_v44 = vadd.f32 %v6330_v47, %v6162_v31 }
 0x364   :  { %v11483_v28 = vadd.f32 %v6668_v9, %v6667_v5  ;;  %v6343_v51 = vpop.f32.mrf.mxu3 }
 0x365   :  { %v6412_v57 = vmul.f32 %v9519_v48, %v6331_v44 }
 0x367   :  { %v6477_v62 = vadd.f32 %v9565_v32, %v6412_v57 }
 0x368   :  { %v6164_v36 = vpop.f32.mrf.mxu2 }
 0x369   :  { %v5997_v53 = vpop.f32.mrf.mxu1  ;;  %v6165_v1 = vadd.f32 %v6164_v36, %v5995_v6  ;;  %v6541_v55 = vmax.f32 %v6477_v62, 0.0  ;;  %v6718_v36 = vld [vmem:[%s11566_s5 + $0x88] sm:$0xff] }
 0x36a   :  { %6786 = vmatpush.msra.mxu0 %v6718_v36 }
 0x36b   :  { %v6334_v54 = vadd.f32 %v6333_v26, %v6165_v1  ;;  %v6670_v21 = vsel %vm5192_vm5, %v6541_v55, 0.0 }
 0x36c   :  { %v6345_v2 = vpop.f32.mrf.mxu3  ;;  %v6671_v19 = vadd.f32 %v6670_v21, %v11483_v28  ;;  %6787 = vmatpush.msra.mxu0 %v6715_v61 }
 0x36d   :  { %v6413_v58 = vmul.f32 %v9519_v48, %v6334_v54  ;;  %v6712_v54 = vld [vmem:[%s11566_s5 + $0x58] sm:$0xff] }
 0x36e   :  { %6788 = vmatpush.msra.mxu0 %v6712_v54 }
 0x36f   :  { %v6478_v47 = vadd.f32 %v9565_v32, %v6413_v58 }
 0x370   :  { %v6166_v18 = vpop.f32.mrf.mxu2 }
 0x371   :  { %v6000_v17 = vpop.f32.mrf.mxu1  ;;  %v6167_v15 = vadd.f32 %v6166_v18, %v5997_v53  ;;  %v6542_v39 = vmax.f32 %v6478_v47, 0.0  ;;  %v6703_v47 = vld [vmem:[%s11566_s5 + $0x10] sm:$0xff] }
 0x373   :  { %v6336_v45 = vadd.f32 %v6335_v34, %v6167_v15  ;;  %v6672_v53 = vsel %vm5192_vm5, %v6542_v39, 0.0 }
 0x374   :  { %v6348_v4 = vpop.f32.mrf.mxu3 }
 0x375   :  { %v6414_v29 = vmul.f32 %v9519_v48, %v6336_v45 }
 0x377   :  { %v6479_v33 = vadd.f32 %v9565_v32, %v6414_v29 }
 0x378   :  { %v6169_v23 = vpop.f32.mrf.mxu2 }
 0x379   :  { %v6002_v50 = vpop.f32.mrf.mxu1  ;;  %v6170_v60 = vadd.f32 %v6169_v23, %v6000_v17  ;;  %v6543_v5 = vmax.f32 %v6479_v33, 0.0 }
 0x37b   :  { %v6339_v52 = vadd.f32 %v6338_v0, %v6170_v60  ;;  %v6709_v60 = vld [vmem:[%s11566_s5 + $0x40] sm:$0xff] }
 0x37c   :  { %v6350_v3 = vpop.f32.mrf.mxu3  ;;  %6789 = vmatpush.msra.mxu0 %v6709_v60 }
 0x37d   :  { %v6415_v14 = vmul.f32 %v9519_v48, %v6339_v52  ;;  %v6706_v52 = vld [vmem:[%s11566_s5 + $0x28] sm:$0xff] }
 0x37e   :  { %6790 = vmatpush.msra.mxu0 %v6706_v52 }
 0x37f   :  { %v6480_v26 = vadd.f32 %v9565_v32, %v6415_v14  ;;  %v6615_v14 = vrot.slane %v11233_v7, 4 }
 0x380   :  { %v6171_v46 = vpop.f32.mrf.mxu2  ;;  %6791 = vmatpush.msra.mxu0 %v6703_v47 }
 0x381   :  { %v6172_v11 = vadd.f32 %v6171_v46, %v6002_v50  ;;  %v6544_v0 = vmax.f32 %v6480_v26, 0.0  ;;  %v6616_v39 = vadd.f32 %v6615_v14, %v11233_v7 }
 0x382   :  { %v6005_v25 = vpop.f32.mrf.mxu1 }
 0x383   :  { %v6341_v10 = vadd.f32 %v6340_v41, %v6172_v11  ;;  %v6674_v41 = vsel %vm5192_vm5, %v6543_v5, 0.0  ;;  %v6617_v21 = vrot.slane %v6616_v39, 2 }
 0x384   :  { %v6353_v23 = vpop.f32.mrf.mxu3 }
 0x385   :  { %v6416_v40 = vmul.f32 %v9519_v48, %v6341_v10 }
 0x387   :  { %v6481_v43 = vadd.f32 %v9565_v32, %v6416_v40 }
 0x388   :  { %v6174_v56 = vpop.f32.mrf.mxu2 }
 0x389   :  { %v6175_v38 = vadd.f32 %v6174_v56, %v6005_v25  ;;  %v6545_v46 = vmax.f32 %v6481_v43, 0.0 }
 0x38a   :  { %v6007_v63 = vpop.f32.mrf.mxu1 }
 0x38b   :  { %v6344_v20 = vadd.f32 %v6343_v51, %v6175_v38  ;;  %v6678_v1 = vsel %vm5192_vm5, %v6545_v46, 0.0 }
 0x38d   :  { %v6417_v27 = vmul.f32 %v9519_v48, %v6344_v20 }
 0x38f   :  { %v6482_v18 = vadd.f32 %v9565_v32, %v6417_v27 }
 0x390   :  { %v6176_v13 = vpop.f32.mrf.mxu2 }
 0x391   :  { %v6177_v12 = vadd.f32 %v6176_v13, %v6007_v63  ;;  %v6673_v63 = vadd.f32 %v6672_v53, %v6671_v19  ;;  %v6546_v13 = vmax.f32 %v6482_v18, 0.0  ;;  %v6618_v53 = vadd.f32 %v6617_v21, %v6616_v39 }
 0x392   :  { %v6010_v42 = vpop.f32.mrf.mxu1 }
 0x393   :  { %v6346_v59 = vadd.f32 %v6345_v2, %v6177_v12  ;;  %v6676_v2 = vsel %vm5192_vm5, %v6544_v0, 0.0  ;;  %v6680_v57 = vsel %vm5192_vm5, %v6546_v13, 0.0  ;;  %v6619_v7 = vrot.slane %v6618_v53, 1 }
 0x395   :  { %v6418_v6 = vmul.f32 %v9519_v48, %v6346_v59 }
 0x397   :  { %v6483_v25 = vadd.f32 %v9565_v32, %v6418_v6 }
 0x398   :  { %v6179_v22 = vpop.f32.mrf.mxu2 }
 0x399   :  { %v6180_v24 = vadd.f32 %v6179_v22, %v6010_v42  ;;  %v6675_v42 = vadd.f32 %v6674_v41, %v6673_v63  ;;  %v6547_v15 = vmax.f32 %v6483_v25, 0.0  ;;  %v8075_v22 = vmov 256.0  }
 0x39a   :  { %v6012_v30 = vpop.f32.mrf.mxu1  ;;  %7977 = vrcp.f32 %v8075_v22  ;;  %v6620_v41 = vadd.f32 %v6619_v7, %v6618_v53 }
 0x39b   :  { %v6349_v35 = vadd.f32 %v6348_v4, %v6180_v24  ;;  %v6677_v45 = vadd.f32 %v6676_v2, %v6675_v42  ;;  %v6682_v62 = vsel %vm5192_vm5, %v6547_v15, 0.0  ;;  %v6355_v24 = vpop.f32.mrf.mxu3  ;;  %v11643_v2 = vlaneseq }
 0x39d   :  { %v6419_v17 = vmul.f32 %v9519_v48, %v6349_v35  ;;  %v6679_v38 = vadd.f32 %v6678_v1, %v6677_v45  ;;  %v6797_v13 = vand.u32 127, %v11643_v2 }
 0x39f   :  { %v6484_v28 = vadd.f32 %v9565_v32, %v6419_v17  ;;  %v6681_v20 = vadd.f32 %v6680_v57, %v6679_v38  ;;  %v6798_v42 = vadd.s32 128, %v6797_v13 }
 0x3a0   :  { %v6181_v49 = vpop.f32.mrf.mxu2  ;;  %v7978_v55 = vpop.eup %7977 }
 0x3a1   :  { %v6182_v16 = vadd.f32 %v6181_v49, %v6012_v30  ;;  %v6548_v11 = vmax.f32 %v6484_v28, 0.0  ;;  %v6683_v40 = vadd.f32 %v6682_v62, %v6681_v20  ;;  %v6622_v5 = vmul.f32 256.0, %v7978_v55 }
 0x3a2   :  { %v6015_v34 = vpop.f32.mrf.mxu1  ;;  %vm6626_vm1 = vweird.f32 %v7978_v55  ;;  %vm6801_vm2 = vcmp.eq.s32.totalorder %v6798_v42, 225 }
 0x3a3   :  { %v6351_v9 = vadd.f32 %v6350_v3, %v6182_v16  ;;  %v6684_v3 = vsel %vm5192_vm5, %v6548_v11, 0.0 }
 0x3a4   :  { %v6685_v26 = vadd.f32 %v6684_v3, %v6683_v40 }
 0x3a5   :  { %v6420_v51 = vmul.f32 %v9519_v48, %v6351_v9  ;;  %v6623_v9 = vsub.f32 1.0, %v6622_v5 }
 0x3a7   :  { %v6485_v44 = vadd.f32 %v9565_v32, %v6420_v51  ;;  %v6624_v0 = vmul.f32 %v7978_v55, %v6623_v9 }
 0x3a8   :  { %v6184_v50 = vpop.f32.mrf.mxu2 }
 0x3a9   :  { %v6185_v56 = vadd.f32 %v6184_v50, %v6015_v34  ;;  %v6549_v10 = vmax.f32 %v6485_v44, 0.0  ;;  %v6625_v17 = vadd.f32 %v7978_v55, %v6624_v0 }
 0x3aa   :  { %v6017_v29 = vpop.f32.mrf.mxu1 }
 0x3ab   :  { %v6354_v31 = vadd.f32 %v6353_v23, %v6185_v56  ;;  %v6686_v59 = vsel %vm5192_vm5, %v6549_v10, 0.0  ;;  %v6627_v23 = vsel %vm6626_vm1, %v7978_v55, %v6625_v17  ;;  %v6725_v56 = vld [vmem:[%s11567_s6] sm:$0x7] }
 0x3ac   :  { %v6687_v8 = vadd.f32 %v6686_v59, %v6685_v26  ;;  %v6628_v61 = vmul.f32 %v6627_v23, %v6620_v41  ;;  %v6728_v63 = vperm.slane %v6725_v56, 1  ;;  %v6729_v1 = vperm.slane %v6725_v56, 2 }
 0x3ad   :  { %v6421_v4 = vmul.f32 %v9519_v48, %v6354_v31  ;;  %v6727_v44 = vperm.slane %v6725_v56, 0 }
 0x3af   :  { %v6486_v58 = vadd.f32 %v9565_v32, %v6421_v4 }
 0x3b0   :  { %v6186_v30 = vpop.f32.mrf.mxu2 }
 0x3b1   :  { %v6187_v12 = vadd.f32 %v6186_v30, %v6017_v29  ;;  %v6550_v33 = vmax.f32 %v6486_v58, 0.0 }
 0x3b3   :  { %v6356_v49 = vadd.f32 %v6355_v24, %v6187_v12  ;;  %v6688_v27 = vsel %vm5192_vm5, %v6550_v33, 0.0 }
 0x3b4   :  { %v6689_v43 = vadd.f32 %v6688_v27, %v6687_v8 }
 0x3b5   :  { %v6422_v16 = vmul.f32 %v9519_v48, %v6356_v49 }
 0x3b7   :  { %v6487_v35 = vadd.f32 %v9565_v32, %v6422_v16 }
 0x3b9   :  { %v6551_v37 = vmax.f32 %v6487_v35, 0.0 }
 0x3bb   :  { %v6690_v6 = vsel %vm5192_vm5, %v6551_v37, 0.0 }
 0x3bc   :  { %v6691_v34 = vadd.f32 %v6690_v6, %v6689_v43 }
 0x3be   :  { %v6692_v36 = vrot.slane %v6691_v34, 4 }
 0x3c0   :  { %v6693_v48 = vadd.f32 %v6692_v36, %v6691_v34 }
 0x3c2   :  { %v6694_v18 = vrot.slane %v6693_v48, 2 }
 0x3c4   :  { %v6695_v19 = vadd.f32 %v6694_v18, %v6693_v48 }
 0x3c6   :  { %v6696_v32 = vrot.slane %v6695_v19, 1 }
 0x3c8   :  { %v6697_v50 = vadd.f32 %v6696_v32, %v6695_v19 }
 0x3ca   :  { %v6698_v46 = vmul.f32 %v6697_v50, %v6627_v23 }
 0x3cc   :  { %v6700_v25 = vsel %vm6699_vm6, %v6628_v61, %v6698_v46 }
 0x3cd   :  { %6990 = vmatmul.msk.f32.vlgmr.msrb.gmra.mxu0 %vm5192_vm5, %v6700_v25  ;;  %6991 = vmatmul.msk.f32.vlgmr.msrb.gmra.mxu3 %vm5192_vm5, %v6700_v25 }
 0x3d5   :  { %6992 = vmatmul.msk.f32.vlgmr.msra.gmra.mxu0 %vm5192_vm5, %v6700_v25  ;;  %vm6814_vm5 = vcmask 1041408  }
 0x44a   :  { %v6753_v51 = vpop.f32.mrf.mxu0 }
 0x44b   :  { %v6754_v45 = vadd.f32 %v6753_v51, %v6727_v44 }
 0x450   :  { %v6773_v28 = vpop.f32.mrf.mxu3 }
 0x451   :  { %v6774_v31 = vadd.f32 %v6773_v28, %v6728_v63 }
 0x452   :  { %v6793_v15 = vpop.f32.mrf.mxu0 }
 0x453   :  { %7979 = vtanh.f32 %v6774_v31  ;;  %v6794_v4 = vadd.f32 %v6793_v15, %v6729_v1 }
 0x455   :  { %v6813_v57 = vrot.slane %v6794_v4, 4 }
 0x459   :  { %v7980_v54 = vpop.eup %7979 }
 0x45a   :  { %v6807_v60 = vsel %vm6801_vm2, %v7980_v54, %v6774_v31 }
 0x45b   :  { %v6812_v22 = vrot.slane %v6807_v60, 6 }
 0x45d   :  { %v6815_v11 = vsel %vm6814_vm5, %v6754_v45, %v6812_v22 }
 0x45e   :  { %v6817_v58 = vsel %vm6816_vm3, %v6815_v11, %v6813_v57 }
 0x45f   :  { %6819 = vst [vmem:[%s11568_s7] sm:$0x3f] %v6817_v58 }

</bundles_post_ra>
